<compile_context>
chip_gen: v7x
topology: tpu7x:2x2x1
jax: 0.10.0
libtpu: 0.0.40
codegen_flags: <defaults>
</compile_context>

<pallas_src>
import functools
import math

import jax
import jax.numpy as jnp
from jax import lax
from jax.experimental import pallas as pl
from jax.experimental.pallas import tpu as pltpu


# --------------------------------------------------------------------------
# One-time parameter preparation (weight packing; analogous to load-time prep)
# --------------------------------------------------------------------------
def prepare_conv_t_params(params, *, n_head, spatial, hid_dim):
    """Build spatially block-diagonal 1x1-conv weights.

    With activations flattened NCHW as rows=(sample), cols=(c, p), the 1x1
    conv becomes a plain (rows, C*P) @ (C*P, C*P) matmul whose output columns
    are ordered (c_out, p) -- i.e. already NCHW-flattened and head-major
    (each head is a contiguous 128-lane slab).  The softmax scale is folded
    into the query weight/bias.
    """
    C, P = hid_dim, spatial
    eye = jnp.eye(P, dtype=jnp.float32)
    scale = 1.0 / math.sqrt(P * C // n_head)  # matches 1/sqrt(W*H*C//n_head)

    def big_w(w):  # torch-style (Cout, Cin) -> (Cin*P, Cout*P), block-diag over spatial
        return jnp.einsum("oc,pq->cpoq", w.astype(jnp.float32), eye).reshape(C * P, C * P)

    def big_b(b):  # (Cout,) -> (1, Cout*P), broadcast over spatial
        return jnp.broadcast_to(b.astype(jnp.float32)[:, None], (C, P)).reshape(1, C * P)

    wq = big_w(params["wq"]) * scale
    bq = big_b(params["bq"]) * scale
    wkv = jnp.concatenate([big_w(params["wk"]), big_w(params["wv"])], axis=1)  # (CP, 2CP)
    bkv = jnp.concatenate([big_b(params["bk"]), big_b(params["bv"])], axis=1)  # (1, 2CP)
    return {"wq": wq, "bq": bq, "wkv": wkv, "bkv": bkv}


# --------------------------------------------------------------------------
# Fused kernel: projections + per-head attention, one grid step per batch
# --------------------------------------------------------------------------
def _fused_kernel(q_ref, kv_ref, wq_ref, wkv_ref, bq_ref, bkv_ref,
                  out_ref, sim_ref, *, n_head, feat, cwh):
    # q_ref:   (K, C*W*H)      query samples, NCHW-flattened features
    # kv_ref:  (T, C*W*H)      context samples
    # wq_ref:  (C*W*H, C*W*H)  block-diag query weight (softmax scale folded in)
    # wkv_ref: (C*W*H, 2*C*W*H)  [key | value] weights concatenated
    # out_ref: (K, C*W*H)      attention output, NCHW-flattened
    # sim_ref: (n_head, K, T)  softmax attention weights

    # --- 1x1 convolutions as lane-dense MXU matmuls -------------------------
    q_proj = (jnp.dot(q_ref[...], wq_ref[...],
                      preferred_element_type=jnp.float32) + bq_ref[...])
    kv_proj = (jnp.dot(kv_ref[...], wkv_ref[...],
                       preferred_element_type=jnp.float32) + bkv_ref[...])

    # --- multi-head attention: each head is a contiguous 128-lane slab ------
    for n in range(n_head):  # static unroll (n_head = 4)
        lo = n * feat
        q_n = q_proj[:, lo:lo + feat]                 # (K, F), scale pre-applied
        k_n = kv_proj[:, lo:lo + feat]                # (T, F)
        v_n = kv_proj[:, cwh + lo:cwh + lo + feat]    # (T, F)

        # QK^T contracting the feature axis directly (no key transpose).
        s = lax.dot_general(q_n, k_n, (((1,), (1,)), ((), ())),
                            preferred_element_type=jnp.float32)        # (K, T)
        s = s - jnp.max(s, axis=-1, keepdims=True)
        e = jnp.exp(s)
        # approx=True would hit the EUP fast path but its ~2^-12 error is
        # visible against the f32 reference; exact reciprocal is free here.
        p = e * pl.reciprocal(jnp.sum(e, axis=-1, keepdims=True), approx=False)

        out_ref[:, lo:lo + feat] = jnp.dot(
            p, v_n, preferred_element_type=jnp.float32).astype(out_ref.dtype)
        sim_ref[n, :, :] = p.astype(sim_ref.dtype)


def conv_t_block(qq, kv, prepared, n_head=4):
    """qq: (B*K, C, W, H), kv: (B, T, C, W, H) -> (out (B*K,C,W,H), sim (B,n,K,T))."""
    B, T, C, W, H = kv.shape
    K = qq.shape[0] // B
    P = W * H
    CWH = C * P
    F = (C // n_head) * P

    # Contiguity-preserving reshapes only -- no host-side transposes.
    q_in = qq.reshape(B, K, CWH)
    kv_in = kv.reshape(B, T, CWH)

    kernel = functools.partial(_fused_kernel, n_head=n_head, feat=F, cwh=CWH)
    out_flat, sim = pl.pallas_call(
        kernel,
        out_shape=(
            jax.ShapeDtypeStruct((B, K, CWH), jnp.float32),
            jax.ShapeDtypeStruct((B, n_head, K, T), jnp.float32),
        ),
        grid=(B,),
        in_specs=[
            pl.BlockSpec((None, K, CWH), lambda b: (b, 0, 0)),
            pl.BlockSpec((None, T, CWH), lambda b: (b, 0, 0)),
            # Weights/biases: constant block index -> fetched once, reused.
            pl.BlockSpec((CWH, CWH), lambda b: (0, 0)),
            pl.BlockSpec((CWH, 2 * CWH), lambda b: (0, 0)),
            pl.BlockSpec((1, CWH), lambda b: (0, 0)),
            pl.BlockSpec((1, 2 * CWH), lambda b: (0, 0)),
        ],
        out_specs=(
            pl.BlockSpec((None, K, CWH), lambda b: (b, 0, 0)),
            pl.BlockSpec((None, n_head, K, T), lambda b: (b, 0, 0, 0)),
        ),
        compiler_params=pltpu.CompilerParams(
            dimension_semantics=("parallel",)),  # 2 steps -> both TCs on v7x
    )(q_in, kv_in, prepared["wq"], prepared["wkv"], prepared["bq"], prepared["bkv"])

    out = out_flat.reshape(B * K, C, W, H)  # columns are already (c, w, h)
    return out, sim


# --------------------------------------------------------------------------
# Pure-JAX reference (mirrors the PyTorch forward exactly)
# --------------------------------------------------------------------------
def reference(qq, kv, params, n_head):
    B, T, C, W, H = kv.shape
    d = C // n_head

    def conv(x, w, b):  # 1x1 conv on NCHW
        return jnp.einsum("nchw,oc->nohw", x, w) + b[None, :, None, None]

    kv_flat = kv.reshape(-1, C, W, H)
    q = conv(qq, params["wq"], params["bq"]).reshape(B, -1, n_head, d, W, H)
    k = conv(kv_flat, params["wk"], params["bk"]).reshape(B, -1, n_head, d, W, H)
    v = conv(kv_flat, params["wv"], params["bv"]).reshape(B, -1, n_head, d, W, H)
    q = jnp.transpose(q, (0, 2, 1, 3, 4, 5))
    k = jnp.transpose(k, (0, 2, 1, 3, 4, 5))
    v = jnp.transpose(v, (0, 2, 1, 3, 4, 5))
    sim = jnp.einsum("bnkcwh,bntcwh->bnkt", q, k)
    sim = sim * (1.0 / math.sqrt(W * H * C // n_head))
    sim = jax.nn.softmax(sim, axis=-1)
    out = jnp.einsum("bnkt,bntcwh->bnkcwh", sim, v)
    out = jnp.transpose(out, (0, 2, 1, 3, 4, 5)).reshape(qq.shape)
    return out, sim


if __name__ == "__main__":
    B, T, K = 2, 8, 8
    hid_dim, n_head = 32, 4
    W = H = 4  # forced by kv.view(-1, hid_dim, 4, 4) in the PyTorch module

    key = jax.random.PRNGKey(0)
    k_q, k_kv, *wkeys = jax.random.split(key, 8)
    qq = jax.random.normal(k_q, (B * K, hid_dim, W, H), jnp.float32)
    kv = jax.random.normal(k_kv, (B, T, hid_dim, W, H), jnp.float32)

    bound = 1.0 / math.sqrt(hid_dim)  # PyTorch Conv2d default init bound
    u = lambda k, s: jax.random.uniform(k, s, jnp.float32, -bound, bound)
    params = {
        "wq": u(wkeys[0], (hid_dim, hid_dim)), "bq": u(wkeys[1], (hid_dim,)),
        "wk": u(wkeys[2], (hid_dim, hid_dim)), "bk": u(wkeys[3], (hid_dim,)),
        "wv": u(wkeys[4], (hid_dim, hid_dim)), "bv": u(wkeys[5], (hid_dim,)),
    }

    # One-time weight packing (outside the per-call hot path).
    prepared = prepare_conv_t_params(params, n_head=n_head, spatial=W * H,
                                     hid_dim=hid_dim)
    jax.block_until_ready(prepared)

    out, sim = conv_t_block(qq, kv, prepared, n_head=n_head)
    jax.block_until_ready((out, sim))

    out_ref, sim_ref = reference(qq, kv, params, n_head)
    assert out.shape == qq.shape and sim.shape == (B, n_head, K, T)
    assert jnp.allclose(out, out_ref, atol=1e-4, rtol=1e-4)
    assert jnp.allclose(sim, sim_ref, atol=1e-4, rtol=1e-4)
    print("KERNEL_OK")
</pallas_src>

<mosaic_0001>
module attributes {stable_mosaic.version = 11 : i64} {
  func.func @_fused_kernel(%arg0: i32, %arg1: memref<1x8x512xf32, #tpu.memory_space<vmem>>, %arg2: memref<1x8x512xf32, #tpu.memory_space<vmem>>, %arg3: memref<512x512xf32, #tpu.memory_space<vmem>>, %arg4: memref<512x1024xf32, #tpu.memory_space<vmem>>, %arg5: memref<1x512xf32, #tpu.memory_space<vmem>>, %arg6: memref<1x1024xf32, #tpu.memory_space<vmem>>, %arg7: memref<1x8x512xf32, #tpu.memory_space<vmem>>, %arg8: memref<1x4x8x8xf32, #tpu.memory_space<vmem>>) attributes {dimension_semantics = [#tpu.dimension_semantics<parallel>], iteration_bounds = array<i64: 2>, scalar_prefetch = 0 : i64, scratch_operands = 0 : i64, tpu.core_type = #tpu.core_type<tc>, window_params = [{transform_indices = @transform_0, window_bounds = array<i64: 1, 8, 512>}, {transform_indices = @transform_1, window_bounds = array<i64: 1, 8, 512>}, {pipeline_mode = #tpu.pipeline_mode<synchronous>, transform_indices = @transform_2, window_bounds = array<i64: 512, 512>}, {pipeline_mode = #tpu.pipeline_mode<synchronous>, transform_indices = @transform_3, window_bounds = array<i64: 512, 1024>}, {pipeline_mode = #tpu.pipeline_mode<synchronous>, transform_indices = @transform_4, window_bounds = array<i64: 1, 512>}, {pipeline_mode = #tpu.pipeline_mode<synchronous>, transform_indices = @transform_5, window_bounds = array<i64: 1, 1024>}, {transform_indices = @transform_6, window_bounds = array<i64: 1, 8, 512>}, {transform_indices = @transform_7, window_bounds = array<i64: 1, 4, 8, 8>}]} {
    %c0 = arith.constant 0 : index
    %c0_0 = arith.constant 0 : index
    %c0_1 = arith.constant 0 : index
    %0 = vector.load %arg1[%c0, %c0_0, %c0_1] : memref<1x8x512xf32, #tpu.memory_space<vmem>>, vector<1x8x512xf32>
    %1 = vector.shape_cast %0 : vector<1x8x512xf32> to vector<8x512xf32>
    %c0_2 = arith.constant 0 : index
    %c0_3 = arith.constant 0 : index
    %2 = vector.load %arg3[%c0_2, %c0_3] : memref<512x512xf32, #tpu.memory_space<vmem>>, vector<512x512xf32>
    %cst = arith.constant dense<0.000000e+00> : vector<8x512xf32>
    %3 = tpu.matmul %1, %2, %cst {dimension_numbers = #tpu.dot_dimension_numbers<[1], [0], [0], [1], [0, 0, 1, 1], [], []>} : vector<8x512xf32>, vector<512x512xf32>, vector<8x512xf32> -> vector<8x512xf32>
    %c0_4 = arith.constant 0 : index
    %c0_5 = arith.constant 0 : index
    %4 = vector.load %arg5[%c0_4, %c0_5] : memref<1x512xf32, #tpu.memory_space<vmem>>, vector<1x512xf32>
    %5 = vector.broadcast %4 : vector<1x512xf32> to vector<8x512xf32>
    %6 = arith.addf %3, %5 : vector<8x512xf32>
    %c0_6 = arith.constant 0 : index
    %c0_7 = arith.constant 0 : index
    %c0_8 = arith.constant 0 : index
    %7 = vector.load %arg2[%c0_6, %c0_7, %c0_8] : memref<1x8x512xf32, #tpu.memory_space<vmem>>, vector<1x8x512xf32>
    %8 = vector.shape_cast %7 : vector<1x8x512xf32> to vector<8x512xf32>
    %c0_9 = arith.constant 0 : index
    %c0_10 = arith.constant 0 : index
    %9 = vector.load %arg4[%c0_9, %c0_10] : memref<512x1024xf32, #tpu.memory_space<vmem>>, vector<512x1024xf32>
    %cst_11 = arith.constant dense<0.000000e+00> : vector<8x1024xf32>
    %10 = tpu.matmul %8, %9, %cst_11 {dimension_numbers = #tpu.dot_dimension_numbers<[1], [0], [0], [1], [0, 0, 1, 1], [], []>} : vector<8x512xf32>, vector<512x1024xf32>, vector<8x1024xf32> -> vector<8x1024xf32>
    %c0_12 = arith.constant 0 : index
    %c0_13 = arith.constant 0 : index
    %11 = vector.load %arg6[%c0_12, %c0_13] : memref<1x1024xf32, #tpu.memory_space<vmem>>, vector<1x1024xf32>
    %12 = vector.broadcast %11 : vector<1x1024xf32> to vector<8x1024xf32>
    %13 = arith.addf %10, %12 : vector<8x1024xf32>
    %14 = vector.extract_strided_slice %6 {offsets = [0, 0], sizes = [8, 128], strides = [1, 1]} : vector<8x512xf32> to vector<8x128xf32>
    %15 = vector.extract_strided_slice %13 {offsets = [0, 0], sizes = [8, 128], strides = [1, 1]} : vector<8x1024xf32> to vector<8x128xf32>
    %16 = vector.extract_strided_slice %13 {offsets = [0, 512], sizes = [8, 128], strides = [1, 1]} : vector<8x1024xf32> to vector<8x128xf32>
    %cst_14 = arith.constant dense<0.000000e+00> : vector<8x8xf32>
    %17 = tpu.matmul %14, %15, %cst_14 {dimension_numbers = #tpu.dot_dimension_numbers<[1], [1], [0], [0], [0, 0, 1, 0], [], []>} : vector<8x128xf32>, vector<8x128xf32>, vector<8x8xf32> -> vector<8x8xf32>
    %cst_15 = arith.constant dense<0xFF800000> : vector<8xf32>
    %18 = vector.multi_reduction <maximumf>, %17, %cst_15 [1] : vector<8x8xf32> to vector<8xf32>
    %19 = vector.shape_cast %18 : vector<8xf32> to vector<8x1xf32>
    %20 = vector.broadcast %19 : vector<8x1xf32> to vector<8x8xf32>
    %21 = arith.subf %17, %20 : vector<8x8xf32>
    %22 = math.exp %21 : vector<8x8xf32>
    %cst_16 = arith.constant dense<0.000000e+00> : vector<8xf32>
    %23 = vector.multi_reduction <add>, %22, %cst_16 [1] : vector<8x8xf32> to vector<8xf32>
    %24 = vector.shape_cast %23 : vector<8xf32> to vector<8x1xf32>
    %25 = tpu.reciprocal %24 : vector<8x1xf32> -> vector<8x1xf32>
    %26 = vector.broadcast %25 : vector<8x1xf32> to vector<8x8xf32>
    %27 = arith.mulf %22, %26 : vector<8x8xf32>
    %cst_17 = arith.constant dense<0.000000e+00> : vector<8x128xf32>
    %28 = tpu.matmul %27, %16, %cst_17 {dimension_numbers = #tpu.dot_dimension_numbers<[1], [0], [0], [1], [0, 0, 1, 1], [], []>} : vector<8x8xf32>, vector<8x128xf32>, vector<8x128xf32> -> vector<8x128xf32>
    %c0_18 = arith.constant 0 : index
    %c0_19 = arith.constant 0 : index
    %c0_20 = arith.constant 0 : index
    %29 = vector.load %arg7[%c0_18, %c0_19, %c0_20] : memref<1x8x512xf32, #tpu.memory_space<vmem>>, vector<1x8x128xf32>
    %30 = vector.shape_cast %29 : vector<1x8x128xf32> to vector<8x128xf32>
    %31 = vector.shape_cast %28 : vector<8x128xf32> to vector<1x8x128xf32>
    tpu.vector_store %arg7[%c0_18, %c0_19, %c0_20], %31 {strides = array<i32>} : memref<1x8x512xf32, #tpu.memory_space<vmem>>, vector<1x8x128xf32>,
    %c0_21 = arith.constant 0 : index
    %c0_22 = arith.constant 0 : index
    %c0_23 = arith.constant 0 : index
    %c0_24 = arith.constant 0 : index
    %32 = vector.load %arg8[%c0_21, %c0_22, %c0_23, %c0_24] : memref<1x4x8x8xf32, #tpu.memory_space<vmem>>, vector<1x1x8x8xf32>
    %33 = vector.shape_cast %32 : vector<1x1x8x8xf32> to vector<8x8xf32>
    %34 = vector.shape_cast %27 : vector<8x8xf32> to vector<1x1x8x8xf32>
    tpu.vector_store %arg8[%c0_21, %c0_22, %c0_23, %c0_24], %34 {strides = array<i32>} : memref<1x4x8x8xf32, #tpu.memory_space<vmem>>, vector<1x1x8x8xf32>,
    %35 = vector.extract_strided_slice %6 {offsets = [0, 128], sizes = [8, 128], strides = [1, 1]} : vector<8x512xf32> to vector<8x128xf32>
    %36 = vector.extract_strided_slice %13 {offsets = [0, 128], sizes = [8, 128], strides = [1, 1]} : vector<8x1024xf32> to vector<8x128xf32>
    %37 = vector.extract_strided_slice %13 {offsets = [0, 640], sizes = [8, 128], strides = [1, 1]} : vector<8x1024xf32> to vector<8x128xf32>
    %cst_25 = arith.constant dense<0.000000e+00> : vector<8x8xf32>
    %38 = tpu.matmul %35, %36, %cst_25 {dimension_numbers = #tpu.dot_dimension_numbers<[1], [1], [0], [0], [0, 0, 1, 0], [], []>} : vector<8x128xf32>, vector<8x128xf32>, vector<8x8xf32> -> vector<8x8xf32>
    %cst_26 = arith.constant dense<0xFF800000> : vector<8xf32>
    %39 = vector.multi_reduction <maximumf>, %38, %cst_26 [1] : vector<8x8xf32> to vector<8xf32>
    %40 = vector.shape_cast %39 : vector<8xf32> to vector<8x1xf32>
    %41 = vector.broadcast %40 : vector<8x1xf32> to vector<8x8xf32>
    %42 = arith.subf %38, %41 : vector<8x8xf32>
    %43 = math.exp %42 : vector<8x8xf32>
    %cst_27 = arith.constant dense<0.000000e+00> : vector<8xf32>
    %44 = vector.multi_reduction <add>, %43, %cst_27 [1] : vector<8x8xf32> to vector<8xf32>
    %45 = vector.shape_cast %44 : vector<8xf32> to vector<8x1xf32>
    %46 = tpu.reciprocal %45 : vector<8x1xf32> -> vector<8x1xf32>
    %47 = vector.broadcast %46 : vector<8x1xf32> to vector<8x8xf32>
    %48 = arith.mulf %43, %47 : vector<8x8xf32>
    %cst_28 = arith.constant dense<0.000000e+00> : vector<8x128xf32>
    %49 = tpu.matmul %48, %37, %cst_28 {dimension_numbers = #tpu.dot_dimension_numbers<[1], [0], [0], [1], [0, 0, 1, 1], [], []>} : vector<8x8xf32>, vector<8x128xf32>, vector<8x128xf32> -> vector<8x128xf32>
    %c0_29 = arith.constant 0 : index
    %c0_30 = arith.constant 0 : index
    %c128 = arith.constant 128 : index
    %50 = vector.load %arg7[%c0_29, %c0_30, %c128] : memref<1x8x512xf32, #tpu.memory_space<vmem>>, vector<1x8x128xf32>
    %51 = vector.shape_cast %50 : vector<1x8x128xf32> to vector<8x128xf32>
    %52 = vector.shape_cast %49 : vector<8x128xf32> to vector<1x8x128xf32>
    tpu.vector_store %arg7[%c0_29, %c0_30, %c128], %52 {strides = array<i32>} : memref<1x8x512xf32, #tpu.memory_space<vmem>>, vector<1x8x128xf32>,
    %c0_31 = arith.constant 0 : index
    %c1 = arith.constant 1 : index
    %c0_32 = arith.constant 0 : index
    %c0_33 = arith.constant 0 : index
    %53 = vector.load %arg8[%c0_31, %c1, %c0_32, %c0_33] : memref<1x4x8x8xf32, #tpu.memory_space<vmem>>, vector<1x1x8x8xf32>
    %54 = vector.shape_cast %53 : vector<1x1x8x8xf32> to vector<8x8xf32>
    %55 = vector.shape_cast %48 : vector<8x8xf32> to vector<1x1x8x8xf32>
    tpu.vector_store %arg8[%c0_31, %c1, %c0_32, %c0_33], %55 {strides = array<i32>} : memref<1x4x8x8xf32, #tpu.memory_space<vmem>>, vector<1x1x8x8xf32>,
    %56 = vector.extract_strided_slice %6 {offsets = [0, 256], sizes = [8, 128], strides = [1, 1]} : vector<8x512xf32> to vector<8x128xf32>
    %57 = vector.extract_strided_slice %13 {offsets = [0, 256], sizes = [8, 128], strides = [1, 1]} : vector<8x1024xf32> to vector<8x128xf32>
    %58 = vector.extract_strided_slice %13 {offsets = [0, 768], sizes = [8, 128], strides = [1, 1]} : vector<8x1024xf32> to vector<8x128xf32>
    %cst_34 = arith.constant dense<0.000000e+00> : vector<8x8xf32>
    %59 = tpu.matmul %56, %57, %cst_34 {dimension_numbers = #tpu.dot_dimension_numbers<[1], [1], [0], [0], [0, 0, 1, 0], [], []>} : vector<8x128xf32>, vector<8x128xf32>, vector<8x8xf32> -> vector<8x8xf32>
    %cst_35 = arith.constant dense<0xFF800000> : vector<8xf32>
    %60 = vector.multi_reduction <maximumf>, %59, %cst_35 [1] : vector<8x8xf32> to vector<8xf32>
    %61 = vector.shape_cast %60 : vector<8xf32> to vector<8x1xf32>
    %62 = vector.broadcast %61 : vector<8x1xf32> to vector<8x8xf32>
    %63 = arith.subf %59, %62 : vector<8x8xf32>
    %64 = math.exp %63 : vector<8x8xf32>
    %cst_36 = arith.constant dense<0.000000e+00> : vector<8xf32>
    %65 = vector.multi_reduction <add>, %64, %cst_36 [1] : vector<8x8xf32> to vector<8xf32>
    %66 = vector.shape_cast %65 : vector<8xf32> to vector<8x1xf32>
    %67 = tpu.reciprocal %66 : vector<8x1xf32> -> vector<8x1xf32>
    %68 = vector.broadcast %67 : vector<8x1xf32> to vector<8x8xf32>
    %69 = arith.mulf %64, %68 : vector<8x8xf32>
    %cst_37 = arith.constant dense<0.000000e+00> : vector<8x128xf32>
    %70 = tpu.matmul %69, %58, %cst_37 {dimension_numbers = #tpu.dot_dimension_numbers<[1], [0], [0], [1], [0, 0, 1, 1], [], []>} : vector<8x8xf32>, vector<8x128xf32>, vector<8x128xf32> -> vector<8x128xf32>
    %c0_38 = arith.constant 0 : index
    %c0_39 = arith.constant 0 : index
    %c256 = arith.constant 256 : index
    %71 = vector.load %arg7[%c0_38, %c0_39, %c256] : memref<1x8x512xf32, #tpu.memory_space<vmem>>, vector<1x8x128xf32>
    %72 = vector.shape_cast %71 : vector<1x8x128xf32> to vector<8x128xf32>
    %73 = vector.shape_cast %70 : vector<8x128xf32> to vector<1x8x128xf32>
    tpu.vector_store %arg7[%c0_38, %c0_39, %c256], %73 {strides = array<i32>} : memref<1x8x512xf32, #tpu.memory_space<vmem>>, vector<1x8x128xf32>,
    %c0_40 = arith.constant 0 : index
    %c2 = arith.constant 2 : index
    %c0_41 = arith.constant 0 : index
    %c0_42 = arith.constant 0 : index
    %74 = vector.load %arg8[%c0_40, %c2, %c0_41, %c0_42] : memref<1x4x8x8xf32, #tpu.memory_space<vmem>>, vector<1x1x8x8xf32>
    %75 = vector.shape_cast %74 : vector<1x1x8x8xf32> to vector<8x8xf32>
    %76 = vector.shape_cast %69 : vector<8x8xf32> to vector<1x1x8x8xf32>
    tpu.vector_store %arg8[%c0_40, %c2, %c0_41, %c0_42], %76 {strides = array<i32>} : memref<1x4x8x8xf32, #tpu.memory_space<vmem>>, vector<1x1x8x8xf32>,
    %77 = vector.extract_strided_slice %6 {offsets = [0, 384], sizes = [8, 128], strides = [1, 1]} : vector<8x512xf32> to vector<8x128xf32>
    %78 = vector.extract_strided_slice %13 {offsets = [0, 384], sizes = [8, 128], strides = [1, 1]} : vector<8x1024xf32> to vector<8x128xf32>
    %79 = vector.extract_strided_slice %13 {offsets = [0, 896], sizes = [8, 128], strides = [1, 1]} : vector<8x1024xf32> to vector<8x128xf32>
    %cst_43 = arith.constant dense<0.000000e+00> : vector<8x8xf32>
    %80 = tpu.matmul %77, %78, %cst_43 {dimension_numbers = #tpu.dot_dimension_numbers<[1], [1], [0], [0], [0, 0, 1, 0], [], []>} : vector<8x128xf32>, vector<8x128xf32>, vector<8x8xf32> -> vector<8x8xf32>
    %cst_44 = arith.constant dense<0xFF800000> : vector<8xf32>
    %81 = vector.multi_reduction <maximumf>, %80, %cst_44 [1] : vector<8x8xf32> to vector<8xf32>
    %82 = vector.shape_cast %81 : vector<8xf32> to vector<8x1xf32>
    %83 = vector.broadcast %82 : vector<8x1xf32> to vector<8x8xf32>
    %84 = arith.subf %80, %83 : vector<8x8xf32>
    %85 = math.exp %84 : vector<8x8xf32>
    %cst_45 = arith.constant dense<0.000000e+00> : vector<8xf32>
    %86 = vector.multi_reduction <add>, %85, %cst_45 [1] : vector<8x8xf32> to vector<8xf32>
    %87 = vector.shape_cast %86 : vector<8xf32> to vector<8x1xf32>
    %88 = tpu.reciprocal %87 : vector<8x1xf32> -> vector<8x1xf32>
    %89 = vector.broadcast %88 : vector<8x1xf32> to vector<8x8xf32>
    %90 = arith.mulf %85, %89 : vector<8x8xf32>
    %cst_46 = arith.constant dense<0.000000e+00> : vector<8x128xf32>
    %91 = tpu.matmul %90, %79, %cst_46 {dimension_numbers = #tpu.dot_dimension_numbers<[1], [0], [0], [1], [0, 0, 1, 1], [], []>} : vector<8x8xf32>, vector<8x128xf32>, vector<8x128xf32> -> vector<8x128xf32>
    %c0_47 = arith.constant 0 : index
    %c0_48 = arith.constant 0 : index
    %c384 = arith.constant 384 : index
    %92 = vector.load %arg7[%c0_47, %c0_48, %c384] : memref<1x8x512xf32, #tpu.memory_space<vmem>>, vector<1x8x128xf32>
    %93 = vector.shape_cast %92 : vector<1x8x128xf32> to vector<8x128xf32>
    %94 = vector.shape_cast %91 : vector<8x128xf32> to vector<1x8x128xf32>
    tpu.vector_store %arg7[%c0_47, %c0_48, %c384], %94 {strides = array<i32>} : memref<1x8x512xf32, #tpu.memory_space<vmem>>, vector<1x8x128xf32>,
    %c0_49 = arith.constant 0 : index
    %c3 = arith.constant 3 : index
    %c0_50 = arith.constant 0 : index
    %c0_51 = arith.constant 0 : index
    %95 = vector.load %arg8[%c0_49, %c3, %c0_50, %c0_51] : memref<1x4x8x8xf32, #tpu.memory_space<vmem>>, vector<1x1x8x8xf32>
    %96 = vector.shape_cast %95 : vector<1x1x8x8xf32> to vector<8x8xf32>
    %97 = vector.shape_cast %90 : vector<8x8xf32> to vector<1x1x8x8xf32>
    tpu.vector_store %arg8[%c0_49, %c3, %c0_50, %c0_51], %97 {strides = array<i32>} : memref<1x4x8x8xf32, #tpu.memory_space<vmem>>, vector<1x1x8x8xf32>,
    return
  }
  func.func @transform_0(%arg0: i32) -> (i32, i32, i32) {
    %c0_i32 = arith.constant 0 : i32
    %c0_i32_0 = arith.constant 0 : i32
    %c0_i32_1 = arith.constant 0 : i32
    return %arg0, %c0_i32, %c0_i32_0 : i32, i32, i32
  }
  func.func @transform_1(%arg0: i32) -> (i32, i32, i32) {
    %c0_i32 = arith.constant 0 : i32
    %c0_i32_0 = arith.constant 0 : i32
    %c0_i32_1 = arith.constant 0 : i32
    return %arg0, %c0_i32, %c0_i32_0 : i32, i32, i32
  }
  func.func @transform_2(%arg0: i32) -> (i32, i32) {
    %c0_i32 = arith.constant 0 : i32
    %c0_i32_0 = arith.constant 0 : i32
    %c0_i32_1 = arith.constant 0 : i32
    return %c0_i32, %c0_i32_0 : i32, i32
  }
  func.func @transform_3(%arg0: i32) -> (i32, i32) {
    %c0_i32 = arith.constant 0 : i32
    %c0_i32_0 = arith.constant 0 : i32
    %c0_i32_1 = arith.constant 0 : i32
    return %c0_i32, %c0_i32_0 : i32, i32
  }
  func.func @transform_4(%arg0: i32) -> (i32, i32) {
    %c0_i32 = arith.constant 0 : i32
    %c0_i32_0 = arith.constant 0 : i32
    %c0_i32_1 = arith.constant 0 : i32
    return %c0_i32, %c0_i32_0 : i32, i32
  }
  func.func @transform_5(%arg0: i32) -> (i32, i32) {
    %c0_i32 = arith.constant 0 : i32
    %c0_i32_0 = arith.constant 0 : i32
    %c0_i32_1 = arith.constant 0 : i32
    return %c0_i32, %c0_i32_0 : i32, i32
  }
  func.func @transform_6(%arg0: i32) -> (i32, i32, i32) {
    %c0_i32 = arith.constant 0 : i32
    %c0_i32_0 = arith.constant 0 : i32
    %c0_i32_1 = arith.constant 0 : i32
    return %arg0, %c0_i32, %c0_i32_0 : i32, i32, i32
  }
  func.func @transform_7(%arg0: i32) -> (i32, i32, i32, i32) {
    %c0_i32 = arith.constant 0 : i32
    %c0_i32_0 = arith.constant 0 : i32
    %c0_i32_1 = arith.constant 0 : i32
    %c0_i32_2 = arith.constant 0 : i32
    return %arg0, %c0_i32, %c0_i32_0, %c0_i32_1 : i32, i32, i32, i32
  }
}

</mosaic_0001>

<bundles_post_ra>
// kernel: tpu_custom_call.1
= control target key start
LH: loop header
LB: loop body
LE: loop exit
PB: predicated region body
PF: predicated region fallthrough
CT: control target
= control target key end

     0   :  { %s4742_s0 = inlined_call_operand.hbm [shape: f32[2,8,512], index: 0, kind: input, shape index: {}]   ;;  %s4743_s1 = inlined_call_operand.hbm [shape: f32[2,8,512], index: 1, kind: input, shape index: {}]   ;;  %s4744_s2 = inlined_call_operand.hbm [shape: f32[512,512], index: 2, kind: input, shape index: {}]   ;;  %s4745_s3 = inlined_call_operand.hbm [shape: f32[512,1024], index: 3, kind: input, shape index: {}]   ;;  %s4746_s4 = inlined_call_operand.hbm [shape: f32[1,512], index: 4, kind: input, shape index: {}]   ;;  %s4747_s5 = inlined_call_operand.hbm [shape: f32[1,1024], index: 5, kind: input, shape index: {}]   ;;  %s4748_s6 = inlined_call_operand.hbm [shape: f32[2,8,512], index: 6, kind: output, shape index: {0}]   ;;  %s4749_s7 = inlined_call_operand.hbm [shape: f32[2,4,8,8], index: 7, kind: output, shape index: {1}]  }
   0x1   :  { %4754 = sst [smem:[#allocation23_spill]] %s4744_s2 }
   0x2   :  { %4755 = sst [smem:[#allocation24_spill]] %s4745_s3 }
   0x3   :  { %4756 = sst [smem:[#allocation25_spill]] %s4746_s4 }
   0x4   :  { %4757 = sst [smem:[#allocation26_spill]] %s4747_s5 }
   0x5   :  { %13 = vsyncpa [#allocation3], 0 }
   0x6   :  { %15 = vsyncpa [#allocation3 + $0x1], 0 }
   0x7   :  { %16 = vsyncpa [#allocation6], 0 }
   0x8   :  { %18 = vsyncpa [#allocation6 + $0x1], 0 }
   0x9   :  { %19 = vsyncpa [#allocation9], 0 }
   0xa   :  { %20 = vsyncpa [#allocation12], 0 }
   0xb   :  { %21 = vsyncpa [#allocation4], 0 }
   0xc   :  { %23 = vsyncpa [#allocation4 + $0x1], 0 }
   0xd   :  { %24 = vsyncpa [#allocation15], 0 }
   0xe   :  { %26 = vsyncpa [#allocation15 + $0x1], 0  ;;  %s4275_s24 = smov 0   ;;  %s4277_s25 = smov 0  }
   0xf   :  { %s4279_s26 = smov 0   ;;  %s4281_s27 = smov 0  }
  0x10 LB: > { %s4219_s28 = smov [#allocation7]   ;;  %s4296_s30 = sadd.s32 4294967295, %s4217_s27   ;;  %s4217_s27 = sphi %s4281_s27, %s4785_s27   ;;  %s4213_s26 = sphi %s4279_s26, %s4784_s26   ;;  %s4209_s25 = sphi %s4277_s25, %s4783_s25   ;;  %s4205_s24 = sphi %s4275_s24, %s4782_s24  }
  0x11   : > { %s237_s29 = sshll.u32 %s4219_s28, 4  ;;  %p2918_p0 = scmp.ge.s32.totalorder %s4217_s27, 1  ;;  %s4301_s29 = int_to_ptr.vmem [resolvable:$true] %s237_s29 }
  0x12   : > { %p4750_p1 = scmp.eq.s32.totalorder %s4296_s30, 0  ;;  %p225_p2 = scmp.lt.s32.totalorder %s4217_s27, 3 }
  0x13   : > { %s4220_s9 = smov [#allocation8]   ;;  %s4221_s12 = smov [#allocation10]  }
  0x14   : > { %p4303_p3 = pnand %p2918_p0, %p225_p2  ;;  %s250_s10 = sshll.u32 %s4220_s9, 4  ;;  %s4316_s10 = int_to_ptr.vmem [resolvable:$true] %s250_s10 }
  0x15   : > { %s4318_s13 = sshll.u32 %s4221_s12, 4  ;;  %s4760_s2 = sld [smem:[#allocation23_spill]]  ;;  %s265_s13 = int_to_ptr.vmem [resolvable:$true] %s4318_s13 }
  0x16   : > { %s4758_s8 = scalar_select %p4303_p3, 1, 0 }
  0x17   : > { %p3830_p5 = pneg %p4303_p3 }
  0x19   : > { %p4312_p6 = pnand %p3830_p5, %p4750_p1 }
  0x1b   : > { %s3931_s16 = scalar_lea.hbm %s4760_s2, 32768  ;;  %p4328_p8 = pneg %p4312_p6 }
  0x1c   : > { %p3932_p7 = scmp.ne.s32.totalorder %s4760_s2, %s3931_s16  ;;  %p3938_p11 = scmp.lt.u32.totalorder %s3931_s16, %s4760_s2 }
  0x1e   : > { %p3934_p9 = pnand %p4328_p8, %p3932_p7 }
  0x20   : > { %p3935_p10 = pneg %p3934_p9 }
  0x22   : > { %p3940_p12 = pnand %p3938_p11, %p3935_p10 }
  0x24   : > { %3943 = shalt.err (!%p3940_p12)
}
  0x25   : > { %s3944_s22 = scalar_lea.vmem %s4301_s29, 32768  ;;  %p3952_p5 = scmp.lt.s32.totalorder %s4301_s29, %s4301_s29 }
  0x26   : > { %p3945_p13 = scmp.ne.s32.totalorder %s4301_s29, %s3944_s22  ;;  %p3953_p4 = scmp.lt.s32.totalorder %s3944_s22, %s3944_s22 }
  0x28   : > { %p3947_p0 = pnand %p3945_p13, %p4328_p8  ;;  %p3954_p7 = por %p3953_p4, %p3952_p5 }
  0x2a   : > { %p3948_p2 = pneg %p3947_p0 }
  0x2c   : > { %p3955_p9 = pnand %p3954_p7, %p3948_p2 }
  0x2e   : > { %3958 = shalt.err (!%p3955_p9)
}
  0x2f   : > { %s4222_s23 = smov 512   ;;  %s4223_s28 = smov 32  }
  0x30   : > { %3833 = dma.hbm_to_vmem [thread:$0]  (!%p4312_p6), %s4760_s2, 32768, %s4301_s29, [#allocation6], %s4222_s23, %s4222_s23, %s4223_s28  }
  0x31   : > { %s4762_s3 = sld [smem:[#allocation24_spill]] }
  0x37   : > { %s3959_s16 = scalar_lea.hbm %s4762_s3, 65536 }
  0x38   : > { %p3960_p4 = scmp.ne.s32.totalorder %s4762_s3, %s3959_s16  ;;  %p3966_p12 = scmp.lt.u32.totalorder %s3959_s16, %s4762_s3 }
  0x3a   : > { %p3962_p10 = pnand %p3960_p4, %p4328_p8 }
  0x3c   : > { %p3963_p11 = pneg %p3962_p10 }
  0x3e   : > { %p3968_p13 = pnand %p3966_p12, %p3963_p11 }
  0x40   : > { %3971 = shalt.err (!%p3968_p13)
}
  0x41   : > { %s3972_s29 = scalar_lea.vmem %s4316_s10, 65536  ;;  %p3980_p7 = scmp.lt.s32.totalorder %s4316_s10, %s4316_s10 }
  0x42   : > { %p3973_p0 = scmp.ne.s32.totalorder %s4316_s10, %s3972_s29  ;;  %p3981_p9 = scmp.lt.s32.totalorder %s3972_s29, %s3972_s29 }
  0x44   : > { %p3975_p2 = pnand %p3973_p0, %p4328_p8  ;;  %p3982_p4 = por %p3981_p9, %p3980_p7 }
  0x46   : > { %p3976_p5 = pneg %p3975_p2 }
  0x48   : > { %p3983_p10 = pnand %p3982_p4, %p3976_p5 }
  0x4a   : > { %3986 = shalt.err (!%p3983_p10)
}
  0x4b   : > { %s4224_s22 = smov 1024   ;;  %s4225_s23 = smov 64  }
  0x4c   : > { %3836 = dma.hbm_to_vmem [thread:$0]  (!%p4312_p6), %s4762_s3, 65536, %s4316_s10, [#allocation9], %s4224_s22, %s4224_s22, %s4225_s23  }
  0x4d   : > { %s4763_s4 = sld [smem:[#allocation25_spill]] }
  0x53   : > { %s3987_s15 = scalar_lea.hbm %s4763_s4, 64 }
  0x54   : > { %p3988_p11 = scmp.ne.s32.totalorder %s4763_s4, %s3987_s15  ;;  %p3994_p0 = scmp.lt.u32.totalorder %s3987_s15, %s4763_s4 }
  0x56   : > { %p3990_p12 = pnand %p3988_p11, %p4328_p8 }
  0x58   : > { %p3991_p13 = pneg %p3990_p12 }
  0x5a   : > { %p3996_p2 = pnand %p3994_p0, %p3991_p13 }
  0x5c   : > { %3999 = shalt.err (!%p3996_p2)
}
  0x5d   : > { %s4000_s21 = scalar_lea.vmem %s265_s13, 64  ;;  %p4008_p4 = scmp.lt.s32.totalorder %s265_s13, %s265_s13 }
  0x5e   : > { %p4001_p5 = scmp.ne.s32.totalorder %s265_s13, %s4000_s21  ;;  %p4009_p10 = scmp.lt.s32.totalorder %s4000_s21, %s4000_s21 }
  0x60   : > { %p4003_p7 = pnand %p4001_p5, %p4328_p8  ;;  %p4010_p1 = por %p4009_p10, %p4008_p4 }
  0x62   : > { %p4004_p9 = pneg %p4003_p7 }
  0x64   : > { %p4011_p3 = pnand %p4010_p1, %p4004_p9 }
  0x66   : > { %4014 = shalt.err (!%p4011_p3)
}
  0x67   : > { %3839 = dma.hbm_to_vmem [thread:$0]  (!%p4312_p6), %s4763_s4, 64, %s265_s13, [#allocation9]  }
  0x68   : > { %s4226_s22 = smov [#allocation11]   ;;  %s4764_s5 = sld [smem:[#allocation26_spill]] }
  0x69   : > { %s275_s23 = sshll.u32 %s4226_s22, 4  ;;  %s276_s23 = int_to_ptr.vmem [resolvable:$true] %s275_s23 }
  0x6e   : > { %s4015_s12 = scalar_lea.hbm %s4764_s5, 128 }
  0x6f   : > { %p4016_p11 = scmp.ne.s32.totalorder %s4764_s5, %s4015_s12  ;;  %p4022_p12 = scmp.lt.u32.totalorder %s4015_s12, %s4764_s5 }
  0x71   : > { %p4018_p1 = pnand %p4016_p11, %p4328_p8 }
  0x73   : > { %p4019_p3 = pneg %p4018_p1 }
  0x75   : > { %p4024_p13 = pnand %p4022_p12, %p4019_p3 }
  0x77   : > { %4027 = shalt.err (!%p4024_p13)
}
  0x78   : > { %s4028_s13 = scalar_lea.vmem %s276_s23, 128  ;;  %p4036_p7 = scmp.lt.s32.totalorder %s276_s23, %s276_s23 }
  0x79   : > { %p4029_p0 = scmp.ne.s32.totalorder %s276_s23, %s4028_s13  ;;  %p4037_p9 = scmp.lt.s32.totalorder %s4028_s13, %s4028_s13 }
  0x7b   : > { %p4031_p2 = pnand %p4029_p0, %p4328_p8  ;;  %p4038_p4 = por %p4037_p9, %p4036_p7 }
  0x7d   : > { %p4032_p5 = pneg %p4031_p2 }
  0x7f   : > { %p4039_p10 = pnand %p4038_p4, %p4032_p5 }
  0x81   : > { %4042 = shalt.err (!%p4039_p10)
}
  0x82   : > { %3842 = dma.hbm_to_vmem [thread:$0]  (!%p4312_p6), %s4764_s5, 128, %s276_s23, [#allocation12]  }
  0x83   : > { %s2917_s19 = sadd.s32 4294967294, %s4217_s27   ;;  %s4411_s11 = sadd.s32 1, %s4217_s27  }
  0x84   : > { %s36_s21 = ssub.s32 %s4217_s27, %s4411_s11  ;;  %s39_s10 = sadd.s32 1, %s4213_s26 }
  0x85   : > { %p37_p8 = scmp.eq.s32.totalorder %s36_s21, 0  ;;  %p46_p11 = scmp.ne.s32.totalorder %s4213_s26, %s4209_s25 }
  0x86   : > { %p47_p1 = scmp.eq.s32.totalorder %s4217_s27, 0  ;;  %p52_p3 = scmp.ne.s32.totalorder %s4209_s25, %s4205_s24 }
  0x87   : > { %s4422_s29 = scalar_select %p37_p8, %s4213_s26, %s39_s10  }
  0x88   : > { %p4424_p12 = por %p47_p1, %p46_p11  ;;  %p4766_p13 = scmp.eq.s32.totalorder %s4296_s30, 0 }
  0x89   : > { %p186_p0 = scmp.eq.s32.totalorder %s4296_s30, 1  ;;  %p192_p2 = scmp.eq.s32.totalorder %s2917_s19, 1 }
  0x8a   : > { %p4430_p6 = por %p4766_p13, %p52_p3  ;;  %p3861_p5 = scmp.lt.s32.totalorder %s4217_s27, 2 }
  0x8b   : > { %s286_s28 = sand.u32 1, %s4213_s26   ;;  %p4437_p7 = por %p186_p0, %p46_p11 }
  0x8c   : > { %s4767_s23 = scalar_select %p4430_p6, 1, 0 }
  0x8d   : > { %s4768_s9 = scalar_select %p4437_p7, 1, 0 }
  0x8e   : > { %p4441_p9 = por %p192_p2, %p52_p3  ;;  %s4445_s14 = sshll.u32 %s286_s28, 5 }
  0x8f   : > { %s2954_s15 = sshll.u32 %s4217_s27, 9  ;;  %s290_s18 = scalar_lea.vmem [#allocation2], %s4445_s14 }
  0x90   : > { %s4769_s12 = scalar_select %p4441_p9, 1, 0 }
  0x91   : > { %s4451_s13 = scalar_lea.hbm %s4742_s0, %s2954_s15  ;;  %s298_s20 = sshll.u32 %s290_s18, 4  ;;  %s4454_s20 = int_to_ptr.vmem [resolvable:$true] %s298_s20 }
  0x92   : > { %p4458_p4 = pnand %p3861_p5, %p4424_p12  ;;  %s4465_s16 = scalar_lea.hbm %s4743_s1, %s2954_s15 }
  0x93   : > { %s305_s17 = sand.u32 1, %s4217_s27   ;;  %s287_s2 = scalar_lea.sflag [#allocation3], %s286_s28 }
  0x94   : > { %s4043_s3 = scalar_lea.hbm %s4451_s13, 512  ;;  %p4045_p8 = pneg %p4458_p4 }
  0x95   : > { %p4044_p10 = scmp.ne.s32.totalorder %s4451_s13, %s4043_s3  ;;  %s4048_s4 = scalar_lea.hbm %s4742_s0, 1024 }
  0x96   : > { %p4049_p3 = scmp.lt.u32.totalorder %s4451_s13, %s4742_s0  ;;  %p4050_p12 = scmp.lt.u32.totalorder %s4048_s4, %s4043_s3 }
  0x97   : > { %p4046_p11 = pnand %p4045_p8, %p4044_p10  ;;  %p4052_p0 = scmp.lt.u32.totalorder %s4043_s3, %s4451_s13 }
  0x98   : > { %p4051_p13 = por %p4050_p12, %p4049_p3 }
  0x99   : > { %p4047_p1 = pneg %p4046_p11 }
  0x9a   : > { %p4053_p2 = por %p4052_p0, %p4051_p13 }
  0x9c   : > { %p4054_p5 = pnand %p4053_p2, %p4047_p1 }
  0x9e   : > { %4057 = shalt.err (!%p4054_p5)
}
  0x9f   : > { %s4058_s28 = scalar_lea.vmem %s4454_s20, 512  ;;  %s4227_s15 = smov [#allocation2]  }
  0xa0   : > { %p4059_p10 = scmp.ne.s32.totalorder %s4454_s20, %s4058_s28  ;;  %s4063_s10 = sshll.u32 %s4227_s15, 4  ;;  %s4064_s10 = int_to_ptr.vmem [resolvable:$false] %s4063_s10 }
  0xa1   : > { %s4065_s5 = scalar_lea.vmem %s4064_s10, 1024  ;;  %p4066_p7 = scmp.lt.s32.totalorder %s4454_s20, %s4064_s10 }
  0xa2   : > { %p4061_p11 = pnand %p4059_p10, %p4045_p8  ;;  %p4067_p3 = scmp.lt.s32.totalorder %s4065_s5, %s4058_s28 }
  0xa4   : > { %p4062_p9 = pneg %p4061_p11  ;;  %p4068_p12 = por %p4067_p3, %p4066_p7 }
  0xa6   : > { %p4069_p13 = pnand %p4068_p12, %p4062_p9 }
  0xa8   : > { %4072 = shalt.err (!%p4069_p13)
}
  0xa9   : > { %3846 = dma.hbm_to_vmem [thread:$0]  (!%p4458_p4), %s4451_s13, 512, %s4454_s20, %s287_s2  }
  0xaa   : > { %s309_s3 = scalar_lea.vmem [#allocation5], %s4445_s14  ;;  %s306_s22 = scalar_lea.sflag [#allocation6], %s305_s17 }
  0xab   : > { %s317_s4 = sshll.u32 %s309_s3, 4  ;;  %s4073_s18 = scalar_lea.hbm %s4465_s16, 512  ;;  %s318_s4 = int_to_ptr.vmem [resolvable:$true] %s317_s4 }
  0xac   : > { %p4074_p7 = scmp.ne.s32.totalorder %s4465_s16, %s4073_s18  ;;  %s4078_s15 = scalar_lea.hbm %s4743_s1, 1024 }
  0xad   : > { %p4079_p0 = scmp.lt.u32.totalorder %s4465_s16, %s4743_s1  ;;  %p4080_p2 = scmp.lt.u32.totalorder %s4078_s15, %s4073_s18 }
  0xae   : > { %p4076_p9 = pnand %p4074_p7, %p4045_p8  ;;  %p4082_p10 = scmp.lt.u32.totalorder %s4073_s18, %s4465_s16 }
  0xaf   : > { %p4081_p5 = por %p4080_p2, %p4079_p0 }
  0xb0   : > { %p4077_p1 = pneg %p4076_p9 }
  0xb1   : > { %p4083_p11 = por %p4082_p10, %p4081_p5 }
  0xb3   : > { %p4084_p3 = pnand %p4083_p11, %p4077_p1 }
  0xb5   : > { %4087 = shalt.err (!%p4084_p3)
}
  0xb6   : > { %s4088_s2 = scalar_lea.vmem %s318_s4, 512  ;;  %s4228_s14 = smov [#allocation5]  }
  0xb7   : > { %p4089_p12 = scmp.ne.s32.totalorder %s318_s4, %s4088_s2  ;;  %s4093_s13 = sshll.u32 %s4228_s14, 4  ;;  %s4094_s13 = int_to_ptr.vmem [resolvable:$false] %s4093_s13 }
  0xb8   : > { %s4095_s20 = scalar_lea.vmem %s4094_s13, 1024  ;;  %p4096_p9 = scmp.lt.s32.totalorder %s318_s4, %s4094_s13 }
  0xb9   : > { %p4091_p13 = pnand %p4089_p12, %p4045_p8  ;;  %p4097_p6 = scmp.lt.s32.totalorder %s4095_s20, %s4088_s2 }
  0xbb   : > { %p4092_p7 = pneg %p4091_p13  ;;  %p4098_p0 = por %p4097_p6, %p4096_p9 }
  0xbd   : > { %p4099_p2 = pnand %p4098_p0, %p4092_p7 }
  0xbf   : > { %4102 = shalt.err (!%p4099_p2)
}
  0xc0   : > { %3849 = dma.hbm_to_vmem [thread:$0]  (!%p4458_p4), %s4465_s16, 512, %s318_s4, %s306_s22  }
  0xc1   : > { %p4771_p1 = scmp.ne.s32.totalorder %s4758_s8, 0 }
  0xc2   : > { %s4518_s17 = sand.u32 (!%p4771_p1), 1, %s4209_s25   ;;  %p4772_p6 = scmp.ne.s32.totalorder (!%p4771_p1), %s4767_s23, 0 }
  0xc3   : > { %326 = sbr.rel (%p4771_p1) target bundleno = 1456 (0x5b0), region = 44  ;;  %s4521_s3 = sshll.u32 (!%p4771_p1), %s4518_s17, 5 }
  0xc4   : > { %s329_s18 = scalar_lea.sflag (!%p4771_p1), [#allocation3], %s4518_s17  ;;  %s4525_s21 = scalar_lea.vmem (!%p4771_p1), [#allocation2], %s4521_s3 }
  0xca   : > { %4176 = dma.done.wait (%p4772_p6), %s329_s18, 512  }
  0xcb   : > { %4178 = vsyncadd (%p4772_p6), %s329_s18, 4294966784  ;;  %s337_s8 = sand.u32 1, %s4296_s30   ;;  %s4533_s16 = scalar_lea.vmem [#allocation5], %s4521_s3 }
  0xcc   : > { %s338_s19 = scalar_lea.sflag [#allocation6], %s337_s8 }
  0xcd   : > { %4180 = dma.done.wait (%p4772_p6), %s338_s19, 512  }
  0xce   : > { %4182 = vsyncadd (%p4772_p6), %s338_s19, 4294966784  ;;  %p4773_p4 = scmp.eq.s32.totalorder %s4296_s30, 0 }
  0xd0   : > { %4184 = dma.done.wait (%p4773_p4), [#allocation6], 32768   ;;  %p4774_p8 = pmov %p4773_p4 }
  0xd1   : > { %p4775_p5 = pmov %p4773_p4 }
  0xd2   : > { %4186 = vsyncadd (%p4774_p8), [#allocation6], 4294934528 }
  0xd3   : > { %4188 = dma.done.wait (%p4775_p5), [#allocation9], 65600   ;;  %p4776_p10 = pmov %p4773_p4 }
  0xd4   : > { %p4777_p11 = pmov %p4773_p4 }
  0xd5   : > { %4190 = vsyncadd (%p4776_p10), [#allocation9], 4294901696 }
  0xd6   : > { %4192 = dma.done.wait (%p4777_p11), [#allocation12], 128   ;;  %p4778_p3 = pmov %p4773_p4 }
  0xd7   : > { %v403_v0 = vld [vmem:[#allocation7 + $0x8] sm:$0xff]  ;;  %v405_v2 = vld [vmem:[#allocation7 + $0x18] sm:$0xff]  ;;  %v402_v5 = vld [vmem:[#allocation7] sm:$0xff]  ;;  %vm4230_vm0 = vmmov 0   ;;  %vm2160_vm1 = vcmask 64512   ;;  %s4634_s23 = scalar_lea.vmem [#allocation14], %s4521_s3 }
  0xd8   : > { %4194 = vsyncadd (%p4778_p3), [#allocation12], 4294967168  ;;  %v407_v1 = vld [vmem:[#allocation7 + $0x28] sm:$0xff]  ;;  %v409_v4 = vld [vmem:[#allocation7 + $0x38] sm:$0xff]  ;;  %s2956_s4 = sshll.u32 %s4296_s30, 9  ;;  %s2751_s10 = sshll.u32 %s4634_s23, 4  ;;  %s4666_s10 = int_to_ptr.vmem [resolvable:$true] %s2751_s10 }
  0xd9   : > { %v3014_v3 = vpack.c.bf16 %v407_v1, %v403_v0  ;;  %v406_v6 = vld [vmem:[#allocation7 + $0x20] sm:$0xff]  ;;  %v3142_v7 = vpack.c.bf16 %v409_v4, %v405_v2  ;;  %v404_v9 = vld [vmem:[#allocation7 + $0x10] sm:$0xff]  ;;  %v411_v11 = vld [vmem:[#allocation7 + $0x48] sm:$0xff]  ;;  %s4663_s15 = scalar_lea.hbm %s4749_s7, %s2956_s4  ;;  %s2724_s5 = scalar_lea.sflag [#allocation15], %s4518_s17 }
  0xda   : > { %v3016_v8 = vpack.c.bf16 %v406_v6, %v402_v5  ;;  %v408_v10 = vld [vmem:[#allocation7 + $0x30] sm:$0xff]  ;;  %v415_v13 = vld [vmem:[#allocation7 + $0x68] sm:$0xff]  ;;  %v413_v14 = vld [vmem:[#allocation7 + $0x58] sm:$0xff]  ;;  %s4103_s2 = scalar_lea.vmem %s4666_s10, 512  ;;  %p4779_p13 = scmp.ne.s32.totalorder %s4768_s9, 0 }
  0xdb   : > { %3015 = vmatprep.subr.bf16.mxu0 %v3014_v3  ;;  %v3144_v12 = vpack.c.bf16 %v408_v10, %v404_v9  ;;  %v417_v15 = vld [vmem:[#allocation7 + $0x78] sm:$0xff]  ;;  %3143 = vmatprep.subr.bf16.mxu1 %v3142_v7  ;;  %v3018_v16 = vpack.c.bf16 %v415_v13, %v411_v11  ;;  %v410_v18 = vld [vmem:[#allocation7 + $0x40] sm:$0xff]  ;;  %v412_v20 = vld [vmem:[#allocation7 + $0x50] sm:$0xff]  ;;  %p4104_p12 = scmp.ne.s32.totalorder %s4666_s10, %s4103_s2  ;;  %s4231_s14 = smov [#allocation14]  }
  0xdc   : > { %3017 = vmatpush1.bf16.msra.mxu0 %v3016_v8  ;;  %v3146_v17 = vpack.c.bf16 %v417_v15, %v413_v14  ;;  %v414_v19 = vld [vmem:[#allocation7 + $0x60] sm:$0xff]  ;;  %v416_v22 = vld [vmem:[#allocation7 + $0x70] sm:$0xff]  ;;  %v419_v23 = vld [vmem:[#allocation7 + $0x88] sm:$0xff]  ;;  %s4107_s13 = sshll.u32 %s4231_s14, 4  ;;  %s4108_s13 = int_to_ptr.vmem [resolvable:$false] %s4107_s13 }
  0xdd   : > { %3145 = vmatpush1.bf16.msra.mxu1 %v3144_v12  ;;  %v3020_v21 = vpack.c.bf16 %v414_v19, %v410_v18  ;;  %v423_v24 = vld [vmem:[#allocation7 + $0xa8] sm:$0xff]  ;;  %3019 = vmatprep.subr.bf16.mxu0 %v3018_v16  ;;  %v3148_v25 = vpack.c.bf16 %v416_v22, %v412_v20  ;;  %v421_v27 = vld [vmem:[#allocation7 + $0x98] sm:$0xff]  ;;  %v418_v29 = vld [vmem:[#allocation7 + $0x80] sm:$0xff]  ;;  %p4105_p7 = pnand %p4104_p12, %p4779_p13  ;;  %s4109_s20 = scalar_lea.vmem %s4108_s13, 1024 }
  0xde   : > { %3147 = vmatprep.subr.bf16.mxu1 %v3146_v17  ;;  %v3022_v26 = vpack.c.bf16 %v423_v24, %v419_v23  ;;  %v425_v28 = vld [vmem:[#allocation7 + $0xb8] sm:$0xff]  ;;  %v422_v31 = vld [vmem:[#allocation7 + $0xa0] sm:$0xff]  ;;  %v420_v32 = vld [vmem:[#allocation7 + $0x90] sm:$0xff]  ;;  %p4110_p0 = scmp.lt.s32.totalorder %s4666_s10, %s4108_s13  ;;  %p4111_p2 = scmp.lt.s32.totalorder %s4109_s20, %s4103_s2 }
  0xdf   : > { %v3150_v30 = vpack.c.bf16 %v425_v28, %v421_v27  ;;  %v424_v33 = vld [vmem:[#allocation7 + $0xb0] sm:$0xff]  ;;  %v3024_v34 = vpack.c.bf16 %v422_v31, %v418_v29  ;;  %v427_v35 = vld [vmem:[#allocation7 + $0xc8] sm:$0xff]  ;;  %v429_v37 = vld [vmem:[#allocation7 + $0xd8] sm:$0xff]  ;;  %p4106_p9 = pneg %p4105_p7 }
  0xe0   : > { %3021 = vmatpush1.bf16.msra.mxu0 %v3020_v21  ;;  %v431_v36 = vld [vmem:[#allocation7 + $0xe8] sm:$0xff]  ;;  %v3152_v38 = vpack.c.bf16 %v424_v33, %v420_v32  ;;  %v433_v40 = vld [vmem:[#allocation7 + $0xf8] sm:$0xff]  ;;  %v426_v41 = vld [vmem:[#allocation7 + $0xc0] sm:$0xff]  ;;  %p4112_p1 = por %p4111_p2, %p4110_p0 }
  0xe1   : > { %3149 = vmatpush1.bf16.msra.mxu1 %v3148_v25  ;;  %3023 = vmatprep.subr.bf16.mxu0 %v3022_v26  ;;  %v3026_v39 = vpack.c.bf16 %v431_v36, %v427_v35  ;;  %v430_v42 = vld [vmem:[#allocation7 + $0xe0] sm:$0xff]  ;;  %v3154_v43 = vpack.c.bf16 %v433_v40, %v429_v37  ;;  %v428_v44 = vld [vmem:[#allocation7 + $0xd0] sm:$0xff]  ;;  %v435_v46 = vld [vmem:[#allocation7 + $0x108] sm:$0xff] }
  0xe2   : > { %3151 = vmatprep.subr.bf16.mxu1 %v3150_v30  ;;  %v432_v45 = vld [vmem:[#allocation7 + $0xf0] sm:$0xff]  ;;  %v439_v47 = vld [vmem:[#allocation7 + $0x128] sm:$0xff]  ;;  %v437_v48 = vld [vmem:[#allocation7 + $0x118] sm:$0xff]  ;;  %v3028_v50 = vpack.c.bf16 %v430_v42, %v426_v41  ;;  %p4113_p6 = pnand %p4112_p1, %p4106_p9 }
  0xe3   : > { %v441_v49 = vld [vmem:[#allocation7 + $0x138] sm:$0xff]  ;;  %v3156_v51 = vpack.c.bf16 %v432_v45, %v428_v44  ;;  %v3030_v52 = vpack.c.bf16 %v439_v47, %v435_v46  ;;  %v434_v53 = vld [vmem:[#allocation7 + $0x100] sm:$0xff]  ;;  %v436_v55 = vld [vmem:[#allocation7 + $0x110] sm:$0xff] }
  0xe4   : > { %3025 = vmatpush1.bf16.msra.mxu0 %v3024_v34  ;;  %v438_v54 = vld [vmem:[#allocation7 + $0x120] sm:$0xff]  ;;  %v3158_v56 = vpack.c.bf16 %v441_v49, %v437_v48  ;;  %v440_v57 = vld [vmem:[#allocation7 + $0x130] sm:$0xff]  ;;  %v443_v58 = vld [vmem:[#allocation7 + $0x148] sm:$0xff] }
  0xe5   : > { %3153 = vmatpush1.bf16.msra.mxu1 %v3152_v38  ;;  %3027 = vmatprep.subr.bf16.mxu0 %v3026_v39  ;;  %v447_v59 = vld [vmem:[#allocation7 + $0x168] sm:$0xff]  ;;  %v445_v60 = vld [vmem:[#allocation7 + $0x158] sm:$0xff]  ;;  %v3032_v62 = vpack.c.bf16 %v438_v54, %v434_v53  ;;  %v3160_v63 = vpack.c.bf16 %v440_v57, %v436_v55  ;;  %v442_v1 = vld [vmem:[#allocation7 + $0x140] sm:$0xff] }
  0xe6   : > { %3155 = vmatprep.subr.bf16.mxu1 %v3154_v43  ;;  %v449_v61 = vld [vmem:[#allocation7 + $0x178] sm:$0xff]  ;;  %v3034_v0 = vpack.c.bf16 %v447_v59, %v443_v58  ;;  %v446_v2 = vld [vmem:[#allocation7 + $0x160] sm:$0xff]  ;;  %v444_v3 = vld [vmem:[#allocation7 + $0x150] sm:$0xff] }
  0xe7   : > { %v3162_v4 = vpack.c.bf16 %v449_v61, %v445_v60  ;;  %v448_v5 = vld [vmem:[#allocation7 + $0x170] sm:$0xff]  ;;  %v451_v6 = vld [vmem:[#allocation7 + $0x188] sm:$0xff]  ;;  %v453_v8 = vld [vmem:[#allocation7 + $0x198] sm:$0xff]  ;;  %v3036_v10 = vpack.c.bf16 %v446_v2, %v442_v1 }
  0xe8   : > { %3029 = vmatpush1.bf16.msra.mxu0 %v3028_v50  ;;  %v455_v7 = vld [vmem:[#allocation7 + $0x1a8] sm:$0xff]  ;;  %v457_v9 = vld [vmem:[#allocation7 + $0x1b8] sm:$0xff]  ;;  %v3164_v11 = vpack.c.bf16 %v448_v5, %v444_v3  ;;  %v450_v13 = vld [vmem:[#allocation7 + $0x180] sm:$0xff] }
  0xe9   : > { %3157 = vmatpush1.bf16.msra.mxu1 %v3156_v51  ;;  %3031 = vmatprep.subr.bf16.mxu0 %v3030_v52  ;;  %v3038_v12 = vpack.c.bf16 %v455_v7, %v451_v6  ;;  %v454_v14 = vld [vmem:[#allocation7 + $0x1a0] sm:$0xff]  ;;  %v452_v15 = vld [vmem:[#allocation7 + $0x190] sm:$0xff]  ;;  %v3166_v16 = vpack.c.bf16 %v457_v9, %v453_v8  ;;  %v459_v18 = vld [vmem:[#allocation7 + $0x1c8] sm:$0xff] }
  0xea   : > { %3159 = vmatprep.subr.bf16.mxu1 %v3158_v56  ;;  %v456_v17 = vld [vmem:[#allocation7 + $0x1b0] sm:$0xff]  ;;  %v463_v19 = vld [vmem:[#allocation7 + $0x1e8] sm:$0xff]  ;;  %v461_v20 = vld [vmem:[#allocation7 + $0x1d8] sm:$0xff]  ;;  %v3040_v22 = vpack.c.bf16 %v454_v14, %v450_v13 }
  0xeb   : > { %v465_v21 = vld [vmem:[#allocation7 + $0x1f8] sm:$0xff]  ;;  %v3168_v23 = vpack.c.bf16 %v456_v17, %v452_v15  ;;  %v3042_v24 = vpack.c.bf16 %v463_v19, %v459_v18  ;;  %v458_v25 = vld [vmem:[#allocation7 + $0x1c0] sm:$0xff]  ;;  %v460_v27 = vld [vmem:[#allocation7 + $0x1d0] sm:$0xff] }
  0xec   : > { %3033 = vmatpush1.bf16.msra.mxu0 %v3032_v62  ;;  %v462_v26 = vld [vmem:[#allocation7 + $0x1e0] sm:$0xff]  ;;  %v3170_v28 = vpack.c.bf16 %v465_v21, %v461_v20  ;;  %v464_v29 = vld [vmem:[#allocation7 + $0x1f0] sm:$0xff]  ;;  %v467_v30 = vld [vmem:[#allocation7 + $0x208] sm:$0xff] }
  0xed   : > { %3161 = vmatpush1.bf16.msra.mxu1 %v3160_v63  ;;  %3035 = vmatprep.subr.bf16.mxu0 %v3034_v0  ;;  %v471_v31 = vld [vmem:[#allocation7 + $0x228] sm:$0xff]  ;;  %v469_v32 = vld [vmem:[#allocation7 + $0x218] sm:$0xff]  ;;  %v3044_v34 = vpack.c.bf16 %v462_v26, %v458_v25  ;;  %v3172_v35 = vpack.c.bf16 %v464_v29, %v460_v27  ;;  %v466_v37 = vld [vmem:[#allocation7 + $0x200] sm:$0xff] }
  0xee   : > { %3163 = vmatprep.subr.bf16.mxu1 %v3162_v4  ;;  %v473_v33 = vld [vmem:[#allocation7 + $0x238] sm:$0xff]  ;;  %v3046_v36 = vpack.c.bf16 %v471_v31, %v467_v30  ;;  %v470_v38 = vld [vmem:[#allocation7 + $0x220] sm:$0xff]  ;;  %v468_v39 = vld [vmem:[#allocation7 + $0x210] sm:$0xff] }
  0xef   : > { %v3174_v40 = vpack.c.bf16 %v473_v33, %v469_v32  ;;  %v472_v41 = vld [vmem:[#allocation7 + $0x230] sm:$0xff]  ;;  %v475_v42 = vld [vmem:[#allocation7 + $0x248] sm:$0xff]  ;;  %v477_v44 = vld [vmem:[#allocation7 + $0x258] sm:$0xff]  ;;  %v3048_v46 = vpack.c.bf16 %v470_v38, %v466_v37 }
  0xf0   : > { %3037 = vmatpush1.bf16.msra.mxu0 %v3036_v10  ;;  %v479_v43 = vld [vmem:[#allocation7 + $0x268] sm:$0xff]  ;;  %v481_v45 = vld [vmem:[#allocation7 + $0x278] sm:$0xff]  ;;  %v3176_v47 = vpack.c.bf16 %v472_v41, %v468_v39  ;;  %v474_v49 = vld [vmem:[#allocation7 + $0x240] sm:$0xff] }
  0xf1   : > { %3165 = vmatpush1.bf16.msra.mxu1 %v3164_v11  ;;  %3039 = vmatprep.subr.bf16.mxu0 %v3038_v12  ;;  %v3050_v48 = vpack.c.bf16 %v479_v43, %v475_v42  ;;  %v478_v50 = vld [vmem:[#allocation7 + $0x260] sm:$0xff]  ;;  %v476_v51 = vld [vmem:[#allocation7 + $0x250] sm:$0xff]  ;;  %v3178_v52 = vpack.c.bf16 %v481_v45, %v477_v44  ;;  %v483_v54 = vld [vmem:[#allocation7 + $0x288] sm:$0xff] }
  0xf2   : > { %3167 = vmatprep.subr.bf16.mxu1 %v3166_v16  ;;  %v480_v53 = vld [vmem:[#allocation7 + $0x270] sm:$0xff]  ;;  %v487_v55 = vld [vmem:[#allocation7 + $0x2a8] sm:$0xff]  ;;  %v485_v56 = vld [vmem:[#allocation7 + $0x298] sm:$0xff]  ;;  %v3052_v58 = vpack.c.bf16 %v478_v50, %v474_v49 }
  0xf3   : > { %v489_v57 = vld [vmem:[#allocation7 + $0x2b8] sm:$0xff]  ;;  %v3180_v59 = vpack.c.bf16 %v480_v53, %v476_v51  ;;  %v3054_v60 = vpack.c.bf16 %v487_v55, %v483_v54  ;;  %v482_v61 = vld [vmem:[#allocation7 + $0x280] sm:$0xff]  ;;  %v484_v63 = vld [vmem:[#allocation7 + $0x290] sm:$0xff] }
  0xf4   : > { %3041 = vmatpush1.bf16.msra.mxu0 %v3040_v22  ;;  %v486_v62 = vld [vmem:[#allocation7 + $0x2a0] sm:$0xff]  ;;  %v3182_v0 = vpack.c.bf16 %v489_v57, %v485_v56  ;;  %v488_v1 = vld [vmem:[#allocation7 + $0x2b0] sm:$0xff]  ;;  %v491_v2 = vld [vmem:[#allocation7 + $0x2c8] sm:$0xff] }
  0xf5   : > { %3169 = vmatpush1.bf16.msra.mxu1 %v3168_v23  ;;  %3043 = vmatprep.subr.bf16.mxu0 %v3042_v24  ;;  %v495_v3 = vld [vmem:[#allocation7 + $0x2e8] sm:$0xff]  ;;  %v493_v4 = vld [vmem:[#allocation7 + $0x2d8] sm:$0xff]  ;;  %v3056_v6 = vpack.c.bf16 %v486_v62, %v482_v61  ;;  %v490_v7 = vld [vmem:[#allocation7 + $0x2c0] sm:$0xff]  ;;  %v3184_v8 = vpack.c.bf16 %v488_v1, %v484_v63 }
  0xf6   : > { %3171 = vmatprep.subr.bf16.mxu1 %v3170_v28  ;;  %v497_v5 = vld [vmem:[#allocation7 + $0x2f8] sm:$0xff]  ;;  %v3058_v9 = vpack.c.bf16 %v495_v3, %v491_v2  ;;  %v494_v10 = vld [vmem:[#allocation7 + $0x2e0] sm:$0xff]  ;;  %v492_v11 = vld [vmem:[#allocation7 + $0x2d0] sm:$0xff] }
  0xf7   : > { %v496_v12 = vld [vmem:[#allocation7 + $0x2f0] sm:$0xff]  ;;  %v3186_v13 = vpack.c.bf16 %v497_v5, %v493_v4  ;;  %v499_v14 = vld [vmem:[#allocation7 + $0x308] sm:$0xff]  ;;  %v501_v17 = vld [vmem:[#allocation7 + $0x318] sm:$0xff]  ;;  %v3060_v19 = vpack.c.bf16 %v494_v10, %v490_v7 }
  0xf8   : > { %3045 = vmatpush1.bf16.msra.mxu0 %v3044_v34  ;;  %v503_v15 = vld [vmem:[#allocation7 + $0x328] sm:$0xff]  ;;  %v505_v18 = vld [vmem:[#allocation7 + $0x338] sm:$0xff]  ;;  %v3188_v20 = vpack.c.bf16 %v496_v12, %v492_v11  ;;  %v498_v22 = vld [vmem:[#allocation7 + $0x300] sm:$0xff] }
  0xf9   : > { %3173 = vmatpush1.bf16.msra.mxu1 %v3172_v35  ;;  %3047 = vmatprep.subr.bf16.mxu0 %v3046_v36  ;;  %v399_v16 = vld [vmem:[%s4525_s21 + $0x8] sm:$0xff]  ;;  %v3062_v21 = vpack.c.bf16 %v503_v15, %v499_v14  ;;  %v502_v23 = vld [vmem:[#allocation7 + $0x320] sm:$0xff]  ;;  %v500_v24 = vld [vmem:[#allocation7 + $0x310] sm:$0xff]  ;;  %v3190_v25 = vpack.c.bf16 %v505_v18, %v501_v17 }
  0xfa   : > { %3175 = vmatprep.subr.bf16.mxu1 %v3174_v40  ;;  %744 = vmatprep.mubr.f32.mxu0 %v399_v16  ;;  %v504_v26 = vld [vmem:[#allocation7 + $0x330] sm:$0xff]  ;;  %v507_v27 = vld [vmem:[#allocation7 + $0x348] sm:$0xff]  ;;  %v509_v29 = vld [vmem:[#allocation7 + $0x358] sm:$0xff]  ;;  %v3064_v31 = vpack.c.bf16 %v502_v23, %v498_v22 }
  0xfb   : > { %886 = vmatprep.mubr.f32.mxu1 %v399_v16  ;;  %v511_v28 = vld [vmem:[#allocation7 + $0x368] sm:$0xff]  ;;  %v513_v30 = vld [vmem:[#allocation7 + $0x378] sm:$0xff]  ;;  %v3192_v32 = vpack.c.bf16 %v504_v26, %v500_v24  ;;  %v506_v34 = vld [vmem:[#allocation7 + $0x340] sm:$0xff] }
  0xfc   : > { %3049 = vmatpush1.bf16.msra.mxu0 %v3048_v46  ;;  %v3066_v33 = vpack.c.bf16 %v511_v28, %v507_v27  ;;  %v510_v35 = vld [vmem:[#allocation7 + $0x360] sm:$0xff]  ;;  %v508_v36 = vld [vmem:[#allocation7 + $0x350] sm:$0xff]  ;;  %v3194_v37 = vpack.c.bf16 %v513_v30, %v509_v29  ;;  %v515_v39 = vld [vmem:[#allocation7 + $0x388] sm:$0xff] }
  0xfd   : > { %3177 = vmatpush1.bf16.msra.mxu1 %v3176_v47  ;;  %3051 = vmatprep.subr.bf16.mxu0 %v3050_v48  ;;  %v512_v38 = vld [vmem:[#allocation7 + $0x370] sm:$0xff]  ;;  %v519_v40 = vld [vmem:[#allocation7 + $0x3a8] sm:$0xff]  ;;  %v517_v41 = vld [vmem:[#allocation7 + $0x398] sm:$0xff]  ;;  %v3068_v43 = vpack.c.bf16 %v510_v35, %v506_v34 }
  0xfe   : > { %3179 = vmatprep.subr.bf16.mxu1 %v3178_v52  ;;  %v521_v42 = vld [vmem:[#allocation7 + $0x3b8] sm:$0xff]  ;;  %v3196_v44 = vpack.c.bf16 %v512_v38, %v508_v36  ;;  %v3070_v45 = vpack.c.bf16 %v519_v40, %v515_v39  ;;  %v514_v46 = vld [vmem:[#allocation7 + $0x380] sm:$0xff]  ;;  %v516_v48 = vld [vmem:[#allocation7 + $0x390] sm:$0xff] }
  0xff   : > { %v518_v47 = vld [vmem:[#allocation7 + $0x3a0] sm:$0xff]  ;;  %v3198_v49 = vpack.c.bf16 %v521_v42, %v517_v41  ;;  %v520_v50 = vld [vmem:[#allocation7 + $0x3b0] sm:$0xff]  ;;  %v523_v51 = vld [vmem:[#allocation7 + $0x3c8] sm:$0xff] }
 0x100   : > { %3053 = vmatpush1.bf16.msra.mxu0 %v3052_v58  ;;  %v527_v52 = vld [vmem:[#allocation7 + $0x3e8] sm:$0xff]  ;;  %v525_v53 = vld [vmem:[#allocation7 + $0x3d8] sm:$0xff]  ;;  %v3072_v55 = vpack.c.bf16 %v518_v47, %v514_v46  ;;  %v3200_v56 = vpack.c.bf16 %v520_v50, %v516_v48  ;;  %v522_v58 = vld [vmem:[#allocation7 + $0x3c0] sm:$0xff] }
 0x101   : > { %3181 = vmatpush1.bf16.msra.mxu1 %v3180_v59  ;;  %3055 = vmatprep.subr.bf16.mxu0 %v3054_v60  ;;  %v529_v54 = vld [vmem:[#allocation7 + $0x3f8] sm:$0xff]  ;;  %v3074_v57 = vpack.c.bf16 %v527_v52, %v523_v51  ;;  %v526_v59 = vld [vmem:[#allocation7 + $0x3e0] sm:$0xff]  ;;  %v524_v60 = vld [vmem:[#allocation7 + $0x3d0] sm:$0xff] }
 0x102   : > { %3183 = vmatprep.subr.bf16.mxu1 %v3182_v0  ;;  %v3202_v61 = vpack.c.bf16 %v529_v54, %v525_v53  ;;  %v528_v62 = vld [vmem:[#allocation7 + $0x3f0] sm:$0xff]  ;;  %v531_v63 = vld [vmem:[#allocation7 + $0x408] sm:$0xff]  ;;  %v533_v1 = vld [vmem:[#allocation7 + $0x418] sm:$0xff]  ;;  %v3076_v3 = vpack.c.bf16 %v526_v59, %v522_v58 }
 0x103   : > { %v535_v0 = vld [vmem:[#allocation7 + $0x428] sm:$0xff]  ;;  %v537_v2 = vld [vmem:[#allocation7 + $0x438] sm:$0xff]  ;;  %v3204_v4 = vpack.c.bf16 %v528_v62, %v524_v60  ;;  %v534_v7 = vld [vmem:[#allocation7 + $0x420] sm:$0xff] }
 0x104   : > { %3057 = vmatpush1.bf16.msra.mxu0 %v3056_v6  ;;  %v3078_v5 = vpack.c.bf16 %v535_v0, %v531_v63  ;;  %v530_v6 = vld [vmem:[#allocation7 + $0x400] sm:$0xff]  ;;  %v536_v10 = vld [vmem:[#allocation7 + $0x430] sm:$0xff]  ;;  %v539_v11 = vld [vmem:[#allocation7 + $0x448] sm:$0xff] }
 0x105   : > { %3185 = vmatpush1.bf16.msra.mxu1 %v3184_v8  ;;  %3059 = vmatprep.subr.bf16.mxu0 %v3058_v9  ;;  %v532_v8 = vld [vmem:[#allocation7 + $0x410] sm:$0xff]  ;;  %v3206_v9 = vpack.c.bf16 %v537_v2, %v533_v1  ;;  %v543_v12 = vld [vmem:[#allocation7 + $0x468] sm:$0xff]  ;;  %v545_v14 = vld [vmem:[#allocation7 + $0x478] sm:$0xff]  ;;  %v3080_v16 = vpack.c.bf16 %v534_v7, %v530_v6 }
 0x106   : > { %3187 = vmatprep.subr.bf16.mxu1 %v3186_v13  ;;  %v541_v13 = vld [vmem:[#allocation7 + $0x458] sm:$0xff]  ;;  %v398_v15 = vld [vmem:[%s4525_s21] sm:$0xff]  ;;  %v3208_v17 = vpack.c.bf16 %v536_v10, %v532_v8  ;;  %v3082_v18 = vpack.c.bf16 %v543_v12, %v539_v11  ;;  %v544_v23 = vld [vmem:[#allocation7 + $0x470] sm:$0xff] }
 0x107   : > { %v3210_v22 = vpack.c.bf16 %v545_v14, %v541_v13  ;;  %v547_v24 = vld [vmem:[#allocation7 + $0x488] sm:$0xff]  ;;  %v549_v26 = vld [vmem:[#allocation7 + $0x498] sm:$0xff]  ;;  %v552_v35 = vld [vmem:[#allocation7 + $0x4b0] sm:$0xff] }
 0x108   : > { %3061 = vmatpush1.bf16.msra.mxu0 %v3060_v19  ;;  %v538_v19 = vld [vmem:[#allocation7 + $0x440] sm:$0xff]  ;;  %v553_v27 = vld [vmem:[#allocation7 + $0x4b8] sm:$0xff]  ;;  %v555_v36 = vld [vmem:[#allocation7 + $0x4c8] sm:$0xff] }
 0x109   : > { %3189 = vmatpush1.bf16.msra.mxu1 %v3188_v20  ;;  %3063 = vmatprep.subr.bf16.mxu0 %v3062_v21  ;;  %v542_v20 = vld [vmem:[#allocation7 + $0x460] sm:$0xff]  ;;  %v540_v21 = vld [vmem:[#allocation7 + $0x450] sm:$0xff]  ;;  %v3214_v34 = vpack.c.bf16 %v553_v27, %v549_v26  ;;  %v557_v38 = vld [vmem:[#allocation7 + $0x4d8] sm:$0xff] }
 0x10a   : > { %3191 = vmatprep.subr.bf16.mxu1 %v3190_v25  ;;  %v551_v25 = vld [vmem:[#allocation7 + $0x4a8] sm:$0xff]  ;;  %v3084_v28 = vpack.c.bf16 %v542_v20, %v538_v19  ;;  %v3212_v29 = vpack.c.bf16 %v544_v23, %v540_v21  ;;  %v561_v39 = vld [vmem:[#allocation7 + $0x4f8] sm:$0xff]  ;;  %v560_v47 = vld [vmem:[#allocation7 + $0x4f0] sm:$0xff] }
 0x10b   : > { %v3086_v30 = vpack.c.bf16 %v551_v25, %v547_v24  ;;  %v3218_v46 = vpack.c.bf16 %v561_v39, %v557_v38  ;;  %v563_v48 = vld [vmem:[#allocation7 + $0x508] sm:$0xff]  ;;  %v565_v50 = vld [vmem:[#allocation7 + $0x518] sm:$0xff]  ;;  %v568_v59 = vld [vmem:[#allocation7 + $0x530] sm:$0xff] }
 0x10c   : > { %3065 = vmatpush1.bf16.msra.mxu0 %v3064_v31  ;;  %v546_v31 = vld [vmem:[#allocation7 + $0x480] sm:$0xff]  ;;  %v569_v51 = vld [vmem:[#allocation7 + $0x538] sm:$0xff]  ;;  %v571_v60 = vld [vmem:[#allocation7 + $0x548] sm:$0xff] }
 0x10d   : > { %3193 = vmatpush1.bf16.msra.mxu1 %v3192_v32  ;;  %3067 = vmatprep.subr.bf16.mxu0 %v3066_v33  ;;  %v550_v32 = vld [vmem:[#allocation7 + $0x4a0] sm:$0xff]  ;;  %v548_v33 = vld [vmem:[#allocation7 + $0x490] sm:$0xff]  ;;  %v3222_v58 = vpack.c.bf16 %v569_v51, %v565_v50  ;;  %v573_v62 = vld [vmem:[#allocation7 + $0x558] sm:$0xff] }
 0x10e   : > { %3195 = vmatprep.subr.bf16.mxu1 %v3194_v37  ;;  %v559_v37 = vld [vmem:[#allocation7 + $0x4e8] sm:$0xff]  ;;  %v3088_v40 = vpack.c.bf16 %v550_v32, %v546_v31  ;;  %v3216_v41 = vpack.c.bf16 %v552_v35, %v548_v33  ;;  %v577_v63 = vld [vmem:[#allocation7 + $0x578] sm:$0xff]  ;;  %v576_v7 = vld [vmem:[#allocation7 + $0x570] sm:$0xff] }
 0x10f   : > { %v3090_v42 = vpack.c.bf16 %v559_v37, %v555_v36  ;;  %v3226_v6 = vpack.c.bf16 %v577_v63, %v573_v62  ;;  %v579_v8 = vld [vmem:[#allocation7 + $0x588] sm:$0xff]  ;;  %v581_v10 = vld [vmem:[#allocation7 + $0x598] sm:$0xff]  ;;  %v578_v13 = vld [vmem:[#allocation7 + $0x580] sm:$0xff] }
 0x110   : > { %3069 = vmatpush1.bf16.msra.mxu0 %v3068_v43  ;;  %v554_v43 = vld [vmem:[#allocation7 + $0x4c0] sm:$0xff]  ;;  %v585_v11 = vld [vmem:[#allocation7 + $0x5b8] sm:$0xff]  ;;  %v587_v20 = vld [vmem:[#allocation7 + $0x5c8] sm:$0xff] }
 0x111   : > { %3197 = vmatpush1.bf16.msra.mxu1 %v3196_v44  ;;  %3071 = vmatprep.subr.bf16.mxu0 %v3070_v45  ;;  %v558_v44 = vld [vmem:[#allocation7 + $0x4e0] sm:$0xff]  ;;  %v556_v45 = vld [vmem:[#allocation7 + $0x4d0] sm:$0xff]  ;;  %v3230_v19 = vpack.c.bf16 %v585_v11, %v581_v10  ;;  %v591_v21 = vld [vmem:[#allocation7 + $0x5e8] sm:$0xff] }
 0x112   : > { %3199 = vmatprep.subr.bf16.mxu1 %v3198_v49  ;;  %v567_v49 = vld [vmem:[#allocation7 + $0x528] sm:$0xff]  ;;  %v3092_v52 = vpack.c.bf16 %v558_v44, %v554_v43  ;;  %v3220_v53 = vpack.c.bf16 %v560_v47, %v556_v45  ;;  %v589_v23 = vld [vmem:[#allocation7 + $0x5d8] sm:$0xff]  ;;  %v3106_v27 = vpack.c.bf16 %v591_v21, %v587_v20  ;;  %v592_v32 = vld [vmem:[#allocation7 + $0x5f0] sm:$0xff] }
 0x113   : > { %v3094_v54 = vpack.c.bf16 %v567_v49, %v563_v48  ;;  %v593_v24 = vld [vmem:[#allocation7 + $0x5f8] sm:$0xff]  ;;  %v595_v33 = vld [vmem:[#allocation7 + $0x608] sm:$0xff]  ;;  %v600_v44 = vld [vmem:[#allocation7 + $0x630] sm:$0xff] }
 0x114   : > { %3073 = vmatpush1.bf16.msra.mxu0 %v3072_v55  ;;  %v562_v55 = vld [vmem:[#allocation7 + $0x500] sm:$0xff]  ;;  %v3234_v31 = vpack.c.bf16 %v593_v24, %v589_v23  ;;  %v597_v35 = vld [vmem:[#allocation7 + $0x618] sm:$0xff]  ;;  %v603_v45 = vld [vmem:[#allocation7 + $0x648] sm:$0xff] }
 0x115   : > { %3201 = vmatpush1.bf16.msra.mxu1 %v3200_v56  ;;  %3075 = vmatprep.subr.bf16.mxu0 %v3074_v57  ;;  %v566_v56 = vld [vmem:[#allocation7 + $0x520] sm:$0xff]  ;;  %v564_v57 = vld [vmem:[#allocation7 + $0x510] sm:$0xff]  ;;  %v601_v36 = vld [vmem:[#allocation7 + $0x638] sm:$0xff] }
 0x116   : > { %3203 = vmatprep.subr.bf16.mxu1 %v3202_v61  ;;  %v575_v61 = vld [vmem:[#allocation7 + $0x568] sm:$0xff]  ;;  %v3096_v0 = vpack.c.bf16 %v566_v56, %v562_v55  ;;  %v3224_v1 = vpack.c.bf16 %v568_v59, %v564_v57  ;;  %v3238_v43 = vpack.c.bf16 %v601_v36, %v597_v35  ;;  %v605_v47 = vld [vmem:[#allocation7 + $0x658] sm:$0xff]  ;;  %v608_v56 = vld [vmem:[#allocation7 + $0x670] sm:$0xff] }
 0x117   : > { %v3098_v2 = vpack.c.bf16 %v575_v61, %v571_v60  ;;  %v609_v48 = vld [vmem:[#allocation7 + $0x678] sm:$0xff]  ;;  %v611_v57 = vld [vmem:[#allocation7 + $0x688] sm:$0xff]  ;;  %v626_v24 = vld [vmem:[#allocation7 + $0x700] sm:$0xff] }
 0x118   : > { %3077 = vmatpush1.bf16.msra.mxu0 %v3076_v3  ;;  %v570_v3 = vld [vmem:[#allocation7 + $0x540] sm:$0xff]  ;;  %v3242_v55 = vpack.c.bf16 %v609_v48, %v605_v47  ;;  %v613_v59 = vld [vmem:[#allocation7 + $0x698] sm:$0xff] }
 0x119   : > { %3205 = vmatpush1.bf16.msra.mxu1 %v3204_v4  ;;  %3079 = vmatprep.subr.bf16.mxu0 %v3078_v5  ;;  %v574_v4 = vld [vmem:[#allocation7 + $0x560] sm:$0xff]  ;;  %v572_v5 = vld [vmem:[#allocation7 + $0x550] sm:$0xff]  ;;  %v617_v60 = vld [vmem:[#allocation7 + $0x6b8] sm:$0xff] }
 0x11a   : > { %3207 = vmatprep.subr.bf16.mxu1 %v3206_v9  ;;  %v583_v9 = vld [vmem:[#allocation7 + $0x5a8] sm:$0xff]  ;;  %v3100_v12 = vpack.c.bf16 %v574_v4, %v570_v3  ;;  %v3228_v14 = vpack.c.bf16 %v576_v7, %v572_v5  ;;  %v3246_v3 = vpack.c.bf16 %v617_v60, %v613_v59  ;;  %v616_v4 = vld [vmem:[#allocation7 + $0x6b0] sm:$0xff]  ;;  %v621_v7 = vld [vmem:[#allocation7 + $0x6d8] sm:$0xff] }
 0x11b   : > { %745 = vmatmul.mubr.f32.vlgmr.msra.gmra.mrb[0].mxu0 %v398_v15  ;;  %v619_v5 = vld [vmem:[#allocation7 + $0x6c8] sm:$0xff]  ;;  %v633_v20 = vld [vmem:[#allocation7 + $0x738] sm:$0xff]  ;;  %v634_v36 = vld [vmem:[#allocation7 + $0x740] sm:$0xff] }
 0x11c   : > { %3081 = vmatpush1.bf16.msra.mxu0 %v3080_v16  ;;  %887 = vmatmul.mubr.f32.vlgmr.msra.gmra.mrb[0].mxu1 %v398_v15  ;;  %v3102_v15 = vpack.c.bf16 %v583_v9, %v579_v8  ;;  %v582_v16 = vld [vmem:[#allocation7 + $0x5a0] sm:$0xff]  ;;  %v625_v8 = vld [vmem:[#allocation7 + $0x6f8] sm:$0xff] }
 0x11d   : > { %3209 = vmatpush1.bf16.msra.mxu1 %v3208_v17  ;;  %3083 = vmatprep.subr.bf16.mxu0 %v3082_v18  ;;  %v580_v17 = vld [vmem:[#allocation7 + $0x590] sm:$0xff]  ;;  %v3104_v25 = vpack.c.bf16 %v582_v16, %v578_v13  ;;  %v622_v13 = vld [vmem:[#allocation7 + $0x6e0] sm:$0xff] }
 0x11e   : > { %3211 = vmatprep.subr.bf16.mxu1 %v3210_v22  ;;  %v584_v18 = vld [vmem:[#allocation7 + $0x5b0] sm:$0xff]  ;;  %v401_v22 = vld [vmem:[%s4525_s21 + $0x18] sm:$0xff]  ;;  %v642_v48 = vld [vmem:[#allocation7 + $0x780] sm:$0xff] }
 0x11f   : > { %815 = vmatprep.mubr.f32.mxu0 %v401_v22  ;;  %957 = vmatprep.mubr.f32.mxu1 %v401_v22  ;;  %v3232_v26 = vpack.c.bf16 %v584_v18, %v580_v17  ;;  %v624_v16 = vld [vmem:[#allocation7 + $0x6f0] sm:$0xff]  ;;  %v627_v17 = vld [vmem:[#allocation7 + $0x708] sm:$0xff]  ;;  %v650_v60 = vld [vmem:[#allocation7 + $0x7c0] sm:$0xff] }
 0x120   : > { %3085 = vmatpush1.bf16.msra.mxu0 %v3084_v28  ;;  %v586_v28 = vld [vmem:[#allocation7 + $0x5c0] sm:$0xff]  ;;  %v631_v18 = vld [vmem:[#allocation7 + $0x728] sm:$0xff] }
 0x121   : > { %3213 = vmatpush1.bf16.msra.mxu1 %v3212_v29  ;;  %3087 = vmatprep.subr.bf16.mxu0 %v3086_v30  ;;  %v590_v29 = vld [vmem:[#allocation7 + $0x5e0] sm:$0xff]  ;;  %v588_v30 = vld [vmem:[#allocation7 + $0x5d0] sm:$0xff]  ;;  %v3126_v23 = vpack.c.bf16 %v631_v18, %v627_v17 }
 0x122   : > { %3215 = vmatprep.subr.bf16.mxu1 %v3214_v34  ;;  %v599_v34 = vld [vmem:[#allocation7 + $0x628] sm:$0xff]  ;;  %v3108_v37 = vpack.c.bf16 %v590_v29, %v586_v28  ;;  %v3236_v38 = vpack.c.bf16 %v592_v32, %v588_v30  ;;  %v632_v28 = vld [vmem:[#allocation7 + $0x730] sm:$0xff]  ;;  %v641_v32 = vld [vmem:[#allocation7 + $0x778] sm:$0xff] }
 0x123   : > { %v3110_v39 = vpack.c.bf16 %v599_v34, %v595_v33  ;;  %v635_v29 = vld [vmem:[#allocation7 + $0x748] sm:$0xff]  ;;  %v400_v17 = vld [vmem:[%s4525_s21 + $0x10] sm:$0xff] }
 0x124   : > { %3089 = vmatpush1.bf16.msra.mxu0 %v3088_v40  ;;  %v594_v40 = vld [vmem:[#allocation7 + $0x600] sm:$0xff]  ;;  %v639_v30 = vld [vmem:[#allocation7 + $0x768] sm:$0xff] }
 0x125   : > { %3217 = vmatpush1.bf16.msra.mxu1 %v3216_v41  ;;  %3091 = vmatprep.subr.bf16.mxu0 %v3090_v42  ;;  %v598_v41 = vld [vmem:[#allocation7 + $0x620] sm:$0xff]  ;;  %v596_v42 = vld [vmem:[#allocation7 + $0x610] sm:$0xff]  ;;  %v3130_v35 = vpack.c.bf16 %v639_v30, %v635_v29  ;;  %v1011_v29 = vld [vmem:[#allocation8 + $0x158] sm:$0xff] }
 0x126   : > { %3219 = vmatprep.subr.bf16.mxu1 %v3218_v46  ;;  %v607_v46 = vld [vmem:[#allocation7 + $0x668] sm:$0xff]  ;;  %v3112_v49 = vpack.c.bf16 %v598_v41, %v594_v40  ;;  %v3240_v50 = vpack.c.bf16 %v600_v44, %v596_v42  ;;  %v640_v40 = vld [vmem:[#allocation7 + $0x770] sm:$0xff]  ;;  %v649_v44 = vld [vmem:[#allocation7 + $0x7b8] sm:$0xff] }
 0x127   : > { %v3114_v51 = vpack.c.bf16 %v607_v46, %v603_v45  ;;  %v643_v41 = vld [vmem:[#allocation7 + $0x788] sm:$0xff] }
 0x128   : > { %3093 = vmatpush1.bf16.msra.mxu0 %v3092_v52  ;;  %v602_v52 = vld [vmem:[#allocation7 + $0x640] sm:$0xff]  ;;  %v647_v42 = vld [vmem:[#allocation7 + $0x7a8] sm:$0xff] }
 0x129   : > { %3221 = vmatpush1.bf16.msra.mxu1 %v3220_v53  ;;  %3095 = vmatprep.subr.bf16.mxu0 %v3094_v54  ;;  %v606_v53 = vld [vmem:[#allocation7 + $0x660] sm:$0xff]  ;;  %v604_v54 = vld [vmem:[#allocation7 + $0x650] sm:$0xff]  ;;  %v3134_v47 = vpack.c.bf16 %v647_v42, %v643_v41  ;;  %v965_v30 = vld [vmem:[%s4533_s16 + $0x8] sm:$0xff] }
 0x12a   : > { %3223 = vmatprep.subr.bf16.mxu1 %v3222_v58  ;;  %v615_v58 = vld [vmem:[#allocation7 + $0x6a8] sm:$0xff]  ;;  %v3116_v61 = vpack.c.bf16 %v606_v53, %v602_v52  ;;  %v3244_v62 = vpack.c.bf16 %v608_v56, %v604_v54  ;;  %v648_v52 = vld [vmem:[#allocation7 + $0x7b0] sm:$0xff]  ;;  %v657_v56 = vld [vmem:[#allocation7 + $0x7f8] sm:$0xff] }
 0x12b   : > { %v3118_v63 = vpack.c.bf16 %v615_v58, %v611_v57  ;;  %v651_v53 = vld [vmem:[#allocation7 + $0x7c8] sm:$0xff]  ;;  %v1019_v41 = vld [vmem:[#allocation8 + $0x198] sm:$0xff] }
 0x12c   : > { %3097 = vmatpush1.bf16.msra.mxu0 %v3096_v0  ;;  %v610_v0 = vld [vmem:[#allocation7 + $0x680] sm:$0xff]  ;;  %v655_v54 = vld [vmem:[#allocation7 + $0x7e8] sm:$0xff]  ;;  %v1027_v42 = vld [vmem:[#allocation8 + $0x1d8] sm:$0xff] }
 0x12d   : > { %3225 = vmatpush1.bf16.msra.mxu1 %v3224_v1  ;;  %3099 = vmatprep.subr.bf16.mxu0 %v3098_v2  ;;  %v614_v1 = vld [vmem:[#allocation7 + $0x6a0] sm:$0xff]  ;;  %v612_v2 = vld [vmem:[#allocation7 + $0x690] sm:$0xff]  ;;  %v3138_v59 = vpack.c.bf16 %v655_v54, %v651_v53  ;;  %v1035_v53 = vld [vmem:[#allocation8 + $0x218] sm:$0xff] }
 0x12e   : > { %3227 = vmatprep.subr.bf16.mxu1 %v3226_v6  ;;  %v623_v6 = vld [vmem:[#allocation7 + $0x6e8] sm:$0xff]  ;;  %v3120_v9 = vpack.c.bf16 %v614_v1, %v610_v0  ;;  %v3248_v10 = vpack.c.bf16 %v616_v4, %v612_v2  ;;  %v656_v0 = vld [vmem:[#allocation7 + $0x7f0] sm:$0xff]  ;;  %v979_v4 = vld [vmem:[#allocation8 + $0x58] sm:$0xff] }
 0x12f   : > { %v3122_v11 = vpack.c.bf16 %v623_v6, %v619_v5  ;;  %v969_v1 = vld [vmem:[#allocation8 + $0x8] sm:$0xff]  ;;  %v1043_v54 = vld [vmem:[#allocation8 + $0x258] sm:$0xff] }
 0x130   : > { %3101 = vmatpush1.bf16.msra.mxu0 %v3100_v12  ;;  %v618_v12 = vld [vmem:[#allocation7 + $0x6c0] sm:$0xff]  ;;  %v977_v2 = vld [vmem:[#allocation8 + $0x48] sm:$0xff] }
 0x131   : > { %3229 = vmatpush1.bf16.msra.mxu1 %v3228_v14  ;;  %3103 = vmatprep.subr.bf16.mxu0 %v3102_v15  ;;  %v620_v14 = vld [vmem:[#allocation7 + $0x6d0] sm:$0xff]  ;;  %v3250_v15 = vpack.c.bf16 %v625_v8, %v621_v7  ;;  %v3124_v21 = vpack.c.bf16 %v622_v13, %v618_v12  ;;  %v3270_v7 = vpack.c.bf16 %v977_v2, %v969_v1  ;;  %v968_v8 = vld [vmem:[#allocation8] sm:$0xff]  ;;  %v985_v13 = vld [vmem:[#allocation8 + $0x88] sm:$0xff] }
 0x132   : > { %3231 = vmatprep.subr.bf16.mxu1 %v3230_v19  ;;  %v629_v19 = vld [vmem:[#allocation7 + $0x718] sm:$0xff]  ;;  %v3252_v22 = vpack.c.bf16 %v624_v16, %v620_v14  ;;  %v978_v12 = vld [vmem:[#allocation8 + $0x50] sm:$0xff]  ;;  %v993_v14 = vld [vmem:[#allocation8 + $0xc8] sm:$0xff] }
 0x133   : > { %v995_v16 = vld [vmem:[#allocation8 + $0xd8] sm:$0xff] }
 0x134   : > { %3105 = vmatpush1.bf16.msra.mxu0 %v3104_v25  ;;  %v630_v25 = vld [vmem:[#allocation7 + $0x720] sm:$0xff]  ;;  %v1051_v1 = vld [vmem:[#allocation8 + $0x298] sm:$0xff] }
 0x135   : > { %3233 = vmatpush1.bf16.msra.mxu1 %v3232_v26  ;;  %3107 = vmatprep.subr.bf16.mxu0 %v3106_v27  ;;  %v628_v26 = vld [vmem:[#allocation7 + $0x710] sm:$0xff]  ;;  %v3254_v27 = vpack.c.bf16 %v633_v20, %v629_v19  ;;  %v3128_v33 = vpack.c.bf16 %v630_v25, %v626_v24  ;;  %v3274_v20 = vpack.c.bf16 %v993_v14, %v985_v13  ;;  %v1059_v2 = vld [vmem:[#allocation8 + $0x2d8] sm:$0xff] }
 0x136   : > { %3235 = vmatprep.subr.bf16.mxu1 %v3234_v31  ;;  %v637_v31 = vld [vmem:[#allocation7 + $0x758] sm:$0xff]  ;;  %v3256_v34 = vpack.c.bf16 %v632_v28, %v628_v26  ;;  %v994_v25 = vld [vmem:[#allocation8 + $0xd0] sm:$0xff]  ;;  %v1001_v26 = vld [vmem:[#allocation8 + $0x108] sm:$0xff] }
 0x137   : > { %v1003_v28 = vld [vmem:[#allocation8 + $0x118] sm:$0xff] }
 0x138   : > { %3109 = vmatpush1.bf16.msra.mxu0 %v3108_v37  ;;  %v638_v37 = vld [vmem:[#allocation7 + $0x760] sm:$0xff]  ;;  %v1067_v13 = vld [vmem:[#allocation8 + $0x318] sm:$0xff] }
 0x139   : > { %3237 = vmatpush1.bf16.msra.mxu1 %v3236_v38  ;;  %3111 = vmatprep.subr.bf16.mxu0 %v3110_v39  ;;  %v636_v38 = vld [vmem:[#allocation7 + $0x750] sm:$0xff]  ;;  %v3258_v39 = vpack.c.bf16 %v641_v32, %v637_v31  ;;  %v3132_v45 = vpack.c.bf16 %v638_v37, %v634_v36  ;;  %v3406_v37 = vpack.c.bf16 %v1011_v29, %v1003_v28  ;;  %v1075_v14 = vld [vmem:[#allocation8 + $0x358] sm:$0xff] }
 0x13a   : > { %3239 = vmatprep.subr.bf16.mxu1 %v3238_v43  ;;  %v645_v43 = vld [vmem:[#allocation7 + $0x798] sm:$0xff]  ;;  %v3260_v46 = vpack.c.bf16 %v640_v40, %v636_v38  ;;  %v1002_v36 = vld [vmem:[#allocation8 + $0x110] sm:$0xff]  ;;  %v1025_v40 = vld [vmem:[#allocation8 + $0x1c8] sm:$0xff] }
 0x13b   : > { %v1010_v38 = vld [vmem:[#allocation8 + $0x150] sm:$0xff] }
 0x13c   : > { %3113 = vmatpush1.bf16.msra.mxu0 %v3112_v49  ;;  %v646_v49 = vld [vmem:[#allocation7 + $0x7a0] sm:$0xff] }
 0x13d   : > { %3241 = vmatpush1.bf16.msra.mxu1 %v3240_v50  ;;  %3115 = vmatprep.subr.bf16.mxu0 %v3114_v51  ;;  %v644_v50 = vld [vmem:[#allocation7 + $0x790] sm:$0xff]  ;;  %v3262_v51 = vpack.c.bf16 %v649_v44, %v645_v43  ;;  %v3136_v57 = vpack.c.bf16 %v646_v49, %v642_v48  ;;  %v3408_v44 = vpack.c.bf16 %v1010_v38, %v1002_v36  ;;  %v1105_v36 = vld [vmem:[#allocation8 + $0x448] sm:$0xff]  ;;  %v1107_v38 = vld [vmem:[#allocation8 + $0x458] sm:$0xff] }
 0x13e   : > { %3243 = vmatprep.subr.bf16.mxu1 %v3242_v55  ;;  %v653_v55 = vld [vmem:[#allocation7 + $0x7d8] sm:$0xff]  ;;  %v3264_v58 = vpack.c.bf16 %v648_v52, %v644_v50  ;;  %v1018_v48 = vld [vmem:[#allocation8 + $0x190] sm:$0xff]  ;;  %v3410_v49 = vpack.c.bf16 %v1027_v42, %v1019_v41  ;;  %v1041_v52 = vld [vmem:[#allocation8 + $0x248] sm:$0xff] }
 0x13f   : > { %v1026_v50 = vld [vmem:[#allocation8 + $0x1d0] sm:$0xff]  ;;  %v1096_v42 = vld [vmem:[#allocation8 + $0x400] sm:$0xff] }
 0x140   : > { %3117 = vmatpush1.bf16.msra.mxu0 %v3116_v61  ;;  %v654_v61 = vld [vmem:[#allocation7 + $0x7e0] sm:$0xff] }
 0x141   : > { %3245 = vmatpush1.bf16.msra.mxu1 %v3244_v62  ;;  %3119 = vmatprep.subr.bf16.mxu0 %v3118_v63  ;;  %v652_v62 = vld [vmem:[#allocation7 + $0x7d0] sm:$0xff]  ;;  %v3266_v63 = vpack.c.bf16 %v657_v56, %v653_v55  ;;  %v3140_v5 = vpack.c.bf16 %v654_v61, %v650_v60  ;;  %v3412_v56 = vpack.c.bf16 %v1026_v50, %v1018_v48  ;;  %v1121_v48 = vld [vmem:[#allocation8 + $0x4c8] sm:$0xff]  ;;  %v1123_v50 = vld [vmem:[#allocation8 + $0x4d8] sm:$0xff] }
 0x142   : > { %3247 = vmatprep.subr.bf16.mxu1 %v3246_v3  ;;  %v971_v3 = vld [vmem:[#allocation8 + $0x18] sm:$0xff]  ;;  %v3268_v6 = vpack.c.bf16 %v656_v0, %v652_v62  ;;  %v1034_v60 = vld [vmem:[#allocation8 + $0x210] sm:$0xff]  ;;  %v3414_v61 = vpack.c.bf16 %v1043_v54, %v1035_v53  ;;  %v1057_v0 = vld [vmem:[#allocation8 + $0x2c8] sm:$0xff] }
 0x143   : > { %v1042_v62 = vld [vmem:[#allocation8 + $0x250] sm:$0xff]  ;;  %v1112_v54 = vld [vmem:[#allocation8 + $0x480] sm:$0xff] }
 0x144   : > { %3121 = vmatpush1.bf16.msra.mxu0 %v3120_v9  ;;  %v976_v9 = vld [vmem:[#allocation8 + $0x40] sm:$0xff] }
 0x145   : > { %3249 = vmatpush1.bf16.msra.mxu1 %v3248_v10  ;;  %3123 = vmatprep.subr.bf16.mxu0 %v3122_v11  ;;  %v970_v10 = vld [vmem:[#allocation8 + $0x10] sm:$0xff]  ;;  %v3398_v11 = vpack.c.bf16 %v979_v4, %v971_v3  ;;  %v3272_v18 = vpack.c.bf16 %v976_v9, %v968_v8  ;;  %v3416_v4 = vpack.c.bf16 %v1042_v62, %v1034_v60  ;;  %v1137_v60 = vld [vmem:[#allocation8 + $0x548] sm:$0xff]  ;;  %v1139_v62 = vld [vmem:[#allocation8 + $0x558] sm:$0xff] }
 0x146   : > { %3251 = vmatprep.subr.bf16.mxu1 %v3250_v15  ;;  %v987_v15 = vld [vmem:[#allocation8 + $0x98] sm:$0xff]  ;;  %v3400_v19 = vpack.c.bf16 %v978_v12, %v970_v10  ;;  %v1050_v8 = vld [vmem:[#allocation8 + $0x290] sm:$0xff]  ;;  %v3418_v9 = vpack.c.bf16 %v1059_v2, %v1051_v1  ;;  %v1073_v12 = vld [vmem:[#allocation8 + $0x348] sm:$0xff] }
 0x147   : > { %v3402_v24 = vpack.c.bf16 %v995_v16, %v987_v15  ;;  %v1058_v10 = vld [vmem:[#allocation8 + $0x2d0] sm:$0xff]  ;;  %v1128_v2 = vld [vmem:[#allocation8 + $0x500] sm:$0xff] }
 0x148   : > { %3125 = vmatpush1.bf16.msra.mxu0 %v3124_v21  ;;  %v984_v21 = vld [vmem:[#allocation8 + $0x80] sm:$0xff]  ;;  %v3420_v16 = vpack.c.bf16 %v1058_v10, %v1050_v8  ;;  %v1153_v8 = vld [vmem:[#allocation8 + $0x5c8] sm:$0xff]  ;;  %v1155_v10 = vld [vmem:[#allocation8 + $0x5d8] sm:$0xff] }
 0x149   : > { %3253 = vmatpush1.bf16.msra.mxu1 %v3252_v22  ;;  %3127 = vmatprep.subr.bf16.mxu0 %v3126_v23  ;;  %v992_v22 = vld [vmem:[#allocation8 + $0xc0] sm:$0xff]  ;;  %v986_v23 = vld [vmem:[#allocation8 + $0x90] sm:$0xff] }
 0x14a   : > { %3255 = vmatprep.subr.bf16.mxu1 %v3254_v27  ;;  %v1009_v27 = vld [vmem:[#allocation8 + $0x148] sm:$0xff]  ;;  %v3276_v31 = vpack.c.bf16 %v992_v22, %v984_v21  ;;  %v3404_v32 = vpack.c.bf16 %v994_v25, %v986_v23  ;;  %v3422_v21 = vpack.c.bf16 %v1075_v14, %v1067_v13  ;;  %v1074_v22 = vld [vmem:[#allocation8 + $0x350] sm:$0xff]  ;;  %v1083_v25 = vld [vmem:[#allocation8 + $0x398] sm:$0xff] }
 0x14b   : > { %v1081_v23 = vld [vmem:[#allocation8 + $0x388] sm:$0xff]  ;;  %v1144_v14 = vld [vmem:[#allocation8 + $0x580] sm:$0xff] }
 0x14c   : > { %3129 = vmatpush1.bf16.msra.mxu0 %v3128_v33  ;;  %v3278_v33 = vpack.c.bf16 %v1009_v27, %v1001_v26  ;;  %v1091_v26 = vld [vmem:[#allocation8 + $0x3d8] sm:$0xff] }
 0x14d   : > { %3257 = vmatpush1.bf16.msra.mxu1 %v3256_v34  ;;  %3131 = vmatprep.subr.bf16.mxu0 %v3130_v35  ;;  %v1000_v34 = vld [vmem:[#allocation8 + $0x100] sm:$0xff] }
 0x14e   : > { %3259 = vmatprep.subr.bf16.mxu1 %v3258_v39  ;;  %v1008_v35 = vld [vmem:[#allocation8 + $0x140] sm:$0xff]  ;;  %v1017_v39 = vld [vmem:[#allocation8 + $0x188] sm:$0xff] }
 0x14f   : > { %v3280_v43 = vpack.c.bf16 %v1008_v35, %v1000_v34  ;;  %v1090_v34 = vld [vmem:[#allocation8 + $0x3d0] sm:$0xff]  ;;  %v1097_v35 = vld [vmem:[#allocation8 + $0x408] sm:$0xff] }
 0x150   : > { %3133 = vmatpush1.bf16.msra.mxu0 %v3132_v45  ;;  %v3282_v45 = vpack.c.bf16 %v1025_v40, %v1017_v39  ;;  %v3302_v41 = vpack.c.bf16 %v1105_v36, %v1097_v35 }
 0x151   : > { %3261 = vmatpush1.bf16.msra.mxu1 %v3260_v46  ;;  %3135 = vmatprep.subr.bf16.mxu0 %v3134_v47  ;;  %v1016_v46 = vld [vmem:[#allocation8 + $0x180] sm:$0xff] }
 0x152   : > { %3263 = vmatprep.subr.bf16.mxu1 %v3262_v51  ;;  %v1024_v47 = vld [vmem:[#allocation8 + $0x1c0] sm:$0xff]  ;;  %v1033_v51 = vld [vmem:[#allocation8 + $0x208] sm:$0xff] }
 0x153   : > { %v3284_v55 = vpack.c.bf16 %v1024_v47, %v1016_v46  ;;  %v1106_v46 = vld [vmem:[#allocation8 + $0x450] sm:$0xff]  ;;  %v1113_v47 = vld [vmem:[#allocation8 + $0x488] sm:$0xff] }
 0x154   : > { %3137 = vmatpush1.bf16.msra.mxu0 %v3136_v57  ;;  %v3286_v57 = vpack.c.bf16 %v1041_v52, %v1033_v51  ;;  %v3306_v53 = vpack.c.bf16 %v1121_v48, %v1113_v47 }
 0x155   : > { %3265 = vmatpush1.bf16.msra.mxu1 %v3264_v58  ;;  %3139 = vmatprep.subr.bf16.mxu0 %v3138_v59  ;;  %v1032_v58 = vld [vmem:[#allocation8 + $0x200] sm:$0xff] }
 0x156   : > { %3267 = vmatprep.subr.bf16.mxu1 %v3266_v63  ;;  %v1040_v59 = vld [vmem:[#allocation8 + $0x240] sm:$0xff]  ;;  %v1049_v63 = vld [vmem:[#allocation8 + $0x288] sm:$0xff] }
 0x157   : > { %v3288_v3 = vpack.c.bf16 %v1040_v59, %v1032_v58  ;;  %v1122_v58 = vld [vmem:[#allocation8 + $0x4d0] sm:$0xff]  ;;  %v1129_v59 = vld [vmem:[#allocation8 + $0x508] sm:$0xff] }
 0x158   : > { %3141 = vmatpush1.bf16.msra.mxu0 %v3140_v5  ;;  %v3290_v5 = vpack.c.bf16 %v1057_v0, %v1049_v63  ;;  %v3310_v1 = vpack.c.bf16 %v1137_v60, %v1129_v59 }
 0x159   : > { %3269 = vmatpush1.bf16.msra.mxu1 %v3268_v6  ;;  %3271 = vmatprep.subr.bf16.mxu0 %v3270_v7  ;;  %v1048_v6 = vld [vmem:[#allocation8 + $0x280] sm:$0xff] }
 0x15a   : > { %3399 = vmatprep.subr.bf16.mxu1 %v3398_v11  ;;  %v1056_v7 = vld [vmem:[#allocation8 + $0x2c0] sm:$0xff]  ;;  %v1065_v11 = vld [vmem:[#allocation8 + $0x308] sm:$0xff] }
 0x15b   : > { %816 = vmatmul.mubr.f32.vlgmr.msra.gmra.mrb[0].mxu0 %v400_v17  ;;  %v3292_v15 = vpack.c.bf16 %v1056_v7, %v1048_v6  ;;  %v1138_v6 = vld [vmem:[#allocation8 + $0x550] sm:$0xff]  ;;  %v1145_v7 = vld [vmem:[#allocation8 + $0x588] sm:$0xff] }
 0x15c   : > { %958 = vmatmul.mubr.f32.vlgmr.msra.gmra.mrb[0].mxu1 %v400_v17  ;;  %3273 = vmatpush1.bf16.msra.mxu0 %v3272_v18  ;;  %v3294_v17 = vpack.c.bf16 %v1073_v12, %v1065_v11  ;;  %v1064_v18 = vld [vmem:[#allocation8 + $0x300] sm:$0xff]  ;;  %v3314_v13 = vpack.c.bf16 %v1153_v8, %v1145_v7 }
 0x15d   : > { %3401 = vmatpush1.bf16.msra.mxu1 %v3400_v19  ;;  %3275 = vmatprep.subr.bf16.mxu0 %v3274_v20  ;;  %v1072_v19 = vld [vmem:[#allocation8 + $0x340] sm:$0xff]  ;;  %v1066_v20 = vld [vmem:[#allocation8 + $0x310] sm:$0xff] }
 0x15e   : > { %3403 = vmatprep.subr.bf16.mxu1 %v3402_v24  ;;  %1586 = vmatprep.mubr.f32.mxu0 %v965_v30  ;;  %v1089_v24 = vld [vmem:[#allocation8 + $0x3c8] sm:$0xff]  ;;  %v3296_v27 = vpack.c.bf16 %v1072_v19, %v1064_v18  ;;  %v3424_v28 = vpack.c.bf16 %v1074_v22, %v1066_v20  ;;  %v1154_v18 = vld [vmem:[#allocation8 + $0x5d0] sm:$0xff]  ;;  %v1171_v22 = vld [vmem:[#allocation8 + $0x658] sm:$0xff] }
 0x15f   : > { %1728 = vmatprep.mubr.f32.mxu1 %v965_v30  ;;  %v3298_v29 = vpack.c.bf16 %v1089_v24, %v1081_v23  ;;  %v1080_v30 = vld [vmem:[#allocation8 + $0x380] sm:$0xff]  ;;  %v1161_v19 = vld [vmem:[#allocation8 + $0x608] sm:$0xff] }
 0x160   : > { %3277 = vmatpush1.bf16.msra.mxu0 %v3276_v31  ;;  %v1088_v31 = vld [vmem:[#allocation8 + $0x3c0] sm:$0xff]  ;;  %v1169_v20 = vld [vmem:[#allocation8 + $0x648] sm:$0xff] }
 0x161   : > { %3405 = vmatpush1.bf16.msra.mxu1 %v3404_v32  ;;  %3279 = vmatprep.subr.bf16.mxu0 %v3278_v33  ;;  %v1082_v32 = vld [vmem:[#allocation8 + $0x390] sm:$0xff]  ;;  %v3426_v33 = vpack.c.bf16 %v1091_v26, %v1083_v25  ;;  %v3300_v39 = vpack.c.bf16 %v1088_v31, %v1080_v30  ;;  %v3318_v25 = vpack.c.bf16 %v1169_v20, %v1161_v19  ;;  %v1160_v26 = vld [vmem:[#allocation8 + $0x600] sm:$0xff]  ;;  %v1177_v31 = vld [vmem:[#allocation8 + $0x688] sm:$0xff] }
 0x162   : > { %3407 = vmatprep.subr.bf16.mxu1 %v3406_v37  ;;  %v1099_v37 = vld [vmem:[#allocation8 + $0x418] sm:$0xff]  ;;  %v3428_v40 = vpack.c.bf16 %v1090_v34, %v1082_v32  ;;  %v1170_v30 = vld [vmem:[#allocation8 + $0x650] sm:$0xff]  ;;  %v1185_v32 = vld [vmem:[#allocation8 + $0x6c8] sm:$0xff] }
 0x163   : > { %v1187_v34 = vld [vmem:[#allocation8 + $0x6d8] sm:$0xff]  ;;  %v4557_v19 = vld [vmem:[%s4533_s16] sm:$0xff] }
 0x164   : > { %3281 = vmatpush1.bf16.msra.mxu0 %v3280_v43  ;;  %v1104_v43 = vld [vmem:[#allocation8 + $0x440] sm:$0xff] }
 0x165   : > { %3409 = vmatpush1.bf16.msra.mxu1 %v3408_v44  ;;  %3283 = vmatprep.subr.bf16.mxu0 %v3282_v45  ;;  %v1098_v44 = vld [vmem:[#allocation8 + $0x410] sm:$0xff]  ;;  %v3430_v45 = vpack.c.bf16 %v1107_v38, %v1099_v37  ;;  %v3304_v51 = vpack.c.bf16 %v1104_v43, %v1096_v42  ;;  %v3322_v37 = vpack.c.bf16 %v1185_v32, %v1177_v31  ;;  %v1176_v38 = vld [vmem:[#allocation8 + $0x680] sm:$0xff]  ;;  %v1193_v43 = vld [vmem:[#allocation8 + $0x708] sm:$0xff] }
 0x166   : > { %3411 = vmatprep.subr.bf16.mxu1 %v3410_v49  ;;  %v1115_v49 = vld [vmem:[#allocation8 + $0x498] sm:$0xff]  ;;  %v3432_v52 = vpack.c.bf16 %v1106_v46, %v1098_v44  ;;  %v1186_v42 = vld [vmem:[#allocation8 + $0x6d0] sm:$0xff]  ;;  %v1201_v44 = vld [vmem:[#allocation8 + $0x748] sm:$0xff] }
 0x167   : > { %v1203_v46 = vld [vmem:[#allocation8 + $0x758] sm:$0xff] }
 0x168   : > { %3285 = vmatpush1.bf16.msra.mxu0 %v3284_v55  ;;  %v1120_v55 = vld [vmem:[#allocation8 + $0x4c0] sm:$0xff]  ;;  %v1267_v31 = vld [vmem:[#allocation8 + $0x958] sm:$0xff] }
 0x169   : > { %3413 = vmatpush1.bf16.msra.mxu1 %v3412_v56  ;;  %3287 = vmatprep.subr.bf16.mxu0 %v3286_v57  ;;  %v1114_v56 = vld [vmem:[#allocation8 + $0x490] sm:$0xff]  ;;  %v3434_v57 = vpack.c.bf16 %v1123_v50, %v1115_v49  ;;  %v3308_v63 = vpack.c.bf16 %v1120_v55, %v1112_v54  ;;  %v3326_v49 = vpack.c.bf16 %v1201_v44, %v1193_v43  ;;  %v1192_v50 = vld [vmem:[#allocation8 + $0x700] sm:$0xff]  ;;  %v1209_v55 = vld [vmem:[#allocation8 + $0x788] sm:$0xff] }
 0x16a   : > { %3415 = vmatprep.subr.bf16.mxu1 %v3414_v61  ;;  %v1131_v61 = vld [vmem:[#allocation8 + $0x518] sm:$0xff]  ;;  %v3436_v0 = vpack.c.bf16 %v1122_v58, %v1114_v56  ;;  %v1202_v54 = vld [vmem:[#allocation8 + $0x750] sm:$0xff]  ;;  %v1217_v56 = vld [vmem:[#allocation8 + $0x7c8] sm:$0xff] }
 0x16b   : > { %v1219_v58 = vld [vmem:[#allocation8 + $0x7d8] sm:$0xff] }
 0x16c   : > { %3289 = vmatpush1.bf16.msra.mxu0 %v3288_v3  ;;  %v1136_v3 = vld [vmem:[#allocation8 + $0x540] sm:$0xff]  ;;  %v4561_v32 = vld [vmem:[%s4533_s16 + $0x18] sm:$0xff] }
 0x16d   : > { %3417 = vmatpush1.bf16.msra.mxu1 %v3416_v4  ;;  %3291 = vmatprep.subr.bf16.mxu0 %v3290_v5  ;;  %v1130_v4 = vld [vmem:[#allocation8 + $0x510] sm:$0xff]  ;;  %v3438_v5 = vpack.c.bf16 %v1139_v62, %v1131_v61  ;;  %v3312_v11 = vpack.c.bf16 %v1136_v3, %v1128_v2  ;;  %v3330_v61 = vpack.c.bf16 %v1217_v56, %v1209_v55  ;;  %v1208_v62 = vld [vmem:[#allocation8 + $0x780] sm:$0xff]  ;;  %v1225_v3 = vld [vmem:[#allocation8 + $0x808] sm:$0xff] }
 0x16e   : > { %3419 = vmatprep.subr.bf16.mxu1 %v3418_v9  ;;  %v1147_v9 = vld [vmem:[#allocation8 + $0x598] sm:$0xff]  ;;  %v3440_v12 = vpack.c.bf16 %v1138_v6, %v1130_v4  ;;  %v1218_v2 = vld [vmem:[#allocation8 + $0x7d0] sm:$0xff]  ;;  %v1233_v4 = vld [vmem:[#allocation8 + $0x848] sm:$0xff] }
 0x16f   : > { %v1235_v6 = vld [vmem:[#allocation8 + $0x858] sm:$0xff] }
 0x170   : > { %3293 = vmatpush1.bf16.msra.mxu0 %v3292_v15  ;;  %v1152_v15 = vld [vmem:[#allocation8 + $0x5c0] sm:$0xff]  ;;  %v1275_v43 = vld [vmem:[#allocation8 + $0x998] sm:$0xff] }
 0x171   : > { %3421 = vmatpush1.bf16.msra.mxu1 %v3420_v16  ;;  %3295 = vmatprep.subr.bf16.mxu0 %v3294_v17  ;;  %v1146_v16 = vld [vmem:[#allocation8 + $0x590] sm:$0xff]  ;;  %v3442_v17 = vpack.c.bf16 %v1155_v10, %v1147_v9  ;;  %v3316_v23 = vpack.c.bf16 %v1152_v15, %v1144_v14  ;;  %v3334_v9 = vpack.c.bf16 %v1233_v4, %v1225_v3  ;;  %v1224_v10 = vld [vmem:[#allocation8 + $0x800] sm:$0xff]  ;;  %v1241_v15 = vld [vmem:[#allocation8 + $0x888] sm:$0xff] }
 0x172   : > { %3423 = vmatprep.subr.bf16.mxu1 %v3422_v21  ;;  %v1163_v21 = vld [vmem:[#allocation8 + $0x618] sm:$0xff]  ;;  %v3444_v24 = vpack.c.bf16 %v1154_v18, %v1146_v16  ;;  %v1234_v14 = vld [vmem:[#allocation8 + $0x850] sm:$0xff]  ;;  %v1249_v16 = vld [vmem:[#allocation8 + $0x8c8] sm:$0xff] }
 0x173   : > { %v1251_v18 = vld [vmem:[#allocation8 + $0x8d8] sm:$0xff] }
 0x174   : > { %3297 = vmatpush1.bf16.msra.mxu0 %v3296_v27  ;;  %v1168_v27 = vld [vmem:[#allocation8 + $0x640] sm:$0xff]  ;;  %v1283_v44 = vld [vmem:[#allocation8 + $0x9d8] sm:$0xff] }
 0x175   : > { %3425 = vmatpush1.bf16.msra.mxu1 %v3424_v28  ;;  %3299 = vmatprep.subr.bf16.mxu0 %v3298_v29  ;;  %v1162_v28 = vld [vmem:[#allocation8 + $0x610] sm:$0xff]  ;;  %v3446_v29 = vpack.c.bf16 %v1171_v22, %v1163_v21  ;;  %v3320_v35 = vpack.c.bf16 %v1168_v27, %v1160_v26  ;;  %v3338_v22 = vpack.c.bf16 %v1249_v16, %v1241_v15  ;;  %v1291_v55 = vld [vmem:[#allocation8 + $0xa18] sm:$0xff] }
 0x176   : > { %3427 = vmatprep.subr.bf16.mxu1 %v3426_v33  ;;  %v1179_v33 = vld [vmem:[#allocation8 + $0x698] sm:$0xff]  ;;  %v3448_v36 = vpack.c.bf16 %v1170_v30, %v1162_v28  ;;  %v1250_v27 = vld [vmem:[#allocation8 + $0x8d0] sm:$0xff]  ;;  %v1257_v28 = vld [vmem:[#allocation8 + $0x908] sm:$0xff] }
 0x177   : > { %v1259_v30 = vld [vmem:[#allocation8 + $0x918] sm:$0xff] }
 0x178   : > { %3301 = vmatpush1.bf16.msra.mxu0 %v3300_v39  ;;  %v1184_v39 = vld [vmem:[#allocation8 + $0x6c0] sm:$0xff]  ;;  %v1299_v56 = vld [vmem:[#allocation8 + $0xa58] sm:$0xff] }
 0x179   : > { %3429 = vmatpush1.bf16.msra.mxu1 %v3428_v40  ;;  %3303 = vmatprep.subr.bf16.mxu0 %v3302_v41  ;;  %v1178_v40 = vld [vmem:[#allocation8 + $0x690] sm:$0xff]  ;;  %v3450_v41 = vpack.c.bf16 %v1187_v34, %v1179_v33  ;;  %v3324_v47 = vpack.c.bf16 %v1184_v39, %v1176_v38  ;;  %v3470_v39 = vpack.c.bf16 %v1267_v31, %v1259_v30  ;;  %v1307_v3 = vld [vmem:[#allocation8 + $0xa98] sm:$0xff] }
 0x17a   : > { %3431 = vmatprep.subr.bf16.mxu1 %v3430_v45  ;;  %v1195_v45 = vld [vmem:[#allocation8 + $0x718] sm:$0xff]  ;;  %v3452_v48 = vpack.c.bf16 %v1186_v42, %v1178_v40  ;;  %v1258_v38 = vld [vmem:[#allocation8 + $0x910] sm:$0xff]  ;;  %v1281_v42 = vld [vmem:[#allocation8 + $0x9c8] sm:$0xff] }
 0x17b   : > { %v1266_v40 = vld [vmem:[#allocation8 + $0x950] sm:$0xff]  ;;  %v1315_v4 = vld [vmem:[#allocation8 + $0xad8] sm:$0xff] }
 0x17c   : > { %3305 = vmatpush1.bf16.msra.mxu0 %v3304_v51  ;;  %v1200_v51 = vld [vmem:[#allocation8 + $0x740] sm:$0xff]  ;;  %v1323_v15 = vld [vmem:[#allocation8 + $0xb18] sm:$0xff] }
 0x17d   : > { %3433 = vmatpush1.bf16.msra.mxu1 %v3432_v52  ;;  %3307 = vmatprep.subr.bf16.mxu0 %v3306_v53  ;;  %v1194_v52 = vld [vmem:[#allocation8 + $0x710] sm:$0xff]  ;;  %v3454_v53 = vpack.c.bf16 %v1203_v46, %v1195_v45  ;;  %v3328_v59 = vpack.c.bf16 %v1200_v51, %v1192_v50  ;;  %v3472_v46 = vpack.c.bf16 %v1266_v40, %v1258_v38  ;;  %v1331_v16 = vld [vmem:[#allocation8 + $0xb58] sm:$0xff]  ;;  %v1361_v40 = vld [vmem:[#allocation8 + $0xc48] sm:$0xff] }
 0x17e   : > { %3435 = vmatprep.subr.bf16.mxu1 %v3434_v57  ;;  %v1211_v57 = vld [vmem:[#allocation8 + $0x798] sm:$0xff]  ;;  %v3456_v60 = vpack.c.bf16 %v1202_v54, %v1194_v52  ;;  %v1274_v50 = vld [vmem:[#allocation8 + $0x990] sm:$0xff]  ;;  %v3474_v51 = vpack.c.bf16 %v1283_v44, %v1275_v43  ;;  %v1297_v54 = vld [vmem:[#allocation8 + $0xa48] sm:$0xff] }
 0x17f   : > { %v1282_v52 = vld [vmem:[#allocation8 + $0x9d0] sm:$0xff] }
 0x180   : > { %3309 = vmatpush1.bf16.msra.mxu0 %v3308_v63  ;;  %v1216_v63 = vld [vmem:[#allocation8 + $0x7c0] sm:$0xff]  ;;  %v1346_v38 = vld [vmem:[#allocation8 + $0xbd0] sm:$0xff] }
 0x181   : > { %3437 = vmatpush1.bf16.msra.mxu1 %v3436_v0  ;;  %3311 = vmatprep.subr.bf16.mxu0 %v3310_v1  ;;  %v1210_v0 = vld [vmem:[#allocation8 + $0x790] sm:$0xff]  ;;  %v3458_v1 = vpack.c.bf16 %v1219_v58, %v1211_v57  ;;  %v3332_v7 = vpack.c.bf16 %v1216_v63, %v1208_v62  ;;  %v3476_v58 = vpack.c.bf16 %v1282_v52, %v1274_v50  ;;  %v1377_v52 = vld [vmem:[#allocation8 + $0xcc8] sm:$0xff] }
 0x182   : > { %3439 = vmatprep.subr.bf16.mxu1 %v3438_v5  ;;  %v1227_v5 = vld [vmem:[#allocation8 + $0x818] sm:$0xff]  ;;  %v3460_v8 = vpack.c.bf16 %v1218_v2, %v1210_v0  ;;  %v1290_v62 = vld [vmem:[#allocation8 + $0xa10] sm:$0xff]  ;;  %v3478_v63 = vpack.c.bf16 %v1299_v56, %v1291_v55  ;;  %v1313_v2 = vld [vmem:[#allocation8 + $0xac8] sm:$0xff] }
 0x183   : > { %v1298_v0 = vld [vmem:[#allocation8 + $0xa50] sm:$0xff] }
 0x184   : > { %3313 = vmatpush1.bf16.msra.mxu0 %v3312_v11  ;;  %v1232_v11 = vld [vmem:[#allocation8 + $0x840] sm:$0xff]  ;;  %v1362_v50 = vld [vmem:[#allocation8 + $0xc50] sm:$0xff] }
 0x185   : > { %3441 = vmatpush1.bf16.msra.mxu1 %v3440_v12  ;;  %3315 = vmatprep.subr.bf16.mxu0 %v3314_v13  ;;  %v1226_v12 = vld [vmem:[#allocation8 + $0x810] sm:$0xff]  ;;  %v3462_v13 = vpack.c.bf16 %v1235_v6, %v1227_v5  ;;  %v3336_v20 = vpack.c.bf16 %v1232_v11, %v1224_v10  ;;  %v3480_v6 = vpack.c.bf16 %v1298_v0, %v1290_v62  ;;  %v1393_v0 = vld [vmem:[#allocation8 + $0xd48] sm:$0xff] }
 0x186   : > { %3443 = vmatprep.subr.bf16.mxu1 %v3442_v17  ;;  %v1243_v17 = vld [vmem:[#allocation8 + $0x898] sm:$0xff]  ;;  %v3464_v21 = vpack.c.bf16 %v1234_v14, %v1226_v12  ;;  %v1306_v10 = vld [vmem:[#allocation8 + $0xa90] sm:$0xff]  ;;  %v3482_v11 = vpack.c.bf16 %v1315_v4, %v1307_v3  ;;  %v1329_v14 = vld [vmem:[#allocation8 + $0xb48] sm:$0xff] }
 0x187   : > { %v3466_v26 = vpack.c.bf16 %v1251_v18, %v1243_v17  ;;  %v1314_v12 = vld [vmem:[#allocation8 + $0xad0] sm:$0xff] }
 0x188   : > { %3317 = vmatpush1.bf16.msra.mxu0 %v3316_v23  ;;  %v1240_v23 = vld [vmem:[#allocation8 + $0x880] sm:$0xff]  ;;  %v3484_v18 = vpack.c.bf16 %v1314_v12, %v1306_v10  ;;  %v1378_v62 = vld [vmem:[#allocation8 + $0xcd0] sm:$0xff]  ;;  %v1409_v12 = vld [vmem:[#allocation8 + $0xdc8] sm:$0xff] }
 0x189   : > { %3445 = vmatpush1.bf16.msra.mxu1 %v3444_v24  ;;  %3319 = vmatprep.subr.bf16.mxu0 %v3318_v25  ;;  %v1248_v24 = vld [vmem:[#allocation8 + $0x8c0] sm:$0xff]  ;;  %v1242_v25 = vld [vmem:[#allocation8 + $0x890] sm:$0xff] }
 0x18a   : > { %3447 = vmatprep.subr.bf16.mxu1 %v3446_v29  ;;  %v1265_v29 = vld [vmem:[#allocation8 + $0x948] sm:$0xff]  ;;  %v3340_v33 = vpack.c.bf16 %v1248_v24, %v1240_v23  ;;  %v3468_v34 = vpack.c.bf16 %v1250_v27, %v1242_v25  ;;  %v1322_v23 = vld [vmem:[#allocation8 + $0xb10] sm:$0xff]  ;;  %v3486_v24 = vpack.c.bf16 %v1331_v16, %v1323_v15 }
 0x18b   : > { %v1330_v25 = vld [vmem:[#allocation8 + $0xb50] sm:$0xff]  ;;  %v1345_v27 = vld [vmem:[#allocation8 + $0xbc8] sm:$0xff] }
 0x18c   : > { %3321 = vmatpush1.bf16.msra.mxu0 %v3320_v35  ;;  %v3342_v35 = vpack.c.bf16 %v1265_v29, %v1257_v28  ;;  %v1339_v28 = vld [vmem:[#allocation8 + $0xb98] sm:$0xff]  ;;  %v3488_v31 = vpack.c.bf16 %v1330_v25, %v1322_v23  ;;  %v1394_v10 = vld [vmem:[#allocation8 + $0xd50] sm:$0xff]  ;;  %v1425_v25 = vld [vmem:[#allocation8 + $0xe48] sm:$0xff] }
 0x18d   : > { %3449 = vmatpush1.bf16.msra.mxu1 %v3448_v36  ;;  %3323 = vmatprep.subr.bf16.mxu0 %v3322_v37  ;;  %v1256_v36 = vld [vmem:[#allocation8 + $0x900] sm:$0xff]  ;;  %v1347_v29 = vld [vmem:[#allocation8 + $0xbd8] sm:$0xff]  ;;  %v1410_v23 = vld [vmem:[#allocation8 + $0xdd0] sm:$0xff] }
 0x18e   : > { %3451 = vmatprep.subr.bf16.mxu1 %v3450_v41  ;;  %v1264_v37 = vld [vmem:[#allocation8 + $0x940] sm:$0xff]  ;;  %v1273_v41 = vld [vmem:[#allocation8 + $0x988] sm:$0xff] }
 0x18f   : > { %v3344_v45 = vpack.c.bf16 %v1264_v37, %v1256_v36  ;;  %v1338_v36 = vld [vmem:[#allocation8 + $0xb90] sm:$0xff]  ;;  %v3490_v37 = vpack.c.bf16 %v1347_v29, %v1339_v28 }
 0x190   : > { %3325 = vmatpush1.bf16.msra.mxu0 %v3324_v47  ;;  %v3346_v47 = vpack.c.bf16 %v1281_v42, %v1273_v41  ;;  %v1355_v41 = vld [vmem:[#allocation8 + $0xc18] sm:$0xff]  ;;  %v3492_v44 = vpack.c.bf16 %v1346_v38, %v1338_v36  ;;  %v1426_v36 = vld [vmem:[#allocation8 + $0xe50] sm:$0xff]  ;;  %v1441_v38 = vld [vmem:[#allocation8 + $0xec8] sm:$0xff] }
 0x191   : > { %3453 = vmatpush1.bf16.msra.mxu1 %v3452_v48  ;;  %3327 = vmatprep.subr.bf16.mxu0 %v3326_v49  ;;  %v1272_v48 = vld [vmem:[#allocation8 + $0x980] sm:$0xff]  ;;  %v1363_v42 = vld [vmem:[#allocation8 + $0xc58] sm:$0xff] }
 0x192   : > { %3455 = vmatprep.subr.bf16.mxu1 %v3454_v53  ;;  %v1280_v49 = vld [vmem:[#allocation8 + $0x9c0] sm:$0xff]  ;;  %v1289_v53 = vld [vmem:[#allocation8 + $0xa08] sm:$0xff] }
 0x193   : > { %v3348_v57 = vpack.c.bf16 %v1280_v49, %v1272_v48  ;;  %v1354_v48 = vld [vmem:[#allocation8 + $0xc10] sm:$0xff]  ;;  %v3494_v49 = vpack.c.bf16 %v1363_v42, %v1355_v41 }
 0x194   : > { %3329 = vmatpush1.bf16.msra.mxu0 %v3328_v59  ;;  %v3350_v59 = vpack.c.bf16 %v1297_v54, %v1289_v53  ;;  %v1371_v53 = vld [vmem:[#allocation8 + $0xc98] sm:$0xff]  ;;  %v3496_v56 = vpack.c.bf16 %v1362_v50, %v1354_v48  ;;  %v1442_v48 = vld [vmem:[#allocation8 + $0xed0] sm:$0xff]  ;;  %v1457_v50 = vld [vmem:[#allocation8 + $0xf48] sm:$0xff] }
 0x195   : > { %3457 = vmatpush1.bf16.msra.mxu1 %v3456_v60  ;;  %3331 = vmatprep.subr.bf16.mxu0 %v3330_v61  ;;  %v1288_v60 = vld [vmem:[#allocation8 + $0xa00] sm:$0xff]  ;;  %v1379_v54 = vld [vmem:[#allocation8 + $0xcd8] sm:$0xff] }
 0x196   : > { %3459 = vmatprep.subr.bf16.mxu1 %v3458_v1  ;;  %v1296_v61 = vld [vmem:[#allocation8 + $0xa40] sm:$0xff]  ;;  %v1305_v1 = vld [vmem:[#allocation8 + $0xa88] sm:$0xff] }
 0x197   : > { %v3352_v5 = vpack.c.bf16 %v1296_v61, %v1288_v60  ;;  %v1370_v60 = vld [vmem:[#allocation8 + $0xc90] sm:$0xff]  ;;  %v3498_v61 = vpack.c.bf16 %v1379_v54, %v1371_v53 }
 0x198   : > { %3333 = vmatpush1.bf16.msra.mxu0 %v3332_v7  ;;  %v3354_v7 = vpack.c.bf16 %v1313_v2, %v1305_v1  ;;  %v1387_v1 = vld [vmem:[#allocation8 + $0xd18] sm:$0xff]  ;;  %v3500_v4 = vpack.c.bf16 %v1378_v62, %v1370_v60  ;;  %v1458_v60 = vld [vmem:[#allocation8 + $0xf50] sm:$0xff]  ;;  %v1473_v62 = vld [vmem:[#allocation8 + $0xfc8] sm:$0xff] }
 0x199   : > { %3461 = vmatpush1.bf16.msra.mxu1 %v3460_v8  ;;  %3335 = vmatprep.subr.bf16.mxu0 %v3334_v9  ;;  %v1304_v8 = vld [vmem:[#allocation8 + $0xa80] sm:$0xff]  ;;  %v1395_v2 = vld [vmem:[#allocation8 + $0xd58] sm:$0xff] }
 0x19a   : > { %3463 = vmatprep.subr.bf16.mxu1 %v3462_v13  ;;  %v1312_v9 = vld [vmem:[#allocation8 + $0xac0] sm:$0xff]  ;;  %v1321_v13 = vld [vmem:[#allocation8 + $0xb08] sm:$0xff] }
 0x19b   : > { %1587 = vmatmul.mubr.f32.vlgmr.msra.gmra.mrb[2].mxu0 %v4557_v19  ;;  %v3356_v17 = vpack.c.bf16 %v1312_v9, %v1304_v8  ;;  %v1386_v8 = vld [vmem:[#allocation8 + $0xd10] sm:$0xff]  ;;  %v3502_v9 = vpack.c.bf16 %v1395_v2, %v1387_v1 }
 0x19c   : > { %3337 = vmatpush1.bf16.msra.mxu0 %v3336_v20  ;;  %1729 = vmatmul.mubr.f32.vlgmr.msra.gmra.mrb[2].mxu1 %v4557_v19  ;;  %v3358_v20 = vpack.c.bf16 %v1329_v14, %v1321_v13  ;;  %v1403_v13 = vld [vmem:[#allocation8 + $0xd98] sm:$0xff]  ;;  %v3504_v16 = vpack.c.bf16 %v1394_v10, %v1386_v8  ;;  %v1474_v8 = vld [vmem:[#allocation8 + $0xfd0] sm:$0xff]  ;;  %v981_v10 = vld [vmem:[#allocation8 + $0x68] sm:$0xff] }
 0x19d   : > { %3465 = vmatpush1.bf16.msra.mxu1 %v3464_v21  ;;  %3339 = vmatprep.subr.bf16.mxu0 %v3338_v22  ;;  %v1320_v21 = vld [vmem:[#allocation8 + $0xb00] sm:$0xff]  ;;  %v1411_v14 = vld [vmem:[#allocation8 + $0xdd8] sm:$0xff] }
 0x19e   : > { %3467 = vmatprep.subr.bf16.mxu1 %v3466_v26  ;;  %1657 = vmatprep.mubr.f32.mxu0 %v4561_v32  ;;  %v1328_v22 = vld [vmem:[#allocation8 + $0xb40] sm:$0xff]  ;;  %v1337_v26 = vld [vmem:[#allocation8 + $0xb88] sm:$0xff] }
 0x19f   : > { %1799 = vmatprep.mubr.f32.mxu1 %v4561_v32  ;;  %v3360_v30 = vpack.c.bf16 %v1328_v22, %v1320_v21  ;;  %v1402_v21 = vld [vmem:[#allocation8 + $0xd90] sm:$0xff]  ;;  %v3506_v22 = vpack.c.bf16 %v1411_v14, %v1403_v13  ;;  %v972_v14 = vld [vmem:[#allocation8 + $0x20] sm:$0xff] }
 0x1a0   : > { %3341 = vmatpush1.bf16.msra.mxu0 %v3340_v33  ;;  %v3362_v33 = vpack.c.bf16 %v1345_v27, %v1337_v26  ;;  %v1419_v26 = vld [vmem:[#allocation8 + $0xe18] sm:$0xff]  ;;  %v3508_v29 = vpack.c.bf16 %v1410_v23, %v1402_v21  ;;  %v996_v23 = vld [vmem:[#allocation8 + $0xe0] sm:$0xff] }
 0x1a1   : > { %3469 = vmatpush1.bf16.msra.mxu1 %v3468_v34  ;;  %3343 = vmatprep.subr.bf16.mxu0 %v3342_v35  ;;  %v1336_v34 = vld [vmem:[#allocation8 + $0xb80] sm:$0xff]  ;;  %v1427_v27 = vld [vmem:[#allocation8 + $0xe58] sm:$0xff] }
 0x1a2   : > { %3471 = vmatprep.subr.bf16.mxu1 %v3470_v39  ;;  %v1344_v35 = vld [vmem:[#allocation8 + $0xbc0] sm:$0xff]  ;;  %v1353_v39 = vld [vmem:[#allocation8 + $0xc08] sm:$0xff] }
 0x1a3   : > { %v3364_v43 = vpack.c.bf16 %v1344_v35, %v1336_v34  ;;  %v1418_v34 = vld [vmem:[#allocation8 + $0xe10] sm:$0xff]  ;;  %v3510_v35 = vpack.c.bf16 %v1427_v27, %v1419_v26 }
 0x1a4   : > { %3345 = vmatpush1.bf16.msra.mxu0 %v3344_v45  ;;  %v3366_v45 = vpack.c.bf16 %v1361_v40, %v1353_v39  ;;  %v1435_v39 = vld [vmem:[#allocation8 + $0xe98] sm:$0xff]  ;;  %v3512_v42 = vpack.c.bf16 %v1426_v36, %v1418_v34  ;;  %v1020_v36 = vld [vmem:[#allocation8 + $0x1a0] sm:$0xff] }
 0x1a5   : > { %3473 = vmatpush1.bf16.msra.mxu1 %v3472_v46  ;;  %3347 = vmatprep.subr.bf16.mxu0 %v3346_v47  ;;  %v1352_v46 = vld [vmem:[#allocation8 + $0xc00] sm:$0xff]  ;;  %v1443_v40 = vld [vmem:[#allocation8 + $0xed8] sm:$0xff] }
 0x1a6   : > { %3475 = vmatprep.subr.bf16.mxu1 %v3474_v51  ;;  %v1360_v47 = vld [vmem:[#allocation8 + $0xc40] sm:$0xff]  ;;  %v1369_v51 = vld [vmem:[#allocation8 + $0xc88] sm:$0xff] }
 0x1a7   : > { %v3368_v55 = vpack.c.bf16 %v1360_v47, %v1352_v46  ;;  %v1434_v46 = vld [vmem:[#allocation8 + $0xe90] sm:$0xff]  ;;  %v3514_v47 = vpack.c.bf16 %v1443_v40, %v1435_v39  ;;  %v1045_v39 = vld [vmem:[#allocation8 + $0x268] sm:$0xff] }
 0x1a8   : > { %3349 = vmatpush1.bf16.msra.mxu0 %v3348_v57  ;;  %v3370_v57 = vpack.c.bf16 %v1377_v52, %v1369_v51  ;;  %v1451_v51 = vld [vmem:[#allocation8 + $0xf18] sm:$0xff]  ;;  %v3516_v54 = vpack.c.bf16 %v1442_v48, %v1434_v46  ;;  %v1052_v48 = vld [vmem:[#allocation8 + $0x2a0] sm:$0xff] }
 0x1a9   : > { %3477 = vmatpush1.bf16.msra.mxu1 %v3476_v58  ;;  %3351 = vmatprep.subr.bf16.mxu0 %v3350_v59  ;;  %v1368_v58 = vld [vmem:[#allocation8 + $0xc80] sm:$0xff]  ;;  %v1459_v52 = vld [vmem:[#allocation8 + $0xf58] sm:$0xff] }
 0x1aa   : > { %3479 = vmatprep.subr.bf16.mxu1 %v3478_v63  ;;  %v1376_v59 = vld [vmem:[#allocation8 + $0xcc0] sm:$0xff]  ;;  %v1385_v63 = vld [vmem:[#allocation8 + $0xd08] sm:$0xff] }
 0x1ab   : > { %v3372_v3 = vpack.c.bf16 %v1376_v59, %v1368_v58  ;;  %v1450_v58 = vld [vmem:[#allocation8 + $0xf10] sm:$0xff]  ;;  %v3518_v59 = vpack.c.bf16 %v1459_v52, %v1451_v51  ;;  %v1077_v51 = vld [vmem:[#allocation8 + $0x368] sm:$0xff] }
 0x1ac   : > { %3353 = vmatpush1.bf16.msra.mxu0 %v3352_v5  ;;  %v3374_v5 = vpack.c.bf16 %v1393_v0, %v1385_v63  ;;  %v1467_v63 = vld [vmem:[#allocation8 + $0xf98] sm:$0xff]  ;;  %v3520_v2 = vpack.c.bf16 %v1458_v60, %v1450_v58  ;;  %v1084_v60 = vld [vmem:[#allocation8 + $0x3a0] sm:$0xff] }
 0x1ad   : > { %3481 = vmatpush1.bf16.msra.mxu1 %v3480_v6  ;;  %3355 = vmatprep.subr.bf16.mxu0 %v3354_v7  ;;  %v1384_v6 = vld [vmem:[#allocation8 + $0xd00] sm:$0xff]  ;;  %v1475_v0 = vld [vmem:[#allocation8 + $0xfd8] sm:$0xff] }
 0x1ae   : > { %3483 = vmatprep.subr.bf16.mxu1 %v3482_v11  ;;  %v1392_v7 = vld [vmem:[#allocation8 + $0xd40] sm:$0xff]  ;;  %v1401_v11 = vld [vmem:[#allocation8 + $0xd88] sm:$0xff] }
 0x1af   : > { %v3376_v15 = vpack.c.bf16 %v1392_v7, %v1384_v6  ;;  %v1466_v6 = vld [vmem:[#allocation8 + $0xf90] sm:$0xff]  ;;  %v3522_v7 = vpack.c.bf16 %v1475_v0, %v1467_v63  ;;  %v1109_v63 = vld [vmem:[#allocation8 + $0x468] sm:$0xff] }
 0x1b0   : > { %3357 = vmatpush1.bf16.msra.mxu0 %v3356_v17  ;;  %v3378_v17 = vpack.c.bf16 %v1409_v12, %v1401_v11  ;;  %v3524_v12 = vpack.c.bf16 %v1474_v8, %v1466_v6  ;;  %v1116_v8 = vld [vmem:[#allocation8 + $0x4a0] sm:$0xff] }
 0x1b1   : > { %3485 = vmatpush1.bf16.msra.mxu1 %v3484_v18  ;;  %3359 = vmatprep.subr.bf16.mxu0 %v3358_v20  ;;  %v1400_v18 = vld [vmem:[#allocation8 + $0xd80] sm:$0xff] }
 0x1b2   : > { %3487 = vmatprep.subr.bf16.mxu1 %v3486_v24  ;;  %v1408_v20 = vld [vmem:[#allocation8 + $0xdc0] sm:$0xff]  ;;  %v1417_v24 = vld [vmem:[#allocation8 + $0xe08] sm:$0xff] }
 0x1b3   : > { %v3380_v28 = vpack.c.bf16 %v1408_v20, %v1400_v18  ;;  %v4567_v18 = vld [vmem:[%s4533_s16 + $0x10] sm:$0xff] }
 0x1b4   : > { %3361 = vmatpush1.bf16.msra.mxu0 %v3360_v30  ;;  %v3382_v30 = vpack.c.bf16 %v1425_v25, %v1417_v24  ;;  %v1005_v24 = vld [vmem:[#allocation8 + $0x128] sm:$0xff] }
 0x1b5   : > { %3489 = vmatpush1.bf16.msra.mxu1 %v3488_v31  ;;  %3363 = vmatprep.subr.bf16.mxu0 %v3362_v33  ;;  %v1416_v31 = vld [vmem:[#allocation8 + $0xe00] sm:$0xff]  ;;  %v1013_v25 = vld [vmem:[#allocation8 + $0x168] sm:$0xff] }
 0x1b6   : > { %3491 = vmatprep.subr.bf16.mxu1 %v3490_v37  ;;  %v1424_v33 = vld [vmem:[#allocation8 + $0xe40] sm:$0xff]  ;;  %v1433_v37 = vld [vmem:[#allocation8 + $0xe88] sm:$0xff]  ;;  %v3534_v27 = vpack.c.bf16 %v1013_v25, %v1005_v24 }
 0x1b7   : > { %v3384_v41 = vpack.c.bf16 %v1424_v33, %v1416_v31  ;;  %v1021_v31 = vld [vmem:[#allocation8 + $0x1a8] sm:$0xff] }
 0x1b8   : > { %3365 = vmatpush1.bf16.msra.mxu0 %v3364_v43  ;;  %v3386_v43 = vpack.c.bf16 %v1441_v38, %v1433_v37  ;;  %v1029_v33 = vld [vmem:[#allocation8 + $0x1e8] sm:$0xff]  ;;  %v1028_v37 = vld [vmem:[#allocation8 + $0x1e0] sm:$0xff] }
 0x1b9   : > { %3493 = vmatpush1.bf16.msra.mxu1 %v3492_v44  ;;  %3367 = vmatprep.subr.bf16.mxu0 %v3366_v45  ;;  %v1432_v44 = vld [vmem:[#allocation8 + $0xe80] sm:$0xff]  ;;  %v1037_v38 = vld [vmem:[#allocation8 + $0x228] sm:$0xff]  ;;  %v3540_v40 = vpack.c.bf16 %v1028_v37, %v1020_v36 }
 0x1ba   : > { %3495 = vmatprep.subr.bf16.mxu1 %v3494_v49  ;;  %v1440_v45 = vld [vmem:[#allocation8 + $0xec0] sm:$0xff]  ;;  %v1449_v49 = vld [vmem:[#allocation8 + $0xf08] sm:$0xff] }
 0x1bb   : > { %v3388_v53 = vpack.c.bf16 %v1440_v45, %v1432_v44  ;;  %v1053_v44 = vld [vmem:[#allocation8 + $0x2a8] sm:$0xff]  ;;  %v1188_v36 = vld [vmem:[#allocation8 + $0x6e0] sm:$0xff] }
 0x1bc   : > { %3369 = vmatpush1.bf16.msra.mxu0 %v3368_v55  ;;  %v3390_v55 = vpack.c.bf16 %v1457_v50, %v1449_v49  ;;  %v1061_v45 = vld [vmem:[#allocation8 + $0x2e8] sm:$0xff]  ;;  %v1060_v49 = vld [vmem:[#allocation8 + $0x2e0] sm:$0xff] }
 0x1bd   : > { %3497 = vmatpush1.bf16.msra.mxu1 %v3496_v56  ;;  %3371 = vmatprep.subr.bf16.mxu0 %v3370_v57  ;;  %v1448_v56 = vld [vmem:[#allocation8 + $0xf00] sm:$0xff]  ;;  %v1069_v50 = vld [vmem:[#allocation8 + $0x328] sm:$0xff]  ;;  %v3548_v52 = vpack.c.bf16 %v1060_v49, %v1052_v48 }
 0x1be   : > { %3499 = vmatprep.subr.bf16.mxu1 %v3498_v61  ;;  %v1456_v57 = vld [vmem:[#allocation8 + $0xf40] sm:$0xff]  ;;  %v1465_v61 = vld [vmem:[#allocation8 + $0xf88] sm:$0xff] }
 0x1bf   : > { %v3392_v1 = vpack.c.bf16 %v1456_v57, %v1448_v56  ;;  %v1085_v56 = vld [vmem:[#allocation8 + $0x3a8] sm:$0xff]  ;;  %v1220_v48 = vld [vmem:[#allocation8 + $0x7e0] sm:$0xff] }
 0x1c0   : > { %3373 = vmatpush1.bf16.msra.mxu0 %v3372_v3  ;;  %v3394_v3 = vpack.c.bf16 %v1473_v62, %v1465_v61  ;;  %v1093_v57 = vld [vmem:[#allocation8 + $0x3e8] sm:$0xff]  ;;  %v1092_v61 = vld [vmem:[#allocation8 + $0x3e0] sm:$0xff] }
 0x1c1   : > { %3501 = vmatpush1.bf16.msra.mxu1 %v3500_v4  ;;  %3375 = vmatprep.subr.bf16.mxu0 %v3374_v5  ;;  %v1464_v4 = vld [vmem:[#allocation8 + $0xf80] sm:$0xff]  ;;  %v1101_v62 = vld [vmem:[#allocation8 + $0x428] sm:$0xff]  ;;  %v3556_v0 = vpack.c.bf16 %v1092_v61, %v1084_v60 }
 0x1c2   : > { %3503 = vmatprep.subr.bf16.mxu1 %v3502_v9  ;;  %v1472_v5 = vld [vmem:[#allocation8 + $0xfc0] sm:$0xff]  ;;  %v973_v9 = vld [vmem:[#allocation8 + $0x28] sm:$0xff] }
 0x1c3   : > { %v3396_v11 = vpack.c.bf16 %v1472_v5, %v1464_v4  ;;  %v3526_v13 = vpack.c.bf16 %v981_v10, %v973_v9  ;;  %v1117_v4 = vld [vmem:[#allocation8 + $0x4a8] sm:$0xff]  ;;  %v1124_v9 = vld [vmem:[#allocation8 + $0x4e0] sm:$0xff] }
 0x1c4   : > { %3377 = vmatpush1.bf16.msra.mxu0 %v3376_v15  ;;  %v980_v15 = vld [vmem:[#allocation8 + $0x60] sm:$0xff]  ;;  %v1125_v5 = vld [vmem:[#allocation8 + $0x4e8] sm:$0xff] }
 0x1c5   : > { %3505 = vmatpush1.bf16.msra.mxu1 %v3504_v16  ;;  %3379 = vmatprep.subr.bf16.mxu0 %v3378_v17  ;;  %v989_v16 = vld [vmem:[#allocation8 + $0xa8] sm:$0xff]  ;;  %v3528_v20 = vpack.c.bf16 %v980_v15, %v972_v14  ;;  %v1132_v14 = vld [vmem:[#allocation8 + $0x520] sm:$0xff] }
 0x1c6   : > { %3507 = vmatprep.subr.bf16.mxu1 %v3506_v22  ;;  %v997_v17 = vld [vmem:[#allocation8 + $0xe8] sm:$0xff]  ;;  %v988_v22 = vld [vmem:[#allocation8 + $0xa0] sm:$0xff] }
 0x1c7   : > { %v3530_v21 = vpack.c.bf16 %v997_v17, %v989_v16  ;;  %v3532_v26 = vpack.c.bf16 %v996_v23, %v988_v22  ;;  %v1133_v10 = vld [vmem:[#allocation8 + $0x528] sm:$0xff]  ;;  %v1140_v15 = vld [vmem:[#allocation8 + $0x560] sm:$0xff] }
 0x1c8   : > { %3381 = vmatpush1.bf16.msra.mxu0 %v3380_v28  ;;  %v1004_v28 = vld [vmem:[#allocation8 + $0x120] sm:$0xff]  ;;  %v1149_v16 = vld [vmem:[#allocation8 + $0x5a8] sm:$0xff] }
 0x1c9   : > { %3509 = vmatpush1.bf16.msra.mxu1 %v3508_v29  ;;  %3383 = vmatprep.subr.bf16.mxu0 %v3382_v30  ;;  %v1012_v29 = vld [vmem:[#allocation8 + $0x160] sm:$0xff]  ;;  %v3927_v30 = vld [vmem:[%s4533_s16 + $0x8] sm:$0xff] }
 0x1ca   : > { %3511 = vmatprep.subr.bf16.mxu1 %v3510_v35  ;;  %v3536_v34 = vpack.c.bf16 %v1012_v29, %v1004_v28  ;;  %v3538_v35 = vpack.c.bf16 %v1029_v33, %v1021_v31  ;;  %v1157_v17 = vld [vmem:[#allocation8 + $0x5e8] sm:$0xff]  ;;  %v1148_v22 = vld [vmem:[#allocation8 + $0x5a0] sm:$0xff] }
 0x1cb   : > { %v1156_v23 = vld [vmem:[#allocation8 + $0x5e0] sm:$0xff]  ;;  %v1165_v24 = vld [vmem:[#allocation8 + $0x628] sm:$0xff] }
 0x1cc   : > { %3385 = vmatpush1.bf16.msra.mxu0 %v3384_v41  ;;  %v3542_v41 = vpack.c.bf16 %v1045_v39, %v1037_v38  ;;  %v1173_v25 = vld [vmem:[#allocation8 + $0x668] sm:$0xff]  ;;  %v1164_v28 = vld [vmem:[#allocation8 + $0x620] sm:$0xff] }
 0x1cd   : > { %3513 = vmatpush1.bf16.msra.mxu1 %v3512_v42  ;;  %3387 = vmatprep.subr.bf16.mxu0 %v3386_v43  ;;  %v1036_v42 = vld [vmem:[#allocation8 + $0x220] sm:$0xff]  ;;  %v1189_v31 = vld [vmem:[#allocation8 + $0x6e8] sm:$0xff] }
 0x1ce   : > { %3515 = vmatprep.subr.bf16.mxu1 %v3514_v47  ;;  %v1044_v43 = vld [vmem:[#allocation8 + $0x260] sm:$0xff]  ;;  %v3546_v47 = vpack.c.bf16 %v1061_v45, %v1053_v44  ;;  %v1197_v37 = vld [vmem:[#allocation8 + $0x728] sm:$0xff] }
 0x1cf   : > { %v3544_v46 = vpack.c.bf16 %v1044_v43, %v1036_v42  ;;  %v1172_v29 = vld [vmem:[#allocation8 + $0x660] sm:$0xff]  ;;  %v1205_v38 = vld [vmem:[#allocation8 + $0x768] sm:$0xff] }
 0x1d0   : > { %3389 = vmatpush1.bf16.msra.mxu0 %v3388_v53  ;;  %v3550_v53 = vpack.c.bf16 %v1077_v51, %v1069_v50  ;;  %v3576_v33 = vpack.c.bf16 %v1172_v29, %v1164_v28  ;;  %v1204_v42 = vld [vmem:[#allocation8 + $0x760] sm:$0xff]  ;;  %v1213_v43 = vld [vmem:[#allocation8 + $0x7a8] sm:$0xff] }
 0x1d1   : > { %3517 = vmatpush1.bf16.msra.mxu1 %v3516_v54  ;;  %3391 = vmatprep.subr.bf16.mxu0 %v3390_v55  ;;  %v1068_v54 = vld [vmem:[#allocation8 + $0x320] sm:$0xff]  ;;  %v1221_v44 = vld [vmem:[#allocation8 + $0x7e8] sm:$0xff] }
 0x1d2   : > { %3519 = vmatprep.subr.bf16.mxu1 %v3518_v59  ;;  %v1076_v55 = vld [vmem:[#allocation8 + $0x360] sm:$0xff]  ;;  %v3554_v59 = vpack.c.bf16 %v1093_v57, %v1085_v56  ;;  %v1229_v49 = vld [vmem:[#allocation8 + $0x828] sm:$0xff] }
 0x1d3   : > { %v3552_v58 = vpack.c.bf16 %v1076_v55, %v1068_v54  ;;  %v1237_v50 = vld [vmem:[#allocation8 + $0x868] sm:$0xff]  ;;  %v1236_v54 = vld [vmem:[#allocation8 + $0x860] sm:$0xff] }
 0x1d4   : > { %3393 = vmatpush1.bf16.msra.mxu0 %v3392_v1  ;;  %v3558_v1 = vpack.c.bf16 %v1109_v63, %v1101_v62  ;;  %v1245_v55 = vld [vmem:[#allocation8 + $0x8a8] sm:$0xff]  ;;  %v1252_v60 = vld [vmem:[#allocation8 + $0x8e0] sm:$0xff] }
 0x1d5   : > { %3521 = vmatpush1.bf16.msra.mxu1 %v3520_v2  ;;  %3395 = vmatprep.subr.bf16.mxu0 %v3394_v3  ;;  %v1100_v2 = vld [vmem:[#allocation8 + $0x420] sm:$0xff]  ;;  %v1253_v56 = vld [vmem:[#allocation8 + $0x8e8] sm:$0xff] }
 0x1d6   : > { %3523 = vmatprep.subr.bf16.mxu1 %v3522_v7  ;;  %v1108_v3 = vld [vmem:[#allocation8 + $0x460] sm:$0xff]  ;;  %v3562_v7 = vpack.c.bf16 %v1125_v5, %v1117_v4  ;;  %v1261_v61 = vld [vmem:[#allocation8 + $0x928] sm:$0xff] }
 0x1d7   : > { %v3560_v6 = vpack.c.bf16 %v1108_v3, %v1100_v2  ;;  %v1269_v62 = vld [vmem:[#allocation8 + $0x968] sm:$0xff]  ;;  %v1268_v2 = vld [vmem:[#allocation8 + $0x960] sm:$0xff] }
 0x1d8   : > { %3397 = vmatpush1.bf16.msra.mxu0 %v3396_v11  ;;  %v1141_v11 = vld [vmem:[#allocation8 + $0x568] sm:$0xff] }
 0x1d9   : > { %3525 = vmatpush1.bf16.msra.mxu1 %v3524_v12  ;;  %3527 = vmatprep.subr.bf16.mxu0 %v3526_v13  ;;  %v3564_v12 = vpack.c.bf16 %v1124_v9, %v1116_v8  ;;  %v3566_v13 = vpack.c.bf16 %v1141_v11, %v1133_v10  ;;  %v1277_v3 = vld [vmem:[#allocation8 + $0x9a8] sm:$0xff]  ;;  %v1284_v8 = vld [vmem:[#allocation8 + $0x9e0] sm:$0xff] }
 0x1da   : > { %v1285_v4 = vld [vmem:[#allocation8 + $0x9e8] sm:$0xff] }
 0x1db   : > { %1658 = vmatmul.mubr.f32.vlgmr.msra.gmra.mrb[2].mxu0 %v4567_v18  ;;  %v1293_v9 = vld [vmem:[#allocation8 + $0xa28] sm:$0xff] }
 0x1dc   : > { %1800 = vmatmul.mubr.f32.vlgmr.msra.gmra.mrb[2].mxu1 %v4567_v18  ;;  %3529 = vmatpush1.bf16.msra.mxu0 %v3528_v20  ;;  %v3568_v20 = vpack.c.bf16 %v1140_v15, %v1132_v14  ;;  %v1301_v10 = vld [vmem:[#allocation8 + $0xa68] sm:$0xff] }
 0x1dd   : > { %3531 = vmatprep.subr.bf16.mxu0 %v3530_v21  ;;  %1870 = vmatprep.mubr.f32.mxu0 %v3927_v30  ;;  %v3570_v21 = vpack.c.bf16 %v1157_v17, %v1149_v16  ;;  %v3606_v11 = vpack.c.bf16 %v1301_v10, %v1293_v9  ;;  %v1317_v14 = vld [vmem:[#allocation8 + $0xae8] sm:$0xff]  ;;  %v1308_v17 = vld [vmem:[#allocation8 + $0xaa0] sm:$0xff] }
 0x1de   : > { %2012 = vmatprep.mubr.f32.mxu1 %v3927_v30  ;;  %v1181_v30 = vld [vmem:[#allocation8 + $0x6a8] sm:$0xff] }
 0x1df   : > { %v1341_v28 = vld [vmem:[#allocation8 + $0xba8] sm:$0xff] }
 0x1e0   : > { %3533 = vmatpush1.bf16.msra.mxu0 %v3532_v26  ;;  %v3572_v26 = vpack.c.bf16 %v1156_v23, %v1148_v22  ;;  %v1333_v22 = vld [vmem:[#allocation8 + $0xb68] sm:$0xff] }
 0x1e1   : > { %3535 = vmatprep.subr.bf16.mxu0 %v3534_v27  ;;  %v3574_v27 = vpack.c.bf16 %v1173_v25, %v1165_v24  ;;  %v1324_v25 = vld [vmem:[#allocation8 + $0xb20] sm:$0xff]  ;;  %v1349_v29 = vld [vmem:[#allocation8 + $0xbe8] sm:$0xff] }
 0x1e2   : > { %v1429_v9 = vld [vmem:[#allocation8 + $0xe68] sm:$0xff] }
 0x1e4   : > { %3537 = vmatpush1.bf16.msra.mxu0 %v3536_v34  ;;  %v3578_v34 = vpack.c.bf16 %v1189_v31, %v1181_v30 }
 0x1e5   : > { %3539 = vmatprep.subr.bf16.mxu0 %v3538_v35  ;;  %v1180_v35 = vld [vmem:[#allocation8 + $0x6a0] sm:$0xff] }
 0x1e6   : > { %v3580_v39 = vpack.c.bf16 %v1188_v36, %v1180_v35  ;;  %v3618_v35 = vpack.c.bf16 %v1349_v29, %v1341_v28  ;;  %v1340_v36 = vld [vmem:[#allocation8 + $0xba0] sm:$0xff] }
 0x1e7   : > { %v1436_v28 = vld [vmem:[#allocation8 + $0xea0] sm:$0xff] }
 0x1e8   : > { %3541 = vmatpush1.bf16.msra.mxu0 %v3540_v40  ;;  %v3582_v40 = vpack.c.bf16 %v1205_v38, %v1197_v37  ;;  %v1348_v37 = vld [vmem:[#allocation8 + $0xbe0] sm:$0xff]  ;;  %v1357_v38 = vld [vmem:[#allocation8 + $0xc28] sm:$0xff] }
 0x1e9   : > { %3543 = vmatprep.subr.bf16.mxu0 %v3542_v41  ;;  %v1196_v41 = vld [vmem:[#allocation8 + $0x720] sm:$0xff] }
 0x1ea   : > { %v3584_v45 = vpack.c.bf16 %v1204_v42, %v1196_v41  ;;  %v1356_v42 = vld [vmem:[#allocation8 + $0xc20] sm:$0xff] }
 0x1ec   : > { %3545 = vmatpush1.bf16.msra.mxu0 %v3544_v46  ;;  %v3586_v46 = vpack.c.bf16 %v1221_v44, %v1213_v43  ;;  %v1364_v43 = vld [vmem:[#allocation8 + $0xc60] sm:$0xff]  ;;  %v1373_v44 = vld [vmem:[#allocation8 + $0xca8] sm:$0xff] }
 0x1ed   : > { %3547 = vmatprep.subr.bf16.mxu0 %v3546_v47  ;;  %v1212_v47 = vld [vmem:[#allocation8 + $0x7a0] sm:$0xff] }
 0x1ee   : > { %v3588_v51 = vpack.c.bf16 %v1220_v48, %v1212_v47  ;;  %v1372_v48 = vld [vmem:[#allocation8 + $0xca0] sm:$0xff] }
 0x1f0   : > { %3549 = vmatpush1.bf16.msra.mxu0 %v3548_v52  ;;  %v3590_v52 = vpack.c.bf16 %v1237_v50, %v1229_v49  ;;  %v1380_v49 = vld [vmem:[#allocation8 + $0xce0] sm:$0xff]  ;;  %v1389_v50 = vld [vmem:[#allocation8 + $0xd28] sm:$0xff] }
 0x1f1   : > { %3551 = vmatprep.subr.bf16.mxu0 %v3550_v53  ;;  %v1228_v53 = vld [vmem:[#allocation8 + $0x820] sm:$0xff] }
 0x1f2   : > { %v3592_v57 = vpack.c.bf16 %v1236_v54, %v1228_v53  ;;  %v1388_v54 = vld [vmem:[#allocation8 + $0xd20] sm:$0xff] }
 0x1f4   : > { %3553 = vmatpush1.bf16.msra.mxu0 %v3552_v58  ;;  %v3594_v58 = vpack.c.bf16 %v1253_v56, %v1245_v55  ;;  %v1396_v55 = vld [vmem:[#allocation8 + $0xd60] sm:$0xff]  ;;  %v1405_v56 = vld [vmem:[#allocation8 + $0xda8] sm:$0xff] }
 0x1f5   : > { %3555 = vmatprep.subr.bf16.mxu0 %v3554_v59  ;;  %v1244_v59 = vld [vmem:[#allocation8 + $0x8a0] sm:$0xff] }
 0x1f6   : > { %v3596_v63 = vpack.c.bf16 %v1252_v60, %v1244_v59  ;;  %v1412_v59 = vld [vmem:[#allocation8 + $0xde0] sm:$0xff]  ;;  %v975_v60 = vld [vmem:[#allocation8 + $0x38] sm:$0xff] }
 0x1f8   : > { %3557 = vmatpush1.bf16.msra.mxu0 %v3556_v0  ;;  %v3598_v0 = vpack.c.bf16 %v1269_v62, %v1261_v61  ;;  %v983_v61 = vld [vmem:[#allocation8 + $0x78] sm:$0xff]  ;;  %v3632_v62 = vpack.c.bf16 %v1396_v55, %v1388_v54 }
 0x1f9   : > { %3559 = vmatprep.subr.bf16.mxu0 %v3558_v1  ;;  %v1260_v1 = vld [vmem:[#allocation8 + $0x920] sm:$0xff] }
 0x1fa   : > { %v3600_v5 = vpack.c.bf16 %v1268_v2, %v1260_v1  ;;  %v974_v1 = vld [vmem:[#allocation8 + $0x30] sm:$0xff] }
 0x1fb   : > { %v982_v2 = vld [vmem:[#allocation8 + $0x70] sm:$0xff] }
 0x1fc   : > { %3561 = vmatpush1.bf16.msra.mxu0 %v3560_v6  ;;  %v3602_v6 = vpack.c.bf16 %v1285_v4, %v1277_v3  ;;  %v991_v3 = vld [vmem:[#allocation8 + $0xb8] sm:$0xff] }
 0x1fd   : > { %3563 = vmatprep.subr.bf16.mxu0 %v3562_v7  ;;  %v1276_v7 = vld [vmem:[#allocation8 + $0x9a0] sm:$0xff] }
 0x200   : > { %3565 = vmatpush1.bf16.msra.mxu0 %v3564_v12  ;;  %v1292_v12 = vld [vmem:[#allocation8 + $0xa20] sm:$0xff] }
 0x201   : > { %3567 = vmatprep.subr.bf16.mxu0 %v3566_v13  ;;  %v1309_v13 = vld [vmem:[#allocation8 + $0xaa8] sm:$0xff] }
 0x202   : > { %v3610_v16 = vpack.c.bf16 %v1317_v14, %v1309_v13  ;;  %v1420_v13 = vld [vmem:[#allocation8 + $0xe20] sm:$0xff] }
 0x204   : > { %3569 = vmatpush1.bf16.msra.mxu0 %v3568_v20  ;;  %v1316_v20 = vld [vmem:[#allocation8 + $0xae0] sm:$0xff] }
 0x205   : > { %3571 = vmatprep.subr.bf16.mxu0 %v3570_v21  ;;  %v1325_v21 = vld [vmem:[#allocation8 + $0xb28] sm:$0xff]  ;;  %v3612_v23 = vpack.c.bf16 %v1316_v20, %v1308_v17  ;;  %v1428_v20 = vld [vmem:[#allocation8 + $0xe60] sm:$0xff] }
 0x206   : > { %v3614_v24 = vpack.c.bf16 %v1333_v22, %v1325_v21  ;;  %v1023_v21 = vld [vmem:[#allocation8 + $0x1b8] sm:$0xff] }
 0x207   : > { %v1031_v22 = vld [vmem:[#allocation8 + $0x1f8] sm:$0xff] }
 0x208   : > { %3573 = vmatpush1.bf16.msra.mxu0 %v3572_v26  ;;  %v1332_v26 = vld [vmem:[#allocation8 + $0xb60] sm:$0xff]  ;;  %v3666_v29 = vpack.c.bf16 %v1031_v22, %v1023_v21  ;;  %v1118_v22 = vld [vmem:[#allocation8 + $0x4b0] sm:$0xff] }
 0x209   : > { %3575 = vmatprep.subr.bf16.mxu0 %v3574_v27 }
 0x20c   : > { %3577 = vmatpush1.bf16.msra.mxu0 %v3576_v33 }
 0x20d   : > { %3579 = vmatprep.subr.bf16.mxu0 %v3578_v34  ;;  %v3616_v34 = vpack.c.bf16 %v1332_v26, %v1324_v25  ;;  %v3640_v26 = vpack.c.bf16 %v1428_v20, %v1420_v13 }
 0x210   : > { %3581 = vmatpush1.bf16.msra.mxu0 %v3580_v39  ;;  %v1365_v39 = vld [vmem:[#allocation8 + $0xc68] sm:$0xff] }
 0x211   : > { %3583 = vmatprep.subr.bf16.mxu0 %v3582_v40  ;;  %v3620_v40 = vpack.c.bf16 %v1348_v37, %v1340_v36  ;;  %v3622_v41 = vpack.c.bf16 %v1365_v39, %v1357_v38  ;;  %v1444_v37 = vld [vmem:[#allocation8 + $0xee0] sm:$0xff]  ;;  %v1039_v38 = vld [vmem:[#allocation8 + $0x238] sm:$0xff] }
 0x212   : > { %v1047_v39 = vld [vmem:[#allocation8 + $0x278] sm:$0xff] }
 0x214   : > { %3585 = vmatpush1.bf16.msra.mxu0 %v3584_v45  ;;  %v1381_v45 = vld [vmem:[#allocation8 + $0xce8] sm:$0xff] }
 0x215   : > { %3587 = vmatprep.subr.bf16.mxu0 %v3586_v46  ;;  %v3624_v46 = vpack.c.bf16 %v1364_v43, %v1356_v42  ;;  %v3626_v47 = vpack.c.bf16 %v1381_v45, %v1373_v44  ;;  %v3644_v43 = vpack.c.bf16 %v1444_v37, %v1436_v28  ;;  %v1452_v44 = vld [vmem:[#allocation8 + $0xf20] sm:$0xff]  ;;  %v3670_v45 = vpack.c.bf16 %v1047_v39, %v1039_v38  ;;  %v1134_v28 = vld [vmem:[#allocation8 + $0x530] sm:$0xff] }
 0x216   : > { %v1150_v38 = vld [vmem:[#allocation8 + $0x5b0] sm:$0xff] }
 0x217   : > { %v1158_v39 = vld [vmem:[#allocation8 + $0x5f0] sm:$0xff] }
 0x218   : > { %3589 = vmatpush1.bf16.msra.mxu0 %v3588_v51  ;;  %v1397_v51 = vld [vmem:[#allocation8 + $0xd68] sm:$0xff] }
 0x219   : > { %3591 = vmatprep.subr.bf16.mxu0 %v3590_v52  ;;  %v3628_v52 = vpack.c.bf16 %v1380_v49, %v1372_v48  ;;  %v3630_v53 = vpack.c.bf16 %v1397_v51, %v1389_v50  ;;  %v1460_v49 = vld [vmem:[#allocation8 + $0xf60] sm:$0xff]  ;;  %v1055_v50 = vld [vmem:[#allocation8 + $0x2b8] sm:$0xff] }
 0x21a   : > { %v1063_v51 = vld [vmem:[#allocation8 + $0x2f8] sm:$0xff]  ;;  %v3648_v55 = vpack.c.bf16 %v1460_v49, %v1452_v44  ;;  %v1166_v44 = vld [vmem:[#allocation8 + $0x630] sm:$0xff] }
 0x21b   : > { %1871 = vmatmul.mubr.f32.vlgmr.msra.gmra.mrb[4].mxu0 %v4557_v19  ;;  %v3604_v19 = vpack.c.bf16 %v1284_v8, %v1276_v7  ;;  %v990_v7 = vld [vmem:[#allocation8 + $0xb0] sm:$0xff] }
 0x21c   : > { %3593 = vmatpush1.bf16.msra.mxu0 %v3592_v57  ;;  %1941 = vmatprep.mubr.f32.mxu0 %v4561_v32  ;;  %v1300_v32 = vld [vmem:[#allocation8 + $0xa60] sm:$0xff]  ;;  %v1413_v57 = vld [vmem:[#allocation8 + $0xde8] sm:$0xff]  ;;  %v998_v8 = vld [vmem:[#allocation8 + $0xf0] sm:$0xff] }
 0x21d   : > { %3595 = vmatprep.subr.bf16.mxu0 %v3594_v58  ;;  %v3608_v15 = vpack.c.bf16 %v1300_v32, %v1292_v12  ;;  %v1404_v58 = vld [vmem:[#allocation8 + $0xda0] sm:$0xff]  ;;  %v3634_v4 = vpack.c.bf16 %v1413_v57, %v1405_v56  ;;  %v3660_v12 = vpack.c.bf16 %v998_v8, %v990_v7  ;;  %v3674_v57 = vpack.c.bf16 %v1063_v51, %v1055_v50  ;;  %v1182_v50 = vld [vmem:[#allocation8 + $0x6b0] sm:$0xff] }
 0x21e   : > { %v3636_v32 = vpack.c.bf16 %v1412_v59, %v1404_v58  ;;  %v1468_v56 = vld [vmem:[#allocation8 + $0xfa0] sm:$0xff]  ;;  %v1054_v58 = vld [vmem:[#allocation8 + $0x2b0] sm:$0xff] }
 0x21f   : > { %v1062_v59 = vld [vmem:[#allocation8 + $0x2f0] sm:$0xff] }
 0x220   : > { %3597 = vmatpush1.bf16.msra.mxu0 %v3596_v63  ;;  %v1421_v63 = vld [vmem:[#allocation8 + $0xe28] sm:$0xff]  ;;  %v1190_v51 = vld [vmem:[#allocation8 + $0x6f0] sm:$0xff] }
 0x221   : > { %3599 = vmatprep.subr.bf16.mxu0 %v3598_v0  ;;  %v3654_v0 = vpack.c.bf16 %v983_v61, %v975_v60  ;;  %v3638_v17 = vpack.c.bf16 %v1429_v9, %v1421_v63  ;;  %v1476_v61 = vld [vmem:[#allocation8 + $0xfe0] sm:$0xff]  ;;  %v1079_v63 = vld [vmem:[#allocation8 + $0x378] sm:$0xff]  ;;  %v1086_v9 = vld [vmem:[#allocation8 + $0x3b0] sm:$0xff] }
 0x223   : > { %3655 = vmatprep.subr.bf16.mxu1 %v3654_v0  ;;  %v3676_v0 = vpack.c.bf16 %v1062_v59, %v1054_v58  ;;  %v1215_v58 = vld [vmem:[#allocation8 + $0x7b8] sm:$0xff] }
 0x224   : > { %3601 = vmatpush1.bf16.msra.mxu0 %v3600_v5  ;;  %v3656_v5 = vpack.c.bf16 %v982_v2, %v974_v1  ;;  %v3652_v1 = vpack.c.bf16 %v1476_v61, %v1468_v56  ;;  %v1198_v56 = vld [vmem:[#allocation8 + $0x730] sm:$0xff]  ;;  %v1223_v59 = vld [vmem:[#allocation8 + $0x7f8] sm:$0xff] }
 0x225   : > { %3603 = vmatprep.subr.bf16.mxu0 %v3602_v6  ;;  %v999_v6 = vld [vmem:[#allocation8 + $0xf8] sm:$0xff]  ;;  %v3714_v61 = vpack.c.bf16 %v1223_v59, %v1215_v58  ;;  %v1358_v59 = vld [vmem:[#allocation8 + $0xc30] sm:$0xff] }
 0x226   : > { %v3658_v10 = vpack.c.bf16 %v999_v6, %v991_v3  ;;  %3657 = vmatpush1.bf16.msra.mxu1 %v3656_v5  ;;  %v1070_v3 = vld [vmem:[#allocation8 + $0x330] sm:$0xff]  ;;  %v1087_v5 = vld [vmem:[#allocation8 + $0x3b8] sm:$0xff] }
 0x227   : > { %v1095_v6 = vld [vmem:[#allocation8 + $0x3f8] sm:$0xff] }
 0x228   : > { %3605 = vmatpush1.bf16.msra.mxu0 %v3604_v19  ;;  %v1007_v19 = vld [vmem:[#allocation8 + $0x138] sm:$0xff]  ;;  %3659 = vmatprep.subr.bf16.mxu1 %v3658_v10  ;;  %v3682_v8 = vpack.c.bf16 %v1095_v6, %v1087_v5  ;;  %v1094_v10 = vld [vmem:[#allocation8 + $0x3f0] sm:$0xff] }
 0x229   : > { %3607 = vmatprep.subr.bf16.mxu0 %v3606_v11  ;;  %v1015_v11 = vld [vmem:[#allocation8 + $0x178] sm:$0xff]  ;;  %v1238_v5 = vld [vmem:[#allocation8 + $0x870] sm:$0xff] }
 0x22a   : > { %v3662_v14 = vpack.c.bf16 %v1015_v11, %v1007_v19  ;;  %3661 = vmatpush1.bf16.msra.mxu1 %v3660_v12  ;;  %v4229_v19 = vmov 0.0   ;;  %v1103_v11 = vld [vmem:[#allocation8 + $0x438] sm:$0xff] }
 0x22b   : > { %v1111_v12 = vld [vmem:[#allocation8 + $0x478] sm:$0xff] }
 0x22c   : > { %3609 = vmatpush1.bf16.msra.mxu0 %v3608_v15  ;;  %v1006_v15 = vld [vmem:[#allocation8 + $0x130] sm:$0xff]  ;;  %3663 = vmatprep.subr.bf16.mxu1 %v3662_v14  ;;  %v3686_v13 = vpack.c.bf16 %v1111_v12, %v1103_v11  ;;  %v1247_v6 = vld [vmem:[#allocation8 + $0x8b8] sm:$0xff] }
 0x22d   : > { %3611 = vmatprep.subr.bf16.mxu0 %v3610_v16  ;;  %v1014_v16 = vld [vmem:[#allocation8 + $0x170] sm:$0xff]  ;;  %v1263_v12 = vld [vmem:[#allocation8 + $0x938] sm:$0xff] }
 0x22e   : > { %v4574_v27 = vpop.f32.mrb[0].mxu0  ;;  %v3664_v25 = vpack.c.bf16 %v1014_v16, %v1006_v15  ;;  %v1102_v14 = vld [vmem:[#allocation8 + $0x430] sm:$0xff]  ;;  %v1119_v16 = vld [vmem:[#allocation8 + $0x4b8] sm:$0xff] }
 0x22f   : > { %v4576_v30 = vpop.f32.mrb[0].mxu1  ;;  %v4578_v31 = vpop.f32.mrb[1].mxu0  ;;  %v1110_v15 = vld [vmem:[#allocation8 + $0x470] sm:$0xff] }
 0x230   : > { %v4580_v33 = vpop.f32.mrb[1].mxu1  ;;  %3613 = vmatpush1.bf16.msra.mxu0 %v3612_v23  ;;  %v1437_v23 = vld [vmem:[#allocation8 + $0xea8] sm:$0xff]  ;;  %3665 = vmatpush1.bf16.msra.mxu1 %v3664_v25  ;;  %v3688_v20 = vpack.c.bf16 %v1110_v15, %v1102_v14  ;;  %v1254_v11 = vld [vmem:[#allocation8 + $0x8f0] sm:$0xff]  ;;  %v3929_v15 = vld [vmem:[%s4533_s16 + $0x18] sm:$0xff] }
 0x231   : > { %3615 = vmatprep.subr.bf16.mxu0 %v3614_v24  ;;  %v1445_v24 = vld [vmem:[#allocation8 + $0xee8] sm:$0xff]  ;;  %3667 = vmatprep.subr.bf16.mxu1 %v3666_v29  ;;  %v1142_v29 = vld [vmem:[#allocation8 + $0x570] sm:$0xff] }
 0x232   : > { %v3642_v36 = vpack.c.bf16 %v1445_v24, %v1437_v23  ;;  %v1126_v23 = vld [vmem:[#allocation8 + $0x4f0] sm:$0xff]  ;;  %v1135_v24 = vld [vmem:[#allocation8 + $0x538] sm:$0xff] }
 0x233   : > { %v3692_v25 = vpack.c.bf16 %v1126_v23, %v1118_v22  ;;  %v1287_v22 = vld [vmem:[#allocation8 + $0x9f8] sm:$0xff] }
 0x234   : > { %3617 = vmatpush1.bf16.msra.mxu0 %v3616_v34  ;;  %v1022_v34 = vld [vmem:[#allocation8 + $0x1b0] sm:$0xff] }
 0x235   : > { %3619 = vmatprep.subr.bf16.mxu0 %v3618_v35  ;;  %v1030_v35 = vld [vmem:[#allocation8 + $0x1f0] sm:$0xff] }
 0x236   : > { %v3668_v42 = vpack.c.bf16 %v1030_v35, %v1022_v34  ;;  %v1151_v34 = vld [vmem:[#allocation8 + $0x5b8] sm:$0xff] }
 0x237   : > { %v1159_v35 = vld [vmem:[#allocation8 + $0x5f8] sm:$0xff] }
 0x238   : > { %3621 = vmatpush1.bf16.msra.mxu0 %v3620_v40  ;;  %v1453_v40 = vld [vmem:[#allocation8 + $0xf28] sm:$0xff]  ;;  %3669 = vmatpush1.bf16.msra.mxu1 %v3668_v42  ;;  %v3698_v37 = vpack.c.bf16 %v1159_v35, %v1151_v34  ;;  %v3700_v42 = vpack.c.bf16 %v1158_v39, %v1150_v38  ;;  %v1294_v35 = vld [vmem:[#allocation8 + $0xa30] sm:$0xff]  ;;  %v1319_v38 = vld [vmem:[#allocation8 + $0xaf8] sm:$0xff] }
 0x239   : > { %3623 = vmatprep.subr.bf16.mxu0 %v3622_v41  ;;  %v1461_v41 = vld [vmem:[#allocation8 + $0xf68] sm:$0xff]  ;;  %3671 = vmatprep.subr.bf16.mxu1 %v3670_v45  ;;  %v1174_v45 = vld [vmem:[#allocation8 + $0x670] sm:$0xff] }
 0x23a   : > { %v3646_v48 = vpack.c.bf16 %v1461_v41, %v1453_v40  ;;  %v1167_v40 = vld [vmem:[#allocation8 + $0x638] sm:$0xff] }
 0x23b   : > { %v1175_v41 = vld [vmem:[#allocation8 + $0x678] sm:$0xff] }
 0x23c   : > { %3625 = vmatpush1.bf16.msra.mxu0 %v3624_v46  ;;  %v1038_v46 = vld [vmem:[#allocation8 + $0x230] sm:$0xff] }
 0x23d   : > { %3627 = vmatprep.subr.bf16.mxu0 %v3626_v47  ;;  %v1046_v47 = vld [vmem:[#allocation8 + $0x270] sm:$0xff] }
 0x23e   : > { %v3672_v54 = vpack.c.bf16 %v1046_v47, %v1038_v46  ;;  %v1183_v46 = vld [vmem:[#allocation8 + $0x6b8] sm:$0xff] }
 0x23f   : > { %v1191_v47 = vld [vmem:[#allocation8 + $0x6f8] sm:$0xff] }
 0x240   : > { %3629 = vmatpush1.bf16.msra.mxu0 %v3628_v52  ;;  %v1469_v52 = vld [vmem:[#allocation8 + $0xfa8] sm:$0xff]  ;;  %3673 = vmatpush1.bf16.msra.mxu1 %v3672_v54  ;;  %v3706_v49 = vpack.c.bf16 %v1191_v47, %v1183_v46  ;;  %v3708_v54 = vpack.c.bf16 %v1190_v51, %v1182_v50  ;;  %v1326_v47 = vld [vmem:[#allocation8 + $0xb30] sm:$0xff]  ;;  %v1351_v50 = vld [vmem:[#allocation8 + $0xbf8] sm:$0xff] }
 0x241   : > { %3631 = vmatprep.subr.bf16.mxu0 %v3630_v53  ;;  %v1477_v53 = vld [vmem:[#allocation8 + $0xfe8] sm:$0xff]  ;;  %3675 = vmatprep.subr.bf16.mxu1 %v3674_v57  ;;  %v1206_v57 = vld [vmem:[#allocation8 + $0x770] sm:$0xff] }
 0x242   : > { %v3650_v60 = vpack.c.bf16 %v1477_v53, %v1469_v52  ;;  %v1199_v52 = vld [vmem:[#allocation8 + $0x738] sm:$0xff] }
 0x243   : > { %v1207_v53 = vld [vmem:[#allocation8 + $0x778] sm:$0xff] }
 0x244   : > { %3633 = vmatpush1.bf16.msra.mxu0 %v3632_v62  ;;  %v1071_v62 = vld [vmem:[#allocation8 + $0x338] sm:$0xff]  ;;  %3677 = vmatpush1.bf16.msra.mxu1 %v3676_v0 }
 0x245   : > { %3635 = vmatprep.subr.bf16.mxu0 %v3634_v4  ;;  %v3678_v2 = vpack.c.bf16 %v1079_v63, %v1071_v62  ;;  %v1078_v4 = vld [vmem:[#allocation8 + $0x370] sm:$0xff]  ;;  %v1231_v0 = vld [vmem:[#allocation8 + $0x838] sm:$0xff] }
 0x246   : > { %v3680_v7 = vpack.c.bf16 %v1078_v4, %v1070_v3  ;;  %v1214_v62 = vld [vmem:[#allocation8 + $0x7b0] sm:$0xff] }
 0x247   : > { %3679 = vmatprep.subr.bf16.mxu1 %v3678_v2  ;;  %v1222_v63 = vld [vmem:[#allocation8 + $0x7f0] sm:$0xff] }
 0x248   : > { %3637 = vmatpush1.bf16.msra.mxu0 %v3636_v32  ;;  %3681 = vmatpush1.bf16.msra.mxu1 %v3680_v7  ;;  %v3684_v32 = vpack.c.bf16 %v1094_v10, %v1086_v9  ;;  %v3716_v2 = vpack.c.bf16 %v1222_v63, %v1214_v62  ;;  %v1230_v4 = vld [vmem:[#allocation8 + $0x830] sm:$0xff]  ;;  %v1255_v7 = vld [vmem:[#allocation8 + $0x8f8] sm:$0xff] }
 0x249   : > { %3639 = vmatprep.subr.bf16.mxu0 %v3638_v17  ;;  %3683 = vmatprep.subr.bf16.mxu1 %v3682_v8  ;;  %v1127_v17 = vld [vmem:[#allocation8 + $0x4f8] sm:$0xff]  ;;  %v3720_v8 = vpack.c.bf16 %v1238_v5, %v1230_v4  ;;  %v3722_v9 = vpack.c.bf16 %v1255_v7, %v1247_v6  ;;  %v1246_v10 = vld [vmem:[#allocation8 + $0x8b0] sm:$0xff] }
 0x24a   : > { %v3690_v21 = vpack.c.bf16 %v1127_v17, %v1119_v16  ;;  %v3724_v14 = vpack.c.bf16 %v1254_v11, %v1246_v10  ;;  %v1262_v17 = vld [vmem:[#allocation8 + $0x930] sm:$0xff]  ;;  %v1383_v62 = vld [vmem:[#allocation8 + $0xcf8] sm:$0xff] }
 0x24b   : > { %v1391_v4 = vld [vmem:[#allocation8 + $0xd38] sm:$0xff] }
 0x24c   : > { %3641 = vmatpush1.bf16.msra.mxu0 %v3640_v26  ;;  %3685 = vmatpush1.bf16.msra.mxu1 %v3684_v32  ;;  %v1271_v32 = vld [vmem:[#allocation8 + $0x978] sm:$0xff] }
 0x24d   : > { %3643 = vmatprep.subr.bf16.mxu0 %v3642_v36  ;;  %3687 = vmatprep.subr.bf16.mxu1 %v3686_v13  ;;  %v3696_v36 = vpack.c.bf16 %v1142_v29, %v1134_v28  ;;  %v3928_v13 = vld [vmem:[%s4533_s16] sm:$0xff]  ;;  %v3726_v16 = vpack.c.bf16 %v1271_v32, %v1263_v12  ;;  %v1303_v28 = vld [vmem:[#allocation8 + $0xa78] sm:$0xff] }
 0x24e   : > { %v1399_v5 = vld [vmem:[#allocation8 + $0xd78] sm:$0xff] }
 0x24f   : > { %v3758_v7 = vpack.c.bf16 %v1399_v5, %v1391_v4  ;;  %v1407_v11 = vld [vmem:[#allocation8 + $0xdb8] sm:$0xff] }
 0x250   : > { %3645 = vmatpush1.bf16.msra.mxu0 %v3644_v43  ;;  %3689 = vmatpush1.bf16.msra.mxu1 %v3688_v20  ;;  %v3702_v43 = vpack.c.bf16 %v1175_v41, %v1167_v40  ;;  %v1270_v20 = vld [vmem:[#allocation8 + $0x970] sm:$0xff]  ;;  %v1415_v12 = vld [vmem:[#allocation8 + $0xdf8] sm:$0xff] }
 0x251   : > { %3647 = vmatprep.subr.bf16.mxu0 %v3646_v48  ;;  %3691 = vmatprep.subr.bf16.mxu1 %v3690_v21  ;;  %v3704_v48 = vpack.c.bf16 %v1174_v45, %v1166_v44  ;;  %v1279_v21 = vld [vmem:[#allocation8 + $0x9b8] sm:$0xff]  ;;  %v3728_v23 = vpack.c.bf16 %v1270_v20, %v1262_v17  ;;  %v1310_v41 = vld [vmem:[#allocation8 + $0xab0] sm:$0xff] }
 0x252   : > { %v1335_v44 = vld [vmem:[#allocation8 + $0xb78] sm:$0xff] }
 0x253   : > { %v1423_v20 = vld [vmem:[#allocation8 + $0xe38] sm:$0xff] }
 0x254   : > { %3649 = vmatpush1.bf16.msra.mxu0 %v3648_v55  ;;  %3693 = vmatpush1.bf16.msra.mxu1 %v3692_v25  ;;  %v3710_v55 = vpack.c.bf16 %v1207_v53, %v1199_v52  ;;  %v1286_v25 = vld [vmem:[#allocation8 + $0x9f0] sm:$0xff] }
 0x255   : > { %3651 = vmatprep.subr.bf16.mxu0 %v3650_v60  ;;  %v3712_v60 = vpack.c.bf16 %v1206_v57, %v1198_v56  ;;  %v1342_v53 = vld [vmem:[#allocation8 + $0xbb0] sm:$0xff]  ;;  %v1367_v56 = vld [vmem:[#allocation8 + $0xc78] sm:$0xff] }
 0x258   : > { %3653 = vmatpush1.bf16.msra.mxu0 %v3652_v1  ;;  %v1239_v1 = vld [vmem:[#allocation8 + $0x878] sm:$0xff] }
 0x259   : > { %2974 = vmatprep.subr.mxu0 %v4229_v19  ;;  %v3718_v3 = vpack.c.bf16 %v1239_v1, %v1231_v0  ;;  %v1374_v1 = vld [vmem:[#allocation8 + $0xcb0] sm:$0xff] }
 0x25b   : > { %1942 = vmatmul.mubr.f32.vlgmr.msra.gmra.mrb[4].mxu0 %v4567_v18  ;;  %v1143_v18 = vld [vmem:[#allocation8 + $0x578] sm:$0xff] }
 0x25c   : > { %2976 = vmatprep.mubr.msk.f32.mxu0 %vm4230_vm0, %v4229_v19  ;;  %v3694_v26 = vpack.c.bf16 %v1143_v18, %v1135_v24  ;;  %v3730_v24 = vpack.c.bf16 %v1287_v22, %v1279_v21  ;;  %v1278_v18 = vld [vmem:[#allocation8 + $0x9b0] sm:$0xff]  ;;  %v1431_v21 = vld [vmem:[#allocation8 + $0xe78] sm:$0xff]  ;;  %v658_v22 = vld [vmem:[#allocation10] sm:$0xf] }
 0x25d   : > { %v3732_v29 = vpack.c.bf16 %v1286_v25, %v1278_v18  ;;  %v3766_v18 = vpack.c.bf16 %v1431_v21, %v1423_v20  ;;  %v1422_v25 = vld [vmem:[#allocation8 + $0xe30] sm:$0xff] }
 0x25e   : > { %3695 = vmatprep.subr.bf16.mxu1 %v3694_v26  ;;  %v1295_v26 = vld [vmem:[#allocation8 + $0xa38] sm:$0xff] }
 0x25f   : > { %3697 = vmatpush1.bf16.msra.mxu1 %v3696_v36  ;;  %v3734_v34 = vpack.c.bf16 %v1303_v28, %v1295_v26  ;;  %v1302_v36 = vld [vmem:[#allocation8 + $0xa70] sm:$0xff] }
 0x260   : > { %3699 = vmatprep.subr.bf16.mxu1 %v3698_v37  ;;  %v1311_v37 = vld [vmem:[#allocation8 + $0xab8] sm:$0xff]  ;;  %v3736_v39 = vpack.c.bf16 %v1302_v36, %v1294_v35  ;;  %v1430_v26 = vld [vmem:[#allocation8 + $0xe70] sm:$0xff] }
 0x261   : > { %v3738_v40 = vpack.c.bf16 %v1319_v38, %v1311_v37 }
 0x263   : > { %3701 = vmatpush1.bf16.msra.mxu1 %v3700_v42  ;;  %v1318_v42 = vld [vmem:[#allocation8 + $0xaf0] sm:$0xff] }
 0x264   : > { %3703 = vmatprep.subr.bf16.mxu1 %v3702_v43  ;;  %v1327_v43 = vld [vmem:[#allocation8 + $0xb38] sm:$0xff]  ;;  %v3740_v45 = vpack.c.bf16 %v1318_v42, %v1310_v41  ;;  %v3768_v41 = vpack.c.bf16 %v1430_v26, %v1422_v25 }
 0x265   : > { %v3742_v46 = vpack.c.bf16 %v1335_v44, %v1327_v43  ;;  %v1438_v44 = vld [vmem:[#allocation8 + $0xeb0] sm:$0xff] }
 0x267   : > { %3705 = vmatpush1.bf16.msra.mxu1 %v3704_v48  ;;  %v1334_v48 = vld [vmem:[#allocation8 + $0xb70] sm:$0xff] }
 0x268   : > { %3707 = vmatprep.subr.bf16.mxu1 %v3706_v49  ;;  %v1343_v49 = vld [vmem:[#allocation8 + $0xbb8] sm:$0xff]  ;;  %v3744_v51 = vpack.c.bf16 %v1334_v48, %v1326_v47 }
 0x269   : > { %v3746_v52 = vpack.c.bf16 %v1351_v50, %v1343_v49  ;;  %v1455_v47 = vld [vmem:[#allocation8 + $0xf38] sm:$0xff] }
 0x26a   : > { %v1463_v48 = vld [vmem:[#allocation8 + $0xf78] sm:$0xff] }
 0x26b   : > { %3709 = vmatpush1.bf16.msra.mxu1 %v3708_v54  ;;  %v1350_v54 = vld [vmem:[#allocation8 + $0xbf0] sm:$0xff] }
 0x26c   : > { %3711 = vmatprep.subr.bf16.mxu1 %v3710_v55  ;;  %v1359_v55 = vld [vmem:[#allocation8 + $0xc38] sm:$0xff]  ;;  %v3748_v57 = vpack.c.bf16 %v1350_v54, %v1342_v53  ;;  %v3774_v54 = vpack.c.bf16 %v1463_v48, %v1455_v47 }
 0x26d   : > { %v3750_v58 = vpack.c.bf16 %v1367_v56, %v1359_v55  ;;  %v1454_v55 = vld [vmem:[#allocation8 + $0xf30] sm:$0xff] }
 0x26e   : > { %v1462_v56 = vld [vmem:[#allocation8 + $0xf70] sm:$0xff] }
 0x26f   : > { %3713 = vmatpush1.bf16.msra.mxu1 %v3712_v60  ;;  %v1366_v60 = vld [vmem:[#allocation8 + $0xc70] sm:$0xff] }
 0x270   : > { %3715 = vmatprep.subr.bf16.mxu1 %v3714_v61  ;;  %v1375_v61 = vld [vmem:[#allocation8 + $0xcb8] sm:$0xff]  ;;  %v3752_v63 = vpack.c.bf16 %v1366_v60, %v1358_v59 }
 0x271   : > { %v3754_v0 = vpack.c.bf16 %v1383_v62, %v1375_v61 }
 0x273   : > { %3717 = vmatpush1.bf16.msra.mxu1 %v3716_v2  ;;  %v1382_v2 = vld [vmem:[#allocation8 + $0xcf0] sm:$0xff] }
 0x274   : > { %3719 = vmatprep.subr.bf16.mxu1 %v3718_v3  ;;  %v660_v3 = vlaneseq  ;;  %v3756_v6 = vpack.c.bf16 %v1382_v2, %v1374_v1  ;;  %v1470_v1 = vld [vmem:[#allocation8 + $0xfb0] sm:$0xff] }
 0x275   : > { %v1478_v2 = vld [vmem:[#allocation8 + $0xff0] sm:$0xff] }
 0x276   : > { %2013 = vmatmul.mubr.f32.vlgmr.msra.gmra.mrb[4].mxu1 %v3928_v13  ;;  %v4588_v10 = vshrl.u32 %v660_v3, 7  ;;  %v4590_v13 = vld [vmem:[#allocation11] sm:$0xff]  ;;  %v3780_v5 = vpack.c.bf16 %v1478_v2, %v1470_v1 }
 0x277   : > { %3721 = vmatpush1.bf16.msra.mxu1 %v3720_v8  ;;  %2083 = vmatprep.mubr.f32.mxu1 %v3929_v15  ;;  %v1390_v8 = vld [vmem:[#allocation8 + $0xd30] sm:$0xff] }
 0x278   : > { %3723 = vmatprep.subr.bf16.mxu1 %v3722_v9  ;;  %v1398_v9 = vld [vmem:[#allocation8 + $0xd70] sm:$0xff]  ;;  %v662_v17 = vsub.s32 0, %v4588_v10  ;;  %v666_v28 = vsub.s32 1, %v4588_v10 }
 0x279   : > { %v3760_v32 = vpack.c.bf16 %v1398_v9, %v1390_v8  ;;  %v1406_v15 = vld [vmem:[#allocation8 + $0xdb0] sm:$0xff] }
 0x27a   : > { %v663_v35 = vrot.slane %v658_v22, %v662_v17  ;;  %v667_v50 = vrot.slane %v658_v22, %v666_v28 }
 0x27b   : > { %3725 = vmatpush1.bf16.msra.mxu1 %v3724_v14  ;;  %v3762_v14 = vpack.c.bf16 %v1415_v12, %v1407_v11 }
 0x27c   : > { %3727 = vmatprep.subr.bf16.mxu1 %v3726_v16  ;;  %v1414_v16 = vld [vmem:[#allocation8 + $0xdf0] sm:$0xff]  ;;  %v3782_v49 = vadd.f32 %v4574_v27, %v663_v35  ;;  %v1471_v27 = vld [vmem:[#allocation8 + $0xfb8] sm:$0xff]  ;;  %v3783_v60 = vadd.f32 %v4578_v31, %v667_v50 }
 0x27f   : > { %3729 = vmatpush1.bf16.msra.mxu1 %v3728_v23  ;;  %v1485_v23 = vrot.slane %v4590_v13, %v662_v17 }
 0x280   : > { %3731 = vmatprep.subr.bf16.mxu1 %v3730_v24  ;;  %v3764_v24 = vpack.c.bf16 %v1414_v16, %v1406_v15 }
 0x283   : > { %3733 = vmatpush1.bf16.msra.mxu1 %v3732_v29  ;;  %v1439_v29 = vld [vmem:[#allocation8 + $0xeb8] sm:$0xff] }
 0x284   : > { %3735 = vmatprep.subr.bf16.mxu1 %v3734_v34  ;;  %v1447_v34 = vld [vmem:[#allocation8 + $0xef8] sm:$0xff] }
 0x285   : > { %v3770_v43 = vpack.c.bf16 %v1447_v34, %v1439_v29 }
 0x287   : > { %3737 = vmatpush1.bf16.msra.mxu1 %v3736_v39  ;;  %v1489_v39 = vrot.slane %v4590_v13, %v666_v28 }
 0x288   : > { %3739 = vmatprep.subr.bf16.mxu1 %v3738_v40 }
 0x28b   : > { %3741 = vmatpush1.bf16.msra.mxu1 %v3740_v45  ;;  %v1446_v45 = vld [vmem:[#allocation8 + $0xef0] sm:$0xff] }
 0x28c   : > { %3743 = vmatprep.subr.bf16.mxu1 %v3742_v46  ;;  %v670_v46 = vsub.s32 2, %v4588_v10  ;;  %v3772_v53 = vpack.c.bf16 %v1446_v45, %v1438_v44 }
 0x28e   : > { %v671_v59 = vrot.slane %v658_v22, %v670_v46 }
 0x28f   : > { %3745 = vmatpush1.bf16.msra.mxu1 %v3744_v51  ;;  %v1493_v51 = vrot.slane %v4590_v13, %v670_v46 }
 0x290   : > { %3747 = vmatprep.subr.bf16.mxu1 %v3746_v52  ;;  %v3784_v3 = vadd.f32 %v4576_v30, %v671_v59  ;;  %v1500_v30 = vsub.s32 4, %v4588_v10 }
 0x292   : > { %v1501_v8 = vrot.slane %v4590_v13, %v1500_v30 }
 0x293   : > { %3749 = vmatpush1.bf16.msra.mxu1 %v3748_v57  ;;  %v674_v57 = vsub.s32 3, %v4588_v10 }
 0x294   : > { %3751 = vmatprep.subr.bf16.mxu1 %v3750_v58  ;;  %v1479_v58 = vld [vmem:[#allocation8 + $0xff8] sm:$0xff] }
 0x295   : > { %v1497_v62 = vrot.slane %v4590_v13, %v674_v57  ;;  %v675_v31 = vrot.slane %v658_v22, %v674_v57  ;;  %v1508_v57 = vsub.s32 6, %v4588_v10 }
 0x297   : > { %3753 = vmatpush1.bf16.msra.mxu1 %v3752_v63  ;;  %v3776_v63 = vpack.c.bf16 %v1462_v56, %v1454_v55 }
 0x298   : > { %3755 = vmatprep.subr.bf16.mxu1 %v3754_v0  ;;  %v3778_v0 = vpack.c.bf16 %v1479_v58, %v1471_v27 }
 0x29b   : > { %3757 = vmatpush1.bf16.msra.mxu1 %v3756_v6  ;;  %v3785_v6 = vadd.f32 %v4580_v33, %v675_v31 }
 0x29c   : > { %3759 = vmatprep.subr.bf16.mxu1 %v3758_v7  ;;  %v3930_v7 = vld [vmem:[%s4533_s16 + $0x10] sm:$0xff] }
 0x29f   : > { %3761 = vmatpush1.bf16.msra.mxu1 %v3760_v32 }
 0x2a0   : > { %3763 = vmatprep.subr.bf16.mxu1 %v3762_v14 }
 0x2a3   : > { %3765 = vmatpush1.bf16.msra.mxu1 %v3764_v24 }
 0x2a4   : > { %3767 = vmatprep.subr.bf16.mxu1 %v3766_v18 }
 0x2a7   : > { %3769 = vmatpush1.bf16.msra.mxu1 %v3768_v41 }
 0x2a8   : > { %3771 = vmatprep.subr.bf16.mxu1 %v3770_v43 }
 0x2ab   : > { %3773 = vmatpush1.bf16.msra.mxu1 %v3772_v53 }
 0x2ac   : > { %3775 = vmatprep.subr.bf16.mxu1 %v3774_v54  ;;  %v1504_v54 = vsub.s32 5, %v4588_v10 }
 0x2ae   : > { %v1659_v36 = vpop.f32.mrb[2].mxu0  ;;  %v1505_v56 = vrot.slane %v4590_v13, %v1504_v54 }
 0x2af   : > { %v3786_v37 = vadd.f32 %v1659_v36, %v1485_v23  ;;  %v1801_v38 = vpop.f32.mrb[2].mxu1  ;;  %v1661_v40 = vpop.f32.mrb[3].mxu0  ;;  %3777 = vmatpush1.bf16.msra.mxu1 %v3776_v63 }
 0x2b0   : > { %v1803_v42 = vpop.f32.mrb[3].mxu1  ;;  %v3787_v52 = vadd.f32 %v1661_v40, %v1489_v39  ;;  %v3788_v61 = vadd.f32 %v1801_v38, %v1493_v51  ;;  %3779 = vmatprep.subr.bf16.mxu1 %v3778_v0 }
 0x2b1   : > { %2975 = vmatpush3.xpose.msra.mxu0 %v3786_v37  ;;  %v3789_v4 = vadd.f32 %v1803_v42, %v1497_v62  ;;  %v1512_v62 = vsub.s32 7, %v4588_v10 }
 0x2b2   : > { %2984 = vmatprep.subr.mxu0 %v4229_v19 }
 0x2b3   : > { %3781 = vmatpush1.bf16.msra.mxu1 %v3780_v5  ;;  %v1513_v10 = vrot.slane %v4590_v13, %v1512_v62 }
 0x2b4   : > { %2977 = vmatmul.mubr.f32.vlgmr.msra.gmra.mrb[6].mxu0 %v3782_v49  ;;  %2979 = vmatprep.subr.mxu1 %v4229_v19 }
 0x2b5   : > { %2985 = vmatpush3.xpose.msra.mxu0 %v3787_v52  ;;  %2986 = vmatprep.mubr.msk.f32.mxu0 %vm4230_vm0, %v4229_v19 }
 0x2b6   : > { %2994 = vmatprep.subr.mxu0 %v4229_v19  ;;  %2084 = vmatmul.mubr.f32.vlgmr.msra.gmra.mrb[4].mxu1 %v3930_v7 }
 0x2b7   : > { %2981 = vmatprep.mubr.msk.f32.mxu1 %vm4230_vm0, %v4229_v19 }
 0x2b8   : > { %2987 = vmatmul.mubr.f32.vlgmr.msra.gmra.mrb[8].mxu0 %v3783_v60 }
 0x2b9   : > { %2995 = vmatpush3.xpose.msra.mxu0 %v3788_v61  ;;  %2996 = vmatprep.mubr.msk.f32.mxu0 %vm4230_vm0, %v4229_v19  ;;  %v1509_v61 = vrot.slane %v4590_v13, %v1508_v57 }
 0x2ba   : > { %3004 = vmatprep.subr.mxu0 %v4229_v19 }
 0x2bc   : > { %2997 = vmatmul.mubr.f32.vlgmr.msra.gmra.mrb[10].mxu0 %v3784_v3 }
 0x2bd   : > { %3005 = vmatpush3.xpose.msra.mxu0 %v3789_v4  ;;  %3006 = vmatprep.mubr.msk.f32.mxu0 %vm4230_vm0, %v4229_v19 }
 0x2c0   : > { %3007 = vmatmul.mubr.f32.vlgmr.msra.gmra.mrb[12].mxu0 %v3785_v6 }
 0x32e   : > { %v1943_v9 = vpop.f32.mrb[4].mxu0 }
 0x32f   : > { %v3790_v11 = vadd.f32 %v1943_v9, %v1501_v8  ;;  %v1945_v12 = vpop.f32.mrb[5].mxu0 }
 0x330   : > { %v3791_v60 = vadd.f32 %v1945_v12, %v1505_v56 }
 0x331   : > { %2980 = vmatpush3.msra.mxu1 %v3790_v11 }
 0x332   : > { %2989 = vmatprep.subr.mxu1 %v4229_v19 }
 0x387   : > { %v2156_v33 = vpop.f32.mrb[6].mxu0 }
 0x388   : > { %v2978_v32 = vpop.f32.mrb[7].mxu0  ;;  %v2161_v14 = vsel %vm2160_vm1, %v2156_v33, -inf }
 0x389   : > { %2162 = vmax.xlane.f32.xlu0 %v2161_v14  ;;  %v2085_v25 = vpop.f32.mrb[4].mxu1 }
 0x38a   : > { %v2087_v26 = vpop.f32.mrb[5].mxu1  ;;  %v3792_v1 = vadd.f32 %v2085_v25, %v1509_v61 }
 0x38b   : > { %v2313_v15 = vpop.f32.mrb[8].mxu0  ;;  %v3793_v31 = vadd.f32 %v2087_v26, %v1513_v10 }
 0x38c   : > { %v2988_v16 = vpop.f32.mrb[9].mxu0  ;;  %v2317_v17 = vsel %vm2160_vm1, %v2313_v15, -inf }
 0x38d   : > { %2318 = vmax.xlane.f32.xlu0 %v2317_v17 }
 0x38f   : > { %v2470_v20 = vpop.f32.mrb[10].mxu0 }
 0x390   : > { %v2998_v21 = vpop.f32.mrb[11].mxu0  ;;  %v2474_v22 = vsel %vm2160_vm1, %v2470_v20, -inf }
 0x391   : > { %2475 = vmax.xlane.f32.xlu1 %v2474_v22 }
 0x393   : > { %v2627_v23 = vpop.f32.mrb[12].mxu0 }
 0x394   : > { %v3008_v24 = vpop.f32.mrb[13].mxu0  ;;  %v2631_v18 = vsel %vm2160_vm1, %v2627_v23, -inf }
 0x395   : > { %2632 = vmax.xlane.f32.xlu1 %v2631_v18 }
 0x416   : > { %v2163_v28 = vpop.xlane.xlu0 %2162 }
 0x417   : > { %v2164_v29 = vsub.f32 %v2156_v33, %v2163_v28 }
 0x419   : > { %v2165_v34 = vmul.f32 1.442695, %v2164_v29 }
 0x41a   : > { %v2319_v35 = vpop.xlane.xlu0 %2318 }
 0x41b   : > { %3911 = vpow2.f32 %v2165_v34  ;;  %v2320_v36 = vsub.f32 %v2313_v15, %v2319_v35 }
 0x41d   : > { %v2321_v37 = vmul.f32 1.442695, %v2320_v36 }
 0x41e   : > { %v2476_v38 = vpop.xlane.xlu1 %2475 }
 0x41f   : > { %3913 = vpow2.f32 %v2321_v37  ;;  %v2477_v39 = vsub.f32 %v2470_v20, %v2476_v38 }
 0x421   : > { %v2478_v40 = vmul.f32 1.442695, %v2477_v39 }
 0x422   : > { %v2633_v41 = vpop.xlane.xlu1 %2632 }
 0x423   : > { %3915 = vpow2.f32 %v2478_v40  ;;  %v2634_v42 = vsub.f32 %v2627_v23, %v2633_v41 }
 0x425   : > { %v3912_v43 = vpop.eup %3911  ;;  %v2635_v44 = vmul.f32 1.442695, %v2634_v42 }
 0x426   : > { %v2167_v45 = vsel %vm2160_vm1, %v3912_v43, 0.0 }
 0x427   : > { %3917 = vpow2.f32 %v2635_v44  ;;  %2168 = vadd.xlane.f32.xlu0 %v2167_v45 }
 0x429   : > { %v3914_v46 = vpop.eup %3913 }
 0x42a   : > { %v2323_v47 = vsel %vm2160_vm1, %v3914_v46, 0.0 }
 0x42b   : > { %2324 = vadd.xlane.f32.xlu1 %v2323_v47 }
 0x42d   : > { %v3916_v48 = vpop.eup %3915 }
 0x42e   : > { %v2480_v49 = vsel %vm2160_vm1, %v3916_v48, 0.0 }
 0x42f   : > { %2481 = vadd.xlane.f32.xlu0 %v2480_v49 }
 0x431   : > { %v3918_v50 = vpop.eup %3917 }
 0x432   : > { %v2637_v51 = vsel %vm2160_vm1, %v3918_v50, 0.0 }
 0x433   : > { %2638 = vadd.xlane.f32.xlu1 %v2637_v51 }
 0x4b4   : > { %v2169_v52 = vpop.xlane.xlu0 %2168 }
 0x4b5   : > { %3919 = vrcp.f32 %v2169_v52 }
 0x4b8   : > { %v2325_v53 = vpop.xlane.xlu1 %2324 }
 0x4b9   : > { %3921 = vrcp.f32 %v2325_v53 }
 0x4bc   : > { %v2482_v55 = vpop.xlane.xlu0 %2481 }
 0x4bd   : > { %3923 = vrcp.f32 %v2482_v55 }
 0x4bf   : > { %v3920_v27 = vpop.eup %3919 }
 0x4c0   : > { %v2171_v58 = vmul.f32 %v3920_v27, %v3912_v43  ;;  %v2639_v59 = vpop.xlane.xlu1 %2638 }
 0x4c1   : > { %3925 = vrcp.f32 %v2639_v59 }
 0x4c2   : > { %2246 = vst.msk [vmem:[%s4634_s23] sm:$0xff] %vm2160_vm1, %v2171_v58  ;;  %2982 = vmatmul.mubr.msk.f32.vlgmr.msra.gmra.mrb[6].mxu1 %vm2160_vm1, %v2171_v58 }
 0x4c3   : > { %v3922_v63 = vpop.eup %3921  ;;  %2990 = vmatpush3.msra.mxu1 %v3791_v60  ;;  %2991 = vmatprep.mubr.msk.f32.mxu1 %vm4230_vm0, %v4229_v19 }
 0x4c4   : > { %v2327_v0 = vmul.f32 %v3922_v63, %v3914_v46  ;;  %2999 = vmatprep.subr.mxu1 %v4229_v19 }
 0x4c6   : > { %2941 = vst.msk [vmem:[%s4634_s23 + $0x8] sm:$0xff] %vm2160_vm1, %v2327_v0  ;;  %2992 = vmatmul.mubr.msk.f32.vlgmr.msra.gmra.mrb[8].mxu1 %vm2160_vm1, %v2327_v0 }
 0x4c7   : > { %v3924_v2 = vpop.eup %3923  ;;  %3000 = vmatpush3.msra.mxu1 %v3792_v1  ;;  %3001 = vmatprep.mubr.msk.f32.mxu1 %vm4230_vm0, %v4229_v19 }
 0x4c8   : > { %v2484_v3 = vmul.f32 %v3924_v2, %v3916_v48  ;;  %3009 = vmatprep.subr.mxu1 %v4229_v19 }
 0x4ca   : > { %2943 = vst.msk [vmem:[%s4634_s23 + $0x10] sm:$0xff] %vm2160_vm1, %v2484_v3  ;;  %3002 = vmatmul.mubr.msk.f32.vlgmr.msra.gmra.mrb[10].mxu1 %vm2160_vm1, %v2484_v3 }
 0x4cb   : > { %v3926_v13 = vpop.eup %3925  ;;  %3010 = vmatpush3.msra.mxu1 %v3793_v31  ;;  %3011 = vmatprep.mubr.msk.f32.mxu1 %vm4230_vm0, %v4229_v19 }
 0x4cc   : > { %v2641_v4 = vmul.f32 %v3926_v13, %v3918_v50 }
 0x4ce   : > { %2945 = vst.msk [vmem:[%s4634_s23 + $0x18] sm:$0xff] %vm2160_vm1, %v2641_v4  ;;  %3012 = vmatmul.mubr.msk.f32.vlgmr.msra.gmra.mrb[12].mxu1 %vm2160_vm1, %v2641_v4 }
 0x4cf   : > { %4116 = shalt.err (!%p4113_p6)
}
 0x4d0   : > { %s4117_s18 = scalar_lea.hbm %s4663_s15, 512  ;;  %s4121_s19 = scalar_lea.hbm %s4749_s7, 1024 }
 0x4d1   : > { %p4118_p4 = scmp.ne.s32.totalorder %s4663_s15, %s4117_s18  ;;  %p4122_p10 = scmp.lt.u32.totalorder %s4663_s15, %s4749_s7 }
 0x4d2   : > { %p4123_p11 = scmp.lt.u32.totalorder %s4121_s19, %s4117_s18  ;;  %p4125_p12 = scmp.lt.u32.totalorder %s4117_s18, %s4663_s15 }
 0x4d3   : > { %p4119_p8 = pnand %p4118_p4, %p4779_p13 }
 0x4d4   : > { %p4124_p3 = por %p4123_p11, %p4122_p10 }
 0x4d5   : > { %p4120_p5 = pneg %p4119_p8 }
 0x4d6   : > { %p4126_p7 = por %p4125_p12, %p4124_p3 }
 0x4d8   : > { %p4127_p9 = pnand %p4126_p7, %p4120_p5 }
 0x4da   : > { %4130 = shalt.err (!%p4127_p9)
}
 0x4db   : > { %s4232_s22 = smov 128   ;;  %s4233_s28 = smov 8  }
 0x4dc   : > { %3827 = dma.vmem_to_hbm [thread:$0]  (%p4779_p13), %s4666_s10, 512, %s4663_s15, %s2724_s5, %s4232_s22, %s4232_s22, %s4233_s28  }
 0x4dd   : > { %s390_s2 = scalar_lea.vmem [#allocation13], %s4521_s3  ;;  %s4700_s3 = scalar_lea.hbm %s4748_s6, %s2956_s4 }
 0x4de   : > { %s2738_s14 = sshll.u32 %s390_s2, 4  ;;  %s2719_s15 = scalar_lea.sflag [#allocation4], %s4518_s17  ;;  %s4693_s14 = int_to_ptr.vmem [resolvable:$true] %s2738_s14 }
 0x4df   : > { %s4131_s10 = scalar_lea.vmem %s4693_s14, 512  ;;  %s4234_s5 = smov [#allocation13]  }
 0x4e0   : > { %p4132_p0 = scmp.ne.s32.totalorder %s4693_s14, %s4131_s10  ;;  %s4135_s18 = sshll.u32 %s4234_s5, 4  ;;  %s4136_s18 = int_to_ptr.vmem [resolvable:$false] %s4135_s18 }
 0x4e1   : > { %s4137_s30 = scalar_lea.vmem %s4136_s18, 1024  ;;  %p4138_p6 = scmp.lt.s32.totalorder %s4693_s14, %s4136_s18 }
 0x4e2   : > { %p4133_p2 = pnand %p4132_p0, %p4779_p13  ;;  %p4139_p4 = scmp.lt.s32.totalorder %s4137_s30, %s4131_s10 }
 0x4e4   : > { %p4134_p1 = pneg %p4133_p2  ;;  %p4140_p8 = por %p4139_p4, %p4138_p6 }
 0x4e6   : > { %p4141_p5 = pnand %p4140_p8, %p4134_p1 }
 0x595   : > { %v2241_v19 = vpop.f32.mrb[6].mxu1 }
 0x596   : > { %2245 = vst [vmem:[%s390_s2] sm:$0xff] %v2241_v19  ;;  %v2983_v5 = vpop.f32.mrb[7].mxu1 }
 0x599   : > { %v2397_v6 = vpop.f32.mrb[8].mxu1 }
 0x59a   : > { %2401 = vst [vmem:[%s390_s2 + $0x8] sm:$0xff] %v2397_v6  ;;  %v2993_v7 = vpop.f32.mrb[9].mxu1 }
 0x59d   : > { %v2554_v30 = vpop.f32.mrb[10].mxu1 }
 0x59e   : > { %2558 = vst [vmem:[%s390_s2 + $0x10] sm:$0xff] %v2554_v30  ;;  %v3003_v8 = vpop.f32.mrb[11].mxu1 }
 0x5a1   : > { %v2711_v9 = vpop.f32.mrb[12].mxu1 }
 0x5a2   : > { %2715 = vst [vmem:[%s390_s2 + $0x18] sm:$0xff] %v2711_v9  ;;  %v3013_v11 = vpop.f32.mrb[13].mxu1 }
 0x5a3   : > { %4144 = shalt.err (!%p4141_p5)
}
 0x5a4   : > { %s4145_s17 = scalar_lea.hbm %s4700_s3, 512  ;;  %s4149_s8 = scalar_lea.hbm %s4748_s6, 1024 }
 0x5a5   : > { %p4146_p10 = scmp.ne.s32.totalorder %s4700_s3, %s4145_s17  ;;  %p4150_p12 = scmp.lt.u32.totalorder %s4700_s3, %s4748_s6 }
 0x5a6   : > { %p4151_p7 = scmp.lt.u32.totalorder %s4149_s8, %s4145_s17  ;;  %p4153_p0 = scmp.lt.u32.totalorder %s4145_s17, %s4700_s3 }
 0x5a7   : > { %p4147_p11 = pnand %p4146_p10, %p4779_p13 }
 0x5a8   : > { %p4152_p9 = por %p4151_p7, %p4150_p12 }
 0x5a9   : > { %p4148_p3 = pneg %p4147_p11 }
 0x5aa   : > { %p4154_p2 = por %p4153_p0, %p4152_p9 }
 0x5ac   : > { %p4155_p1 = pnand %p4154_p2, %p4148_p3 }
 0x5ae   : > { %4158 = shalt.err (!%p4155_p1)
}
 0x5af   : > { %3826 = dma.vmem_to_hbm [thread:$0]  (%p4779_p13), %s4693_s14, 512, %s4700_s3, %s2719_s15  }
 0x5b0 PF: > { %s2766_s23 = sand.u32 1, %s4205_s24   ;;  %p4780_p6 = scmp.ne.s32.totalorder %s4769_s12, 0 }
 0x5b1   : > { %p4781_p4 = scmp.ge.s32.totalorder %s4217_s27, 2  ;;  %s2767_s22 = scalar_lea.sflag [#allocation4], %s2766_s23 }
 0x5b3   : > { %p3851_p8 = pnand %p4781_p4, %p4780_p6 }
 0x5b5   : > { %4196 = dma.done.wait (!%p3851_p8), %s2767_s22, 512  }
 0x5b6   : > { %4198 = vsyncadd (!%p3851_p8), %s2767_s22, 4294966784  ;;  %s2776_s28 = scalar_lea.sflag [#allocation15], %s2766_s23 }
 0x5b7   : > { %4200 = dma.done.wait (!%p3851_p8), %s2776_s28, 512  }
 0x5b8   : > { %4202 = vsyncadd (!%p3851_p8), %s2776_s28, 4294966784  ;;  %p29_p13 = scmp.ge.s32.totalorder %s4411_s11, 4   ;;  %s4782_s24 = smov %s4209_s25 }
 0x5b9   : > { %s4783_s25 = smov %s4213_s26  ;;  %s4784_s26 = smov %s4422_s29 }
 0x5ba   : > { %s4785_s27 = smov %s4411_s11  ;;  %31 = sbr.rel (!%p29_p13) target bundleno = 16 (0x10), region = 138 }
 0x5c1   :  { %2781 = vsyncpa [#allocation3], 1 }
 0x5c2   :  { %2783 = vsyncpa [#allocation3 + $0x1], 1 }
 0x5c3   :  { %2784 = vsyncpa [#allocation6], 1 }
 0x5c4   :  { %2786 = vsyncpa [#allocation6 + $0x1], 1 }
 0x5c5   :  { %2787 = vsyncpa [#allocation9], 1 }
 0x5c6   :  { %2788 = vsyncpa [#allocation12], 1 }
 0x5c7   :  { %2789 = vsyncpa [#allocation4], 1 }
 0x5c8   :  { %2791 = vsyncpa [#allocation4 + $0x1], 1 }
 0x5c9   :  { %2792 = vsyncpa [#allocation15], 1 }
 0x5ca   :  { %2794 = vsyncpa [#allocation15 + $0x1], 1 }

</bundles_post_ra>
